<compile_context>
chip_gen: v7x
topology: tpu7x:2x2x1
jax: 0.10.0
libtpu: 0.0.40
codegen_flags: <defaults>
</compile_context>

<pallas_src>
import functools

import jax
import jax.numpy as jnp
from jax.experimental import pallas as pl
from jax.experimental.pallas import tpu as pltpu


def _patch_embed_kernel(x_ref, w_ref, p_ref, o_ref, *, Gw, tr, Wo, eps):
    # x_ref: (1, 1, 16*C, (tr+2)*Gw) bf16  phase planes for this (batch, row-tile)
    # w_ref: (4, D, 16*C)            bf16  shift-group conv weights (invalid taps zeroed)
    # p_ref: (D, 8)                  f32   col0 = conv bias, col1 = ln gamma, col2 = ln beta
    # o_ref: (1, D, tr, Wo)          bf16 (or f32)
    tp = tr * Gw
    d = o_ref.shape[1]

    # Conv as 4 matmuls over static, contiguous lane windows; f32 accumulation.
    acc = jnp.zeros((d, tp), jnp.float32)
    for g, (qh, qw) in enumerate(((0, 0), (0, 1), (1, 0), (1, 1))):
        s = qh * Gw + qw                                   # static lane offset
        rhs = x_ref[0, 0, :, s:s + tp]                     # (16C, tp) bf16, contiguous
        acc = acc + jnp.dot(w_ref[g], rhs,
                            preferred_element_type=jnp.float32)
    y = acc + p_ref[:, 0:1]                                # conv bias

    # LayerNorm over channels (axis 0 here == dim 1 of NCHW), unbiased=False,
    # all math in f32.  var = E[y^2] - mean^2, folded affine.
    mean = jnp.mean(y, axis=0, keepdims=True)              # (1, tp)
    var = jnp.maximum(jnp.mean(y * y, axis=0, keepdims=True) - mean * mean, 0.0)
    scale = p_ref[:, 1:2] * jax.lax.rsqrt(var + eps)       # gamma * rsqrt  (EUP)
    out = ((y - mean) * scale + p_ref[:, 2:3]).astype(o_ref.dtype)

    # Drop the per-row junk column (position gw == Wo) while storing.
    for r in range(tr):
        o_ref[0, :, r, :] = out[:, r * Gw:r * Gw + Wo]


def _choose_row_tile(Ho, Gw, target_lanes=512):
    """Output-row tile: multiple of 16 (sublane-friendly for bf16 output blocks)
    giving roughly `target_lanes` matmul lanes, or the full Ho if small."""
    tr = max(1, target_lanes // Gw)
    tr = min(((tr + 15) // 16) * 16, 64)
    return Ho if tr >= Ho else tr


def patch_embed_pallas(x, conv_w, conv_b, ln_w, ln_b, *, stride=4, pad=3,
                       eps=1e-6, out_dtype=jnp.bfloat16):
    """x: (B, C, H, W) float32 NCHW.  Returns (B, D, Ho, Wo) like the torch module."""
    B, C, H, W = x.shape
    D, Cw, KH, KW = conv_w.shape
    assert (Cw, KH, KW, stride, pad) == (C, 7, 7, 4, 3)

    Ho = (H + 2 * pad - KH) // stride + 1
    Wo = (W + 2 * pad - KW) // stride + 1
    Gw = Wo + 1                               # col-groups (incl. one junk column/row)
    tr = _choose_row_tile(Ho, Gw)
    n_tiles = -(-Ho // tr)
    Gh = n_tiles * tr + 2                     # row-groups (covers qh shift + ragged tail)
    Hp, Wp = 4 * Gh, 4 * Gw                   # padded image dims (>= conv's pad of 3)

    # ---- one cheap pass: pad + phase-decompose into 16*C planes, bf16 ----
    xb = x.astype(jnp.bfloat16)
    x_pad = jnp.pad(xb, ((0, 0), (0, 0),
                         (pad, Hp - pad - H), (pad, Wp - pad - W)))
    x_ph = x_pad.reshape(B, C, Gh, 4, Gw, 4).transpose(0, 3, 5, 1, 2, 4)
    x_ph = x_ph.reshape(B, 16 * C, Gh * Gw)   # plane index = (rh*4 + rw)*C + c
    # Overlapping per-row-tile windows (overlap = 2*Gw elements) so every
    # in-kernel slice offset is static.
    Ltile = (tr + 2) * Gw
    step = tr * Gw
    x_tiles = jnp.stack([x_ph[:, :, t * step:t * step + Ltile]
                         for t in range(n_tiles)], axis=1)   # (B, n_tiles, 16C, Ltile)

    # ---- shift-group weights: Wg[qh,qw][d, (rh,rw,c)] = conv_w[d,c,4qh+rh,4qw+rw] ----
    groups = []
    for qh in (0, 1):
        for qw in (0, 1):
            nh = 4 if qh == 0 else 3          # kh = 4*qh + rh must stay <= 6
            nw = 4 if qw == 0 else 3
            blk = conv_w[:, :, 4 * qh:4 * qh + nh, 4 * qw:4 * qw + nw]
            blk = blk.transpose(0, 2, 3, 1)   # (D, rh, rw, C)
            wg = jnp.zeros((D, 4, 4, C), conv_w.dtype).at[:, :nh, :nw, :].set(blk)
            groups.append(wg.reshape(D, 16 * C))
    w_groups = jnp.stack(groups, axis=0).astype(jnp.bfloat16)   # (4, D, 16C)

    # ---- merged per-channel params: col0 bias, col1 gamma, col2 beta ----
    params = jnp.zeros((D, 8), jnp.float32)
    params = params.at[:, 0].set(conv_b.astype(jnp.float32))
    params = params.at[:, 1].set(ln_w.astype(jnp.float32))
    params = params.at[:, 2].set(ln_b.astype(jnp.float32))

    kernel = functools.partial(_patch_embed_kernel, Gw=Gw, tr=tr, Wo=Wo, eps=eps)
    return pl.pallas_call(
        kernel,
        out_shape=jax.ShapeDtypeStruct((B, D, Ho, Wo), out_dtype),
        grid_spec=pltpu.PrefetchScalarGridSpec(
            num_scalar_prefetch=0,
            grid=(B, n_tiles),
            in_specs=[
                pl.BlockSpec((1, 1, 16 * C, Ltile), lambda b, t: (b, t, 0, 0)),
                pl.BlockSpec((4, D, 16 * C), lambda b, t: (0, 0, 0)),
                pl.BlockSpec((D, 8), lambda b, t: (0, 0)),
            ],
            out_specs=pl.BlockSpec((1, D, tr, Wo), lambda b, t: (b, 0, t, 0)),
        ),
        compiler_params=pltpu.CompilerParams(
            dimension_semantics=("parallel", "parallel")),
    )(x_tiles, w_groups, params)


def _reference(x, conv_w, conv_b, ln_w, ln_b, *, stride=4, pad=3, eps=1e-6):
    y = jax.lax.conv_general_dilated(
        x, conv_w, window_strides=(stride, stride),
        padding=((pad, pad), (pad, pad)),
        dimension_numbers=("NCHW", "OIHW", "NCHW"))
    y = y + conv_b.reshape(1, -1, 1, 1)
    mean = jnp.mean(y, axis=1, keepdims=True)
    var = jnp.mean((y - mean) ** 2, axis=1, keepdims=True)
    yn = (y - mean) / jnp.sqrt(var + eps)
    return yn * ln_w.reshape(1, -1, 1, 1) + ln_b.reshape(1, -1, 1, 1)


if __name__ == "__main__":
    in_chans, dim = 3, 96
    B, H, W = 2, 16, 16

    key = jax.random.PRNGKey(0)
    kx, kw, kb = jax.random.split(key, 3)
    x = jax.random.normal(kx, (B, in_chans, H, W), dtype=jnp.float32)
    conv_w = 0.1 * jax.random.normal(kw, (dim, in_chans, 7, 7), dtype=jnp.float32)
    conv_b = 0.1 * jax.random.normal(kb, (dim,), dtype=jnp.float32)
    ln_w = jnp.ones((dim,), dtype=jnp.float32)    # torch.ones(dim)
    ln_b = jnp.zeros((dim,), dtype=jnp.float32)   # torch.zeros(dim)

    out = jax.jit(patch_embed_pallas)(x, conv_w, conv_b, ln_w, ln_b)
    out = jax.block_until_ready(out)

    ref = _reference(x, conv_w, conv_b, ln_w, ln_b)
    assert out.shape == (B, dim, 4, 4), out.shape
    max_err = float(jnp.max(jnp.abs(out.astype(jnp.float32) - ref)))
    # bf16 matmul operands + bf16 output (f32 accumulation / LN math) vs f32 ref.
    assert jnp.allclose(out.astype(jnp.float32), ref, atol=5e-2, rtol=5e-2), max_err

    print("KERNEL_OK")
</pallas_src>

<mosaic_0001>
module attributes {stable_mosaic.version = 11 : i64} {
  func.func @_patch_embed_kernel(%arg0: i32, %arg1: i32, %arg2: memref<1x1x48x30xbf16, #tpu.memory_space<vmem>>, %arg3: memref<4x96x48xbf16, #tpu.memory_space<vmem>>, %arg4: memref<96x8xf32, #tpu.memory_space<vmem>>, %arg5: memref<1x96x4x4xbf16, #tpu.memory_space<vmem>>) attributes {dimension_semantics = [#tpu.dimension_semantics<parallel>, #tpu.dimension_semantics<parallel>], iteration_bounds = array<i64: 2, 1>, scalar_prefetch = 0 : i64, scratch_operands = 0 : i64, tpu.core_type = #tpu.core_type<tc>, window_params = [{transform_indices = @transform_0, window_bounds = array<i64: 1, 1, 48, 30>}, {pipeline_mode = #tpu.pipeline_mode<synchronous>, transform_indices = @transform_1, window_bounds = array<i64: 4, 96, 48>}, {pipeline_mode = #tpu.pipeline_mode<synchronous>, transform_indices = @transform_2, window_bounds = array<i64: 96, 8>}, {transform_indices = @transform_3, window_bounds = array<i64: 1, 96, 4, 4>}]} {
    %cst = arith.constant 0.000000e+00 : f32
    %0 = vector.broadcast %cst : f32 to vector<96x20xf32>
    %c0 = arith.constant 0 : index
    %c0_0 = arith.constant 0 : index
    %c0_1 = arith.constant 0 : index
    %c0_2 = arith.constant 0 : index
    %1 = vector.load %arg2[%c0, %c0_0, %c0_1, %c0_2] : memref<1x1x48x30xbf16, #tpu.memory_space<vmem>>, vector<1x1x48x20xbf16>
    %2 = vector.shape_cast %1 : vector<1x1x48x20xbf16> to vector<48x20xbf16>
    %c0_3 = arith.constant 0 : index
    %c0_4 = arith.constant 0 : index
    %c0_5 = arith.constant 0 : index
    %3 = vector.load %arg3[%c0_3, %c0_4, %c0_5] : memref<4x96x48xbf16, #tpu.memory_space<vmem>>, vector<1x96x48xbf16>
    %4 = vector.shape_cast %3 : vector<1x96x48xbf16> to vector<96x48xbf16>
    %cst_6 = arith.constant dense<0.000000e+00> : vector<96x20xf32>
    %5 = tpu.matmul %4, %2, %cst_6 {dimension_numbers = #tpu.dot_dimension_numbers<[1], [0], [0], [1], [0, 0, 1, 1], [], []>} : vector<96x48xbf16>, vector<48x20xbf16>, vector<96x20xf32> -> vector<96x20xf32>
    %6 = arith.addf %0, %5 : vector<96x20xf32>
    %c0_7 = arith.constant 0 : index
    %c0_8 = arith.constant 0 : index
    %c0_9 = arith.constant 0 : index
    %c1 = arith.constant 1 : index
    %7 = vector.load %arg2[%c0_7, %c0_8, %c0_9, %c1] : memref<1x1x48x30xbf16, #tpu.memory_space<vmem>>, vector<1x1x48x20xbf16>
    %8 = vector.shape_cast %7 : vector<1x1x48x20xbf16> to vector<48x20xbf16>
    %c1_10 = arith.constant 1 : index
    %c0_11 = arith.constant 0 : index
    %c0_12 = arith.constant 0 : index
    %9 = vector.load %arg3[%c1_10, %c0_11, %c0_12] : memref<4x96x48xbf16, #tpu.memory_space<vmem>>, vector<1x96x48xbf16>
    %10 = vector.shape_cast %9 : vector<1x96x48xbf16> to vector<96x48xbf16>
    %cst_13 = arith.constant dense<0.000000e+00> : vector<96x20xf32>
    %11 = tpu.matmul %10, %8, %cst_13 {dimension_numbers = #tpu.dot_dimension_numbers<[1], [0], [0], [1], [0, 0, 1, 1], [], []>} : vector<96x48xbf16>, vector<48x20xbf16>, vector<96x20xf32> -> vector<96x20xf32>
    %12 = arith.addf %6, %11 : vector<96x20xf32>
    %c0_14 = arith.constant 0 : index
    %c0_15 = arith.constant 0 : index
    %c0_16 = arith.constant 0 : index
    %c5 = arith.constant 5 : index
    %13 = vector.load %arg2[%c0_14, %c0_15, %c0_16, %c5] : memref<1x1x48x30xbf16, #tpu.memory_space<vmem>>, vector<1x1x48x20xbf16>
    %14 = vector.shape_cast %13 : vector<1x1x48x20xbf16> to vector<48x20xbf16>
    %c2 = arith.constant 2 : index
    %c0_17 = arith.constant 0 : index
    %c0_18 = arith.constant 0 : index
    %15 = vector.load %arg3[%c2, %c0_17, %c0_18] : memref<4x96x48xbf16, #tpu.memory_space<vmem>>, vector<1x96x48xbf16>
    %16 = vector.shape_cast %15 : vector<1x96x48xbf16> to vector<96x48xbf16>
    %cst_19 = arith.constant dense<0.000000e+00> : vector<96x20xf32>
    %17 = tpu.matmul %16, %14, %cst_19 {dimension_numbers = #tpu.dot_dimension_numbers<[1], [0], [0], [1], [0, 0, 1, 1], [], []>} : vector<96x48xbf16>, vector<48x20xbf16>, vector<96x20xf32> -> vector<96x20xf32>
    %18 = arith.addf %12, %17 : vector<96x20xf32>
    %c0_20 = arith.constant 0 : index
    %c0_21 = arith.constant 0 : index
    %c0_22 = arith.constant 0 : index
    %c6 = arith.constant 6 : index
    %19 = vector.load %arg2[%c0_20, %c0_21, %c0_22, %c6] : memref<1x1x48x30xbf16, #tpu.memory_space<vmem>>, vector<1x1x48x20xbf16>
    %20 = vector.shape_cast %19 : vector<1x1x48x20xbf16> to vector<48x20xbf16>
    %c3 = arith.constant 3 : index
    %c0_23 = arith.constant 0 : index
    %c0_24 = arith.constant 0 : index
    %21 = vector.load %arg3[%c3, %c0_23, %c0_24] : memref<4x96x48xbf16, #tpu.memory_space<vmem>>, vector<1x96x48xbf16>
    %22 = vector.shape_cast %21 : vector<1x96x48xbf16> to vector<96x48xbf16>
    %cst_25 = arith.constant dense<0.000000e+00> : vector<96x20xf32>
    %23 = tpu.matmul %22, %20, %cst_25 {dimension_numbers = #tpu.dot_dimension_numbers<[1], [0], [0], [1], [0, 0, 1, 1], [], []>} : vector<96x48xbf16>, vector<48x20xbf16>, vector<96x20xf32> -> vector<96x20xf32>
    %24 = arith.addf %18, %23 : vector<96x20xf32>
    %c0_26 = arith.constant 0 : index
    %c0_27 = arith.constant 0 : index
    %25 = vector.load %arg4[%c0_26, %c0_27] : memref<96x8xf32, #tpu.memory_space<vmem>>, vector<96x1xf32>
    %26 = vector.broadcast %25 : vector<96x1xf32> to vector<96x20xf32>
    %27 = arith.addf %24, %26 : vector<96x20xf32>
    %cst_28 = arith.constant dense<0.000000e+00> : vector<20xf32>
    %28 = vector.multi_reduction <add>, %27, %cst_28 [0] : vector<96x20xf32> to vector<20xf32>
    %29 = vector.shape_cast %28 : vector<20xf32> to vector<1x20xf32>
    %cst_29 = arith.constant 9.600000e+01 : f32
    %30 = vector.broadcast %cst_29 : f32 to vector<1x20xf32>
    %31 = arith.divf %29, %30 : vector<1x20xf32>
    %32 = arith.mulf %27, %27 : vector<96x20xf32>
    %cst_30 = arith.constant dense<0.000000e+00> : vector<20xf32>
    %33 = vector.multi_reduction <add>, %32, %cst_30 [0] : vector<96x20xf32> to vector<20xf32>
    %34 = vector.shape_cast %33 : vector<20xf32> to vector<1x20xf32>
    %cst_31 = arith.constant 9.600000e+01 : f32
    %35 = vector.broadcast %cst_31 : f32 to vector<1x20xf32>
    %36 = arith.divf %34, %35 : vector<1x20xf32>
    %37 = arith.mulf %31, %31 : vector<1x20xf32>
    %38 = arith.subf %36, %37 : vector<1x20xf32>
    %cst_32 = arith.constant 0.000000e+00 : f32
    %39 = vector.broadcast %cst_32 : f32 to vector<1x20xf32>
    %40 = arith.maximumf %38, %39 : vector<1x20xf32>
    %c0_33 = arith.constant 0 : index
    %c1_34 = arith.constant 1 : index
    %41 = vector.load %arg4[%c0_33, %c1_34] : memref<96x8xf32, #tpu.memory_space<vmem>>, vector<96x1xf32>
    %cst_35 = arith.constant 9.99999997E-7 : f32
    %42 = vector.broadcast %cst_35 : f32 to vector<1x20xf32>
    %43 = arith.addf %40, %42 : vector<1x20xf32>
    %44 = math.rsqrt %43 : vector<1x20xf32>
    %45 = vector.broadcast %41 : vector<96x1xf32> to vector<96x20xf32>
    %46 = vector.broadcast %44 : vector<1x20xf32> to vector<96x20xf32>
    %47 = arith.mulf %45, %46 : vector<96x20xf32>
    %48 = vector.broadcast %31 : vector<1x20xf32> to vector<96x20xf32>
    %49 = arith.subf %27, %48 : vector<96x20xf32>
    %50 = arith.mulf %49, %47 : vector<96x20xf32>
    %c0_36 = arith.constant 0 : index
    %c2_37 = arith.constant 2 : index
    %51 = vector.load %arg4[%c0_36, %c2_37] : memref<96x8xf32, #tpu.memory_space<vmem>>, vector<96x1xf32>
    %52 = vector.broadcast %51 : vector<96x1xf32> to vector<96x20xf32>
    %53 = arith.addf %50, %52 : vector<96x20xf32>
    %54 = arith.truncf %53 : vector<96x20xf32> to vector<96x20xbf16>
    %55 = vector.extract_strided_slice %54 {offsets = [0, 0], sizes = [96, 4], strides = [1, 1]} : vector<96x20xbf16> to vector<96x4xbf16>
    %c0_38 = arith.constant 0 : index
    %c0_39 = arith.constant 0 : index
    %c0_40 = arith.constant 0 : index
    %c0_41 = arith.constant 0 : index
    %56 = vector.load %arg5[%c0_38, %c0_39, %c0_40, %c0_41] : memref<1x96x4x4xbf16, #tpu.memory_space<vmem>>, vector<1x96x1x4xbf16>
    %57 = vector.shape_cast %56 : vector<1x96x1x4xbf16> to vector<96x4xbf16>
    %58 = vector.shape_cast %55 : vector<96x4xbf16> to vector<1x96x1x4xbf16>
    tpu.vector_store %arg5[%c0_38, %c0_39, %c0_40, %c0_41], %58 {strides = array<i32>} : memref<1x96x4x4xbf16, #tpu.memory_space<vmem>>, vector<1x96x1x4xbf16>,
    %59 = vector.extract_strided_slice %54 {offsets = [0, 5], sizes = [96, 4], strides = [1, 1]} : vector<96x20xbf16> to vector<96x4xbf16>
    %c0_42 = arith.constant 0 : index
    %c0_43 = arith.constant 0 : index
    %c1_44 = arith.constant 1 : index
    %c0_45 = arith.constant 0 : index
    %60 = vector.load %arg5[%c0_42, %c0_43, %c1_44, %c0_45] : memref<1x96x4x4xbf16, #tpu.memory_space<vmem>>, vector<1x96x1x4xbf16>
    %61 = vector.shape_cast %60 : vector<1x96x1x4xbf16> to vector<96x4xbf16>
    %62 = vector.shape_cast %59 : vector<96x4xbf16> to vector<1x96x1x4xbf16>
    tpu.vector_store %arg5[%c0_42, %c0_43, %c1_44, %c0_45], %62 {strides = array<i32>} : memref<1x96x4x4xbf16, #tpu.memory_space<vmem>>, vector<1x96x1x4xbf16>,
    %63 = vector.extract_strided_slice %54 {offsets = [0, 10], sizes = [96, 4], strides = [1, 1]} : vector<96x20xbf16> to vector<96x4xbf16>
    %c0_46 = arith.constant 0 : index
    %c0_47 = arith.constant 0 : index
    %c2_48 = arith.constant 2 : index
    %c0_49 = arith.constant 0 : index
    %64 = vector.load %arg5[%c0_46, %c0_47, %c2_48, %c0_49] : memref<1x96x4x4xbf16, #tpu.memory_space<vmem>>, vector<1x96x1x4xbf16>
    %65 = vector.shape_cast %64 : vector<1x96x1x4xbf16> to vector<96x4xbf16>
    %66 = vector.shape_cast %63 : vector<96x4xbf16> to vector<1x96x1x4xbf16>
    tpu.vector_store %arg5[%c0_46, %c0_47, %c2_48, %c0_49], %66 {strides = array<i32>} : memref<1x96x4x4xbf16, #tpu.memory_space<vmem>>, vector<1x96x1x4xbf16>,
    %67 = vector.extract_strided_slice %54 {offsets = [0, 15], sizes = [96, 4], strides = [1, 1]} : vector<96x20xbf16> to vector<96x4xbf16>
    %c0_50 = arith.constant 0 : index
    %c0_51 = arith.constant 0 : index
    %c3_52 = arith.constant 3 : index
    %c0_53 = arith.constant 0 : index
    %68 = vector.load %arg5[%c0_50, %c0_51, %c3_52, %c0_53] : memref<1x96x4x4xbf16, #tpu.memory_space<vmem>>, vector<1x96x1x4xbf16>
    %69 = vector.shape_cast %68 : vector<1x96x1x4xbf16> to vector<96x4xbf16>
    %70 = vector.shape_cast %67 : vector<96x4xbf16> to vector<1x96x1x4xbf16>
    tpu.vector_store %arg5[%c0_50, %c0_51, %c3_52, %c0_53], %70 {strides = array<i32>} : memref<1x96x4x4xbf16, #tpu.memory_space<vmem>>, vector<1x96x1x4xbf16>,
    return
  }
  func.func @transform_0(%arg0: i32, %arg1: i32) -> (i32, i32, i32, i32) {
    %c0_i32 = arith.constant 0 : i32
    %c0_i32_0 = arith.constant 0 : i32
    %c0_i32_1 = arith.constant 0 : i32
    return %arg0, %arg1, %c0_i32, %c0_i32_0 : i32, i32, i32, i32
  }
  func.func @transform_1(%arg0: i32, %arg1: i32) -> (i32, i32, i32) {
    %c0_i32 = arith.constant 0 : i32
    %c0_i32_0 = arith.constant 0 : i32
    %c0_i32_1 = arith.constant 0 : i32
    %c0_i32_2 = arith.constant 0 : i32
    return %c0_i32, %c0_i32_0, %c0_i32_1 : i32, i32, i32
  }
  func.func @transform_2(%arg0: i32, %arg1: i32) -> (i32, i32) {
    %c0_i32 = arith.constant 0 : i32
    %c0_i32_0 = arith.constant 0 : i32
    %c0_i32_1 = arith.constant 0 : i32
    return %c0_i32, %c0_i32_0 : i32, i32
  }
  func.func @transform_3(%arg0: i32, %arg1: i32) -> (i32, i32, i32, i32) {
    %c0_i32 = arith.constant 0 : i32
    %c0_i32_0 = arith.constant 0 : i32
    %c0_i32_1 = arith.constant 0 : i32
    return %arg0, %c0_i32, %arg1, %c0_i32_0 : i32, i32, i32, i32
  }
}

</mosaic_0001>

<bundles_post_ra>
// kernel: patch_embed_pallas.1
= control target key start
LH: loop header
LB: loop body
LE: loop exit
PB: predicated region body
PF: predicated region fallthrough
CT: control target
= control target key end

     0   :  { %s4953_s12 = smov 0   ;;  %s4955_s13 = smov 0   ;;  %s8024_s0 = inlined_call_operand.vmem [shape: bf16[2,1,48,30], index: 0, kind: input, shape index: {}]   ;;  %s8025_s1 = inlined_call_operand.vmem [shape: bf16[4,96,48], index: 1, kind: input, shape index: {}]   ;;  %s8026_s2 = inlined_call_operand.vmem [shape: f32[96,8], index: 2, kind: input, shape index: {}]   ;;  %s8027_s3 = inlined_call_operand.vmem [shape: bf16[2,96,4,4], index: 3, kind: output, shape index: {}]  }
   0x1   :  { %s4957_s14 = smov 0  }
   0x2 LB: > { %s25_s15 = sadd.s32 1, %s4917_s13  ;;  %p4538_p0 = scmp.ge.s32.totalorder %s4921_s14, 1  ;;  %s4921_s14 = sphi %s4957_s14, %s13_s14   ;;  %s4917_s13 = sphi %s4955_s13, %s8397_s13   ;;  %s4913_s12 = sphi %s4953_s12, %s8396_s12  }
   0x3   : > { %p27_p1 = scmp.ge.s32.totalorder %s25_s15, 2  ;;  %p157_p2 = scmp.lt.s32.totalorder %s4921_s14, 3 }
   0x5   : > { %s8399_s15 = smov (%p27_p1, %s25_s15), 0  ;;  %p158_p3 = pnand %p4538_p0, %p157_p2 }
   0x7   : > { %161 = sbr.rel (%p158_p3) target bundleno = 1187 (0x4a3), region = 32 }
   0xe   : > { %p188_p4 = scmp.lt.s32.totalorder %s4913_s12, 1  ;;  %v4873_v0 = vld [vmem:[%s8025_s1 + $0x30] sm:$0xff]   ;;  %vm291_vm0 = vcmask 392192   ;;  %s4923_s22 = smov 127   ;;  %v4875_v4 = vld [vmem:[%s8025_s1 + $0x60] sm:$0xff]   ;;  %v4926_v6 = vmov 0  }
   0xf   : > { %4726 = vmatprep.mubr.msk.bf16.mxu1 %vm291_vm0, %v4873_v0  ;;  %4762 = vmatprep.mubr.msk.bf16.mxu0 %vm291_vm0, %v4875_v4  ;;  %s4924_s25 = smov 123   ;;  %s4925_s26 = smov 122   ;;  %v849_v5 = vld [vmem:[%s8026_s2] sm:$0xff]  ;;  %v850_v7 = vld [vmem:[%s8026_s2 + $0x8] sm:$0xff]  ;;  %v851_v8 = vld [vmem:[%s8026_s2 + $0x10] sm:$0xff]  ;;  %v4927_v17 = vmov 1  }
  0x10   : > { %s8401_s12 = smov (!%p188_p4, %s4913_s12), 1  ;;  %4864 = vset.pattern.permute.xlu1 %v4926_v6  ;;  %4865 = vset.pattern.permute.xlu0 %v4926_v6  ;;  %v853_v9 = vld [vmem:[%s8026_s2 + $0x20] sm:$0xff]  ;;  %v852_v10 = vld [vmem:[%s8026_s2 + $0x18] sm:$0xff]  ;;  %v855_v11 = vld [vmem:[%s8026_s2 + $0x30] sm:$0xff]  ;;  %v4928_v19 = vmov 2   ;;  %vm933_vm1 = vcmask 162816  }
  0x11   : > { %s4828_s16 = smul.u32 24, %s8401_s12  ;;  %v854_v12 = vld [vmem:[%s8026_s2 + $0x28] sm:$0xff]  ;;  %v857_v13 = vld [vmem:[%s8026_s2 + $0x40] sm:$0xff]  ;;  %v856_v14 = vld [vmem:[%s8026_s2 + $0x38] sm:$0xff]  ;;  %vm2422_vm2 = vcmask 24576   ;;  %s4931_s5 = smov 118  }
  0x12   : > { %v859_v15 = vld [vmem:[%s8026_s2 + $0x50] sm:$0xff]  ;;  %v858_v16 = vld [vmem:[%s8026_s2 + $0x48] sm:$0xff]  ;;  %v860_v18 = vld [vmem:[%s8026_s2 + $0x58] sm:$0xff]  ;;  %vm2423_vm3 = vsmask.f32 256  ;;  %s4829_s29 = smul.u32 192, %s8401_s12 }
  0x13   : > { %s196_s19 = scalar_lea.vmem %s8024_s0, %s4828_s16  ;;  %v4874_v26 = vld [vmem:[%s8025_s1 + $0x38] sm:$0xff]   ;;  %v4877_v27 = vld [vmem:[%s8025_s1 + $0x40] sm:$0xff]   ;;  %v4876_v29 = vld [vmem:[%s8025_s1 + $0x68] sm:$0xff]   ;;  %vm3001_vm5 = vsmask.f32 7938  ;;  %vm3579_vm7 = vcmask 25601  }
  0x14   : > { %v4980_v1 = vld [vmem:[%s196_s19 + $0x10] sm:$0xff]   ;;  %v4982_v2 = vld [vmem:[%s196_s19] sm:$0xff]   ;;  %v4987_v3 = vld [vmem:[%s196_s19 + $0x8] sm:$0xff]   ;;  %s5482_s4 = scalar_lea.vmem %s8027_s3, %s4829_s29  ;;  %vm3580_vm8 = vsmask.f32 1280 }
  0x15   : > { %286 = vrot.lane.b32.xlu1 %v4980_v1, %s4923_s22  ;;  %282 = vrot.lane.b32.xlu0 %v4982_v2, %s4923_s22  ;;  %v4879_v30 = vld [vmem:[%s8025_s1 + $0x70] sm:$0xff]   ;;  %v4878_v32 = vld [vmem:[%s8025_s1 + $0x48] sm:$0xff]   ;;  %vm5517_vm4 = vmand %vm2422_vm2, %vm2423_vm3  ;;  %vm4158_vm10 = vsmask.f32 7942 }
  0x16   : > { %v4881_v33 = vld [vmem:[%s8025_s1 + $0x50] sm:$0xff]   ;;  %v4880_v35 = vld [vmem:[%s8025_s1 + $0x78] sm:$0xff]   ;;  %v4883_v36 = vld [vmem:[%s8025_s1 + $0x80] sm:$0xff]  }
  0x17   : > { %v4882_v37 = vld [vmem:[%s8025_s1 + $0x58] sm:$0xff]   ;;  %v4885_v38 = vld [vmem:[%s8025_s1] sm:$0xff]   ;;  %v4884_v39 = vld [vmem:[%s8025_s1 + $0x88] sm:$0xff]  }
  0x18   : > { %v4887_v40 = vld [vmem:[%s8025_s1 + $0x90] sm:$0xff]   ;;  %v4886_v41 = vld [vmem:[%s8025_s1 + $0x8] sm:$0xff]   ;;  %v4888_v43 = vld [vmem:[%s8025_s1 + $0x98] sm:$0xff]  }
  0x19   : > { %566 = vrot.lane.b32.xlu1 %v4982_v2, %s4924_s25  ;;  %284 = vrot.lane.b32.xlu0 %v4987_v3, %s4923_s22  ;;  %v4889_v42 = vld [vmem:[%s8025_s1 + $0x10] sm:$0xff]   ;;  %v4891_v44 = vld [vmem:[%s8025_s1 + $0xa0] sm:$0xff]   ;;  %vm6387_vm6 = vmand %vm2422_vm2, %vm3001_vm5 }
  0x1a   : > { %v4890_v45 = vld [vmem:[%s8025_s1 + $0x18] sm:$0xff]   ;;  %v4893_v46 = vld [vmem:[%s8025_s1 + $0x20] sm:$0xff]   ;;  %v4892_v47 = vld [vmem:[%s8025_s1 + $0xa8] sm:$0xff]  }
  0x1b   : > { %v4895_v48 = vld [vmem:[%s8025_s1 + $0xb0] sm:$0xff]   ;;  %v4894_v49 = vld [vmem:[%s8025_s1 + $0x28] sm:$0xff]   ;;  %v4896_v50 = vld [vmem:[%s8025_s1 + $0xb8] sm:$0xff]  }
  0x1c   : > { %vm6533_vm9 = vmand %vm3579_vm7, %vm3580_vm8 }
  0x1d   : > { %570 = vrot.lane.b32.xlu1 %v4980_v1, %s4924_s25  ;;  %568 = vrot.lane.b32.xlu0 %v4987_v3, %s4924_s25  ;;  %vm7546_vm11 = vmand %vm3579_vm7, %vm4158_vm10 }
  0x21   : > { %731 = vrot.lane.b32.xlu1 %v4987_v3, %s4925_s26  ;;  %729 = vrot.lane.b32.xlu0 %v4982_v2, %s4925_s26 }
  0x25   : > { %733 = vrot.lane.b32.xlu0 %v4980_v1, %s4925_s26  ;;  %863 = vperm.xlu1 %4864, %v849_v5  }
  0x29   : > { %868 = vperm.xlu0 %4865, %v850_v7   ;;  %873 = vperm.xlu1 %4864, %v851_v8  }
  0x2d   : > { %883 = vperm.xlu0 %4865, %v853_v9   ;;  %878 = vperm.xlu1 %4864, %v852_v10  }
  0x31   : > { %893 = vperm.xlu0 %4865, %v855_v11   ;;  %888 = vperm.xlu1 %4864, %v854_v12  }
  0x35   : > { %903 = vperm.xlu0 %4865, %v857_v13   ;;  %898 = vperm.xlu1 %4864, %v856_v14  }
  0x39   : > { %913 = vperm.xlu0 %4865, %v859_v15   ;;  %908 = vperm.xlu1 %4864, %v858_v16  }
  0x3d   : > { %4866 = vset.pattern.permute.xlu0 %v4927_v17  ;;  %918 = vperm.xlu1 %4864, %v860_v18  }
  0x3e   : > { %1013 = vperm.xlu0 %4866, %v849_v5  }
  0x41   : > { %4867 = vset.pattern.permute.xlu1 %v4927_v17 }
  0x42   : > { %1025 = vperm.xlu0 %4866, %v852_v10   ;;  %1017 = vperm.xlu1 %4867, %v850_v7  }
  0x46   : > { %1033 = vperm.xlu0 %4866, %v854_v12   ;;  %1021 = vperm.xlu1 %4867, %v851_v8  }
  0x4a   : > { %1041 = vperm.xlu0 %4866, %v856_v14   ;;  %1029 = vperm.xlu1 %4867, %v853_v9  }
  0x4e   : > { %1049 = vperm.xlu0 %4866, %v858_v16   ;;  %1037 = vperm.xlu1 %4867, %v855_v11  }
  0x52   : > { %1057 = vperm.xlu0 %4866, %v860_v18   ;;  %1045 = vperm.xlu1 %4867, %v857_v13  }
  0x56   : > { %4869 = vset.pattern.permute.xlu0 %v4928_v19  ;;  %1053 = vperm.xlu1 %4867, %v859_v15  }
  0x57   : > { %1101 = vperm.xlu0 %4869, %v850_v7  }
  0x5a   : > { %4868 = vset.pattern.permute.xlu1 %v4928_v19 }
  0x5b   : > { %1113 = vperm.xlu0 %4869, %v853_v9   ;;  %1097 = vperm.xlu1 %4868, %v849_v5  }
  0x5f   : > { %1121 = vperm.xlu0 %4869, %v855_v11   ;;  %1105 = vperm.xlu1 %4868, %v851_v8  }
  0x63   : > { %1129 = vperm.xlu0 %4869, %v857_v13   ;;  %1109 = vperm.xlu1 %4868, %v852_v10  }
  0x67   : > { %1137 = vperm.xlu0 %4869, %v859_v15   ;;  %1117 = vperm.xlu1 %4868, %v854_v12  }
  0x6b   : > { %1125 = vperm.xlu1 %4868, %v856_v14  }
  0x6f   : > { %1133 = vperm.xlu1 %4868, %v858_v16  }
  0x73   : > { %1141 = vperm.xlu1 %4868, %v860_v18  }
  0x87   : > { %v287_v20 = vpop.permute.xlu1 %286  ;;  %v283_v21 = vpop.permute.xlu0 %282 }
  0x88   : > { %4720 = vmatprep.subr.bf16.mxu1 %v283_v21 }
  0x89   : > { %4721 = vmatpush3.bf16.msra.mxu1 %v283_v21 }
  0x8b   : > { %v567_v22 = vpop.permute.xlu1 %566  ;;  %v285_v23 = vpop.permute.xlu0 %284 }
  0x8c   : > { %4756 = vmatprep.subr.bf16.mxu0 %v567_v22  ;;  %4722 = vmatprep.subr.bf16.mxu1 %v285_v23 }
  0x8d   : > { %4757 = vmatpush3.bf16.msra.mxu0 %v567_v22  ;;  %4723 = vmatpush3.bf16.msra.mxu1 %v285_v23 }
  0x8e   : > { %4724 = vmatprep.subr.bf16.mxu1 %v287_v20 }
  0x8f   : > { %v569_v24 = vpop.permute.xlu0 %568  ;;  %v571_v25 = vpop.permute.xlu1 %570 }
  0x90   : > { %4758 = vmatprep.subr.bf16.mxu0 %v569_v24 }
  0x91   : > { %4725 = vmatpush3.bf16.msra.mxu1 %v287_v20  ;;  %4759 = vmatpush3.bf16.msra.mxu0 %v569_v24 }
  0x92   : > { %4760 = vmatprep.subr.bf16.mxu0 %v571_v25  ;;  %4738 = vmatprep.subr.bf16.mxu1 %v4982_v2 }
  0x93   : > { %v730_v28 = vpop.permute.xlu0 %729  ;;  %v732_v31 = vpop.permute.xlu1 %731 }
  0x94   : > { %4727 = vmatmul.mubr.msk.bf16.vlgmr.msra.gmra.mrb[0].mxu1 %vm291_vm0, %v4874_v26 }
  0x95   : > { %4761 = vmatpush3.bf16.msra.mxu0 %v571_v25  ;;  %4739 = vmatpush3.bf16.msra.mxu1 %v4982_v2 }
  0x96   : > { %4774 = vmatprep.subr.bf16.mxu0 %v730_v28  ;;  %4730 = vmatprep.mubr.msk.bf16.mxu1 %vm291_vm0, %v4877_v27 }
  0x97   : > { %4740 = vmatprep.subr.bf16.mxu1 %v4987_v3  ;;  %v734_v34 = vpop.permute.xlu0 %733 }
  0x98   : > { %4763 = vmatmul.mubr.msk.bf16.vlgmr.msra.gmra.mrb[0].mxu0 %vm291_vm0, %v4876_v29 }
  0x99   : > { %4775 = vmatpush3.bf16.msra.mxu0 %v730_v28  ;;  %4766 = vmatprep.mubr.msk.bf16.mxu0 %vm291_vm0, %v4879_v30 }
  0x9a   : > { %4776 = vmatprep.subr.bf16.mxu0 %v732_v31  ;;  %4741 = vmatpush3.bf16.msra.mxu1 %v4987_v3 }
  0x9b   : > { %4742 = vmatprep.subr.bf16.mxu1 %v4980_v1 }
  0x9c   : > { %4731 = vmatmul.mubr.msk.bf16.gmra.mrb[4].mxu1 %vm291_vm0, %v4878_v32 }
  0x9d   : > { %4777 = vmatpush3.bf16.msra.mxu0 %v732_v31  ;;  %4734 = vmatprep.mubr.msk.bf16.mxu1 %vm291_vm0, %v4881_v33 }
  0x9e   : > { %4778 = vmatprep.subr.bf16.mxu0 %v734_v34  ;;  %4743 = vmatpush3.bf16.msra.mxu1 %v4980_v1 }
  0xa0   : > { %4767 = vmatmul.mubr.msk.bf16.gmra.mrb[4].mxu0 %vm291_vm0, %v4880_v35 }
  0xa1   : > { %4770 = vmatprep.mubr.msk.bf16.mxu0 %vm291_vm0, %v4883_v36  ;;  %4779 = vmatpush3.bf16.msra.mxu0 %v734_v34 }
  0xa4   : > { %4735 = vmatmul.mubr.msk.bf16.gmra.mrb[8].mxu1 %vm291_vm0, %v4882_v37  ;;  %v864_v51 = vpop.permute.xlu1 %863 }
  0xa5   : > { %4744 = vmatprep.mubr.msk.bf16.mxu1 %vm291_vm0, %v4885_v38 }
  0xa8   : > { %4771 = vmatmul.mubr.msk.bf16.gmra.mrb[8].mxu0 %vm291_vm0, %v4884_v39  ;;  %v874_v52 = vpop.permute.xlu1 %873  ;;  %v869_v56 = vpop.permute.xlu0 %868 }
  0xa9   : > { %4780 = vmatprep.mubr.msk.bf16.mxu0 %vm291_vm0, %v4887_v40 }
  0xac   : > { %4745 = vmatmul.mubr.msk.bf16.vlgmr.msra.gmra.mrb[0].mxu1 %vm291_vm0, %v4886_v41  ;;  %v879_v53 = vpop.permute.xlu1 %878  ;;  %v884_v1 = vpop.permute.xlu0 %883 }
  0xad   : > { %4748 = vmatprep.mubr.msk.bf16.mxu1 %vm291_vm0, %v4889_v42 }
  0xb0   : > { %4781 = vmatmul.mubr.msk.bf16.vlgmr.msra.gmra.mrb[0].mxu0 %vm291_vm0, %v4888_v43  ;;  %v889_v54 = vpop.permute.xlu1 %888  ;;  %v894_v18 = vpop.permute.xlu0 %893 }
  0xb1   : > { %4784 = vmatprep.mubr.msk.bf16.mxu0 %vm291_vm0, %v4891_v44 }
  0xb4   : > { %4749 = vmatmul.mubr.msk.bf16.gmra.mrb[4].mxu1 %vm291_vm0, %v4890_v45  ;;  %v5133_v55 = vpop.permute.xlu1 %898 }
  0xb5   : > { %4752 = vmatprep.mubr.msk.bf16.mxu1 %vm291_vm0, %v4893_v46 }
  0xb8   : > { %4785 = vmatmul.mubr.msk.bf16.gmra.mrb[4].mxu0 %vm291_vm0, %v4892_v47  ;;  %v5135_v60 = vpop.permute.xlu1 %908  ;;  %v904_v47 = vpop.permute.xlu0 %903 }
  0xb9   : > { %4788 = vmatprep.mubr.msk.bf16.mxu0 %vm291_vm0, %v4895_v48 }
  0xbc   : > { %4753 = vmatmul.mubr.msk.bf16.gmra.mrb[8].mxu1 %vm291_vm0, %v4894_v49  ;;  %v5141_v10 = vpop.permute.xlu1 %918 }
  0xc0   : > { %4789 = vmatmul.mubr.msk.bf16.gmra.mrb[8].mxu0 %vm291_vm0, %v4896_v50 }
  0xc1   : > { %v5159_v27 = vpop.permute.xlu1 %1017 }
 0x17f   : > { %v4746_v57 = vpop.f32.mrb[0].mxu1 }
 0x180   : > { %v476_v58 = vpop.f32.mrb[1].mxu1 }
 0x181   : > { %v4747_v59 = vpop.f32.mrb[2].mxu1 }
 0x182   : > { %v479_v61 = vpop.f32.mrb[3].mxu1 }
 0x183   : > { %v4782_v62 = vpop.f32.mrb[0].mxu0 }
 0x184   : > { %v4792_v63 = vadd.f32 %v4782_v62, %v4746_v57  ;;  %v790_v0 = vpop.f32.mrb[1].mxu0 }
 0x185   : > { %v4793_v2 = vadd.f32 %v790_v0, %v476_v58  ;;  %v4783_v3 = vpop.f32.mrb[2].mxu0  ;;  %v5182_v58 = vpop.permute.xlu1 %1021 }
 0x186   : > { %v5137_v4 = vadd.f32 %v4792_v63, %v874_v52  ;;  %v4794_v5 = vadd.f32 %v4783_v3, %v4747_v59  ;;  %v793_v6 = vpop.f32.mrb[3].mxu0 }
 0x187   : > { %v5139_v7 = vadd.f32 %v4793_v2, %v864_v51  ;;  %v4795_v8 = vadd.f32 %v793_v6, %v479_v61  ;;  %v4750_v9 = vpop.f32.mrb[4].mxu1 }
 0x188   : > { %v492_v11 = vpop.f32.mrb[5].mxu1  ;;  %v5145_v13 = vadd.f32 %v4794_v5, %v879_v53  ;;  %v967_v16 = vmul.f32 %v5137_v4, %v5137_v4  ;;  %v937_v23 = vsel %vm933_vm1, %v5137_v4, 0.0 }
 0x189   : > { %v965_v12 = vmul.f32 %v5139_v7, %v5139_v7  ;;  %v5147_v14 = vadd.f32 %v4795_v8, %v869_v56  ;;  %v4751_v15 = vpop.f32.mrb[6].mxu1  ;;  %v934_v19 = vsel %vm933_vm1, %v5139_v7, 0.0 }
 0x18a   : > { %v495_v17 = vpop.f32.mrb[7].mxu1  ;;  %v968_v29 = vmul.f32 %v5145_v13, %v5145_v13  ;;  %v980_v33 = vsel %vm933_vm1, %v967_v16, 0.0  ;;  %v939_v38 = vsel %vm933_vm1, %v5145_v13, 0.0  ;;  %v914_v16 = vpop.permute.xlu0 %913 }
 0x18b   : > { %v935_v20 = vsel %vm933_vm1, %v5147_v14, 0.0  ;;  %v966_v21 = vmul.f32 %v5147_v14, %v5147_v14  ;;  %v4786_v22 = vpop.f32.mrb[4].mxu0  ;;  %v977_v28 = vsel %vm933_vm1, %v965_v12, 0.0 }
 0x18c   : > { %v936_v24 = vadd.f32 %v935_v20, %v934_v19  ;;  %v4796_v25 = vadd.f32 %v4786_v22, %v4750_v9  ;;  %v806_v26 = vpop.f32.mrb[5].mxu0  ;;  %v982_v46 = vsel %vm933_vm1, %v968_v29, 0.0 }
 0x18d   : > { %v978_v30 = vsel %vm933_vm1, %v966_v21, 0.0  ;;  %v4797_v31 = vadd.f32 %v806_v26, %v492_v11  ;;  %v4787_v32 = vpop.f32.mrb[6].mxu0 }
 0x18e   : > { %v938_v34 = vadd.f32 %v937_v23, %v936_v24  ;;  %v979_v35 = vadd.f32 %v978_v30, %v977_v28  ;;  %v4798_v36 = vadd.f32 %v4787_v32, %v4751_v15  ;;  %v809_v37 = vpop.f32.mrb[7].mxu0  ;;  %v5168_v39 = vadd.f32 %v4796_v25, %v894_v18  ;;  %v5203_v24 = vpop.permute.xlu1 %1029 }
 0x18f   : > { %v5170_v40 = vadd.f32 %v4797_v31, %v884_v1  ;;  %v4799_v41 = vadd.f32 %v809_v37, %v495_v17  ;;  %v4754_v42 = vpop.f32.mrb[8].mxu1  ;;  %v5221_v37 = vpop.permute.xlu0 %1013 }
 0x190   : > { %v981_v43 = vadd.f32 %v980_v33, %v979_v35  ;;  %v940_v44 = vadd.f32 %v939_v38, %v938_v34  ;;  %v508_v45 = vpop.f32.mrb[9].mxu1  ;;  %v5180_v56 = vadd.f32 %v4798_v36, %v5133_v55  ;;  %v971_v59 = vmul.f32 %v5168_v39, %v5168_v39 }
 0x191   : > { %v941_v48 = vsel %vm933_vm1, %v5170_v40, 0.0  ;;  %v969_v49 = vmul.f32 %v5170_v40, %v5170_v40  ;;  %v5177_v50 = vadd.f32 %v4799_v41, %v889_v54  ;;  %v4755_v51 = vpop.f32.mrb[10].mxu1  ;;  %v945_v3 = vsel %vm933_vm1, %v5168_v39, 0.0 }
 0x192   : > { %v942_v52 = vadd.f32 %v941_v48, %v940_v44  ;;  %v983_v53 = vadd.f32 %v982_v46, %v981_v43  ;;  %v511_v57 = vpop.f32.mrb[11].mxu1  ;;  %v972_v8 = vmul.f32 %v5180_v56, %v5180_v56  ;;  %v947_v17 = vsel %vm933_vm1, %v5180_v56, 0.0 }
 0x193   : > { %v984_v61 = vsel %vm933_vm1, %v969_v49, 0.0  ;;  %v943_v62 = vsel %vm933_vm1, %v5177_v50, 0.0  ;;  %v4790_v63 = vpop.f32.mrb[8].mxu0  ;;  %v970_v1 = vmul.f32 %v5177_v50, %v5177_v50  ;;  %v988_v21 = vsel %vm933_vm1, %v971_v59, 0.0 }
 0x194   : > { %v985_v54 = vadd.f32 %v984_v61, %v983_v53  ;;  %v944_v0 = vadd.f32 %v943_v62, %v942_v52  ;;  %v4800_v2 = vadd.f32 %v4790_v63, %v4754_v42  ;;  %v822_v55 = vpop.f32.mrb[9].mxu0  ;;  %v990_v30 = vsel %vm933_vm1, %v972_v8, 0.0  ;;  %v1026_v52 = vpop.permute.xlu0 %1025 }
 0x195   : > { %v4801_v5 = vadd.f32 %v822_v55, %v508_v45  ;;  %v4791_v6 = vpop.f32.mrb[10].mxu0  ;;  %v986_v11 = vsel %vm933_vm1, %v970_v1, 0.0  ;;  %v5230_v45 = vpop.permute.xlu1 %1037 }
 0x196   : > { %v946_v9 = vadd.f32 %v945_v3, %v944_v0  ;;  %v4802_v12 = vadd.f32 %v4791_v6, %v4755_v51  ;;  %v825_v15 = vpop.f32.mrb[11].mxu0  ;;  %v987_v18 = vadd.f32 %v986_v11, %v985_v54  ;;  %v5201_v22 = vadd.f32 %v4800_v2, %v914_v16 }
 0x197   : > { %v5198_v19 = vadd.f32 %v4801_v5, %v904_v47  ;;  %v4803_v20 = vadd.f32 %v825_v15, %v511_v57 }
 0x198   : > { %v948_v23 = vadd.f32 %v947_v17, %v946_v9  ;;  %v989_v25 = vadd.f32 %v988_v21, %v987_v18  ;;  %v5214_v32 = vadd.f32 %v4802_v12, %v5141_v10  ;;  %v953_v41 = vsel %vm933_vm1, %v5201_v22, 0.0  ;;  %v1034_v1 = vpop.permute.xlu0 %1033 }
 0x199   : > { %v949_v26 = vsel %vm933_vm1, %v5198_v19, 0.0  ;;  %v973_v28 = vmul.f32 %v5198_v19, %v5198_v19  ;;  %v5210_v29 = vadd.f32 %v4803_v20, %v5135_v60  ;;  %v975_v60 = vmul.f32 %v5201_v22, %v5201_v22  ;;  %v5236_v62 = vpop.permute.xlu1 %1045 }
 0x19a   : > { %v950_v31 = vadd.f32 %v949_v26, %v948_v23  ;;  %v991_v33 = vadd.f32 %v990_v30, %v989_v25  ;;  %v976_v43 = vmul.f32 %v5214_v32, %v5214_v32  ;;  %v955_v46 = vsel %vm933_vm1, %v5214_v32, 0.0 }
 0x19b   : > { %v992_v34 = vsel %vm933_vm1, %v973_v28, 0.0  ;;  %v951_v35 = vsel %vm933_vm1, %v5210_v29, 0.0  ;;  %v974_v36 = vmul.f32 %v5210_v29, %v5210_v29  ;;  %v996_v48 = vsel %vm933_vm1, %v975_v60, 0.0 }
 0x19c   : > { %v952_v38 = vadd.f32 %v951_v35, %v950_v31  ;;  %v993_v10 = vadd.f32 %v992_v34, %v991_v33  ;;  %v998_v53 = vsel %vm933_vm1, %v976_v43, 0.0  ;;  %v1042_v11 = vpop.permute.xlu0 %1041  ;;  %v4929_v60 = vmov 1966171168  }
 0x19d   : > { %v994_v42 = vsel %vm933_vm1, %v974_v36, 0.0  ;;  %v5238_v5 = vpop.permute.xlu1 %1053 }
 0x19e   : > { %v954_v44 = vadd.f32 %v953_v41, %v952_v38  ;;  %v995_v47 = vadd.f32 %v994_v42, %v993_v10  ;;  %v1172_v38 = vlaneseq  ;;  %v4930_v41 = vmov 857870592  }
 0x19f   : > { %v1655_v10 = vunpack.c.l.s4 %v4930_v41 }
 0x1a0   : > { %v956_v49 = vadd.f32 %v955_v46, %v954_v44  ;;  %v997_v51 = vadd.f32 %v996_v48, %v995_v47  ;;  %v1173_v43 = vshrl.u32 %v1172_v38, 7 }
 0x1a1   : > { %v1098_v17 = vpop.permute.xlu1 %1097  ;;  %v1656_v46 = vunpack.c.0.s8 %v1655_v10 }
 0x1a2   : > { %v957_v57 = vrot.slane %v956_v49, 4  ;;  %v999_v59 = vadd.f32 %v998_v53, %v997_v51 }
 0x1a4   : > { %v958_v61 = vadd.f32 %v957_v57, %v956_v49  ;;  %v1000_v63 = vrot.slane %v999_v59, 4 }
 0x1a5   : > { %v1106_v34 = vpop.permute.xlu1 %1105 }
 0x1a6   : > { %v959_v54 = vrot.slane %v958_v61, 2  ;;  %v1001_v0 = vadd.f32 %v1000_v63, %v999_v59 }
 0x1a8   : > { %v960_v2 = vadd.f32 %v959_v54, %v958_v61  ;;  %v1002_v55 = vrot.slane %v1001_v0, 2 }
 0x1aa   : > { %v961_v3 = vrot.slane %v960_v2, 1  ;;  %v1003_v6 = vadd.f32 %v1002_v55, %v1001_v0  ;;  %v5274_v55 = vsub.s32 %v1656_v46, %v1173_v43 }
 0x1ac   : > { %v962_v8 = vadd.f32 %v961_v3, %v960_v2  ;;  %v1004_v9 = vrot.slane %v1003_v6, 1 }
 0x1ae   : > { %v5240_v12 = vmul.f32 0.010416667, %v962_v8  ;;  %v1005_v15 = vadd.f32 %v1004_v9, %v1003_v6 }
 0x1b0   : > { %v1007_v16 = vmul.f32 %v5240_v12, %v5240_v12  ;;  %v1072_v18 = vsub.f32 %v5139_v7, %v5240_v12  ;;  %v1074_v20 = vsub.f32 %v5137_v4, %v5240_v12  ;;  %v1075_v21 = vsub.f32 %v5145_v13, %v5240_v12 }
 0x1b1   : > { %v1006_v23 = vmul.f32 0.010416667, %v1005_v15  ;;  %v1073_v25 = vsub.f32 %v5147_v14, %v5240_v12  ;;  %v1077_v26 = vsub.f32 %v5177_v50, %v5240_v12  ;;  %v1076_v28 = vsub.f32 %v5170_v40, %v5240_v12  ;;  %v1050_v14 = vpop.permute.xlu0 %1049 }
 0x1b2   : > { %v1079_v30 = vsub.f32 %v5180_v56, %v5240_v12  ;;  %v1078_v7 = vsub.f32 %v5168_v39, %v5240_v12  ;;  %v1081_v4 = vsub.f32 %v5210_v29, %v5240_v12  ;;  %v1080_v13 = vsub.f32 %v5198_v19, %v5240_v12  ;;  %v1110_v39 = vpop.permute.xlu1 %1109 }
 0x1b3   : > { %v1008_v31 = vsub.f32 %v1006_v23, %v1007_v16  ;;  %v1083_v50 = vsub.f32 %v5214_v32, %v5240_v12  ;;  %v1082_v40 = vsub.f32 %v5201_v22, %v5240_v12  ;;  %v1170_v29 = vunpack.c.l.s4 %v4929_v60 }
 0x1b5   : > { %v1009_v33 = vmax.f32 %v1008_v31, 0.0  ;;  %v1058_v35 = vpop.permute.xlu0 %1057  ;;  %v1171_v42 = vunpack.c.0.s8 %v1170_v29 }
 0x1b6   : > { %v1118_v44 = vpop.permute.xlu1 %1117 }
 0x1b7   : > { %v1010_v56 = vadd.f32 1e-06, %v1009_v33  ;;  %v5272_v2 = vsub.s32 %v1171_v42, %v1173_v43 }
 0x1b9   : > { %4897 = vrsqrt.f32 %v1010_v56  ;;  %v1102_v36 = vpop.permute.xlu0 %1101 }
 0x1ba   : > { %v1126_v15 = vpop.permute.xlu1 %1125 }
 0x1bd   : > { %v1114_v48 = vpop.permute.xlu0 %1113 }
 0x1c1   : > { %v1122_v23 = vpop.permute.xlu0 %1121 }
 0x1c3   : > { %v4898_v47 = vpop.eup %4897 }
 0x1c4   : > { %v1062_v49 = vmul.f32 %v4898_v47, %v5182_v58  ;;  %v1060_v51 = vmul.f32 %v4898_v47, %v5221_v37  ;;  %v1064_v53 = vmul.f32 %v4898_v47, %v5203_v24  ;;  %v1063_v57 = vmul.f32 %v4898_v47, %v1026_v52 }
 0x1c5   : > { %v1066_v59 = vmul.f32 %v4898_v47, %v5230_v45  ;;  %v1065_v61 = vmul.f32 %v4898_v47, %v1034_v1  ;;  %v1067_v63 = vmul.f32 %v4898_v47, %v1042_v11  ;;  %v1069_v54 = vmul.f32 %v4898_v47, %v1050_v14  ;;  %v1130_v43 = vpop.permute.xlu0 %1129 }
 0x1c6   : > { %v1084_v0 = vmul.f32 %v1072_v18, %v1060_v51  ;;  %v1086_v3 = vmul.f32 %v1074_v20, %v1062_v49  ;;  %v1087_v6 = vmul.f32 %v1075_v21, %v1063_v57  ;;  %v1061_v8 = vmul.f32 %v4898_v47, %v5159_v27 }
 0x1c7   : > { %v1089_v58 = vmul.f32 %v1077_v26, %v1065_v61  ;;  %v1088_v37 = vmul.f32 %v1076_v28, %v1064_v53  ;;  %v1091_v24 = vmul.f32 %v1079_v30, %v1067_v63  ;;  %v1090_v52 = vmul.f32 %v1078_v7, %v1066_v59 }
 0x1c8   : > { %v1144_v9 = vadd.f32 %v1098_v17, %v1084_v0  ;;  %v1146_v16 = vadd.f32 %v1106_v34, %v1086_v3  ;;  %v1147_v45 = vadd.f32 %v1110_v39, %v1087_v6  ;;  %v1085_v1 = vmul.f32 %v1073_v25, %v1061_v8 }
 0x1c9   : > { %v1149_v11 = vadd.f32 %v1118_v44, %v1089_v58  ;;  %v1148_v18 = vadd.f32 %v1114_v48, %v1088_v37  ;;  %v1151_v31 = vadd.f32 %v1126_v15, %v1091_v24  ;;  %v1150_v14 = vadd.f32 %v1122_v23, %v1090_v52 }
 0x1ca   : > { %v1093_v33 = vmul.f32 %v1081_v4, %v1069_v54  ;;  %v1157_v56 = vpack.c.bf16 %v1147_v45, %v1146_v16  ;;  %v4629_v20 = vpack.c.bf16 %v1147_v45, %v1147_v45  ;;  %v1145_v21 = vadd.f32 %v1102_v36, %v1085_v1  ;;  %v1134_v36 = vpop.permute.xlu1 %1133  ;;  %v1138_v45 = vpop.permute.xlu0 %1137 }
 0x1cb   : > { %v4630_v60 = vpack.c.bf16 %v1149_v11, %v1149_v11  ;;  %v1068_v27 = vmul.f32 %v4898_v47, %v5236_v62  ;;  %v1158_v17 = vpack.c.bf16 %v1149_v11, %v1148_v18  ;;  %v4631_v26 = vpack.c.bf16 %v1151_v31, %v1151_v31 }
 0x1cc   : > { %v1159_v28 = vpack.c.bf16 %v1151_v31, %v1150_v14  ;;  %v1224_v30 = vrot.slane %v1157_v56, %v5272_v2  ;;  %v1231_v7 = vrot.slane %v4629_v20, %v5272_v2  ;;  %v1156_v25 = vpack.c.bf16 %v1145_v21, %v1144_v9 }
 0x1cd   : > { %v4628_v34 = vpack.c.bf16 %v1145_v21, %v1145_v21  ;;  %v1070_v39 = vmul.f32 %v4898_v47, %v5238_v5  ;;  %v1071_v29 = vmul.f32 %v4898_v47, %v1058_v35  ;;  %v1280_v4 = vrot.slane %v4630_v60, %v5272_v2 }
 0x1ce   : > { %v1273_v38 = vrot.slane %v1158_v17, %v5272_v2  ;;  %v1232_v41 = vcombine.high %v1224_v30, %v1224_v30  ;;  %v1233_v10 = vcombine.high %v1231_v7, %v1231_v7  ;;  %v1329_v62 = vrot.slane %v4631_v26, %v5272_v2  ;;  %v1142_v37 = vpop.permute.xlu1 %1141 }
 0x1cf   : > { %v1153_v42 = vadd.f32 %v1134_v36, %v1093_v33  ;;  %v1175_v44 = vrot.slane %v1156_v25, %v5272_v2  ;;  %v1182_v46 = vrot.slane %v4628_v34, %v5272_v2  ;;  %v1282_v48 = vcombine.high %v1280_v4, %v1280_v4 }
 0x1d0   : > { %v1322_v49 = vrot.slane %v1159_v28, %v5272_v2  ;;  %v5288_v5 = vrot.slane %v1224_v30, %v5272_v2  ;;  %v5291_v35 = vrot.slane %v1231_v7, %v5272_v2  ;;  %v5294_v47 = vrot.slane %v1280_v4, %v5272_v2 }
 0x1d1   : > { %v1281_v51 = vcombine.high %v1273_v38, %v1273_v38  ;;  %v5297_v53 = vrot.slane %v1232_v41, %v5272_v2  ;;  %v5300_v57 = vrot.slane %v1233_v10, %v5272_v2  ;;  %v5303_v59 = vrot.slane %v1175_v44, %v5272_v2 }
 0x1d2   : > { %v5306_v61 = vrot.slane %v1273_v38, %v5272_v2  ;;  %v1183_v63 = vcombine.high %v1175_v44, %v1175_v44  ;;  %v1184_v54 = vcombine.high %v1182_v46, %v1182_v46  ;;  %v5309_v0 = vrot.slane %v1182_v46, %v5272_v2 }
 0x1d3   : > { %8180 = vst [vmem:[#allocation2_spill] sm:$0xff] %v5297_v53  ;;  %8181 = vst [vmem:[#allocation3_spill] sm:$0xff] %v5300_v57  ;;  %v1331_v3 = vcombine.high %v1329_v62, %v1329_v62  ;;  %v5312_v6 = vrot.slane %v1282_v48, %v5272_v2  ;;  %v5315_v8 = vrot.slane %v1281_v51, %v5272_v2  ;;  %v1463_v18 = vunpack.i.h.s16 %v5303_v59 }
 0x1d4   : > { %v5318_v58 = vrot.slane %v1329_v62, %v5272_v2  ;;  %v1330_v9 = vcombine.high %v1322_v49, %v1322_v49  ;;  %v4632_v24 = vpack.c.bf16 %v1153_v42, %v1153_v42  ;;  %v1092_v52 = vmul.f32 %v1080_v13, %v1068_v27 }
 0x1d5   : > { %8182 = vst [vmem:[#allocation4_spill] sm:$0xff] %v5312_v6  ;;  %8183 = vst [vmem:[#allocation5_spill] sm:$0xff] %v5315_v8  ;;  %v5321_v15 = vrot.slane %v1331_v3, %v5272_v2  ;;  %v1095_v16 = vmul.f32 %v1083_v50, %v1071_v29  ;;  %v1094_v11 = vmul.f32 %v1082_v40, %v1070_v39  ;;  %v1471_v22 = vunpack.i.h.s16 %v5309_v0 }
 0x1d6   : > { %v5330_v1 = vrot.slane %v1330_v9, %v5272_v2  ;;  %v4634_v23 = vpack.i.b16 %v5303_v59, %v5303_v59  ;;  %v1378_v19 = vrot.slane %v4632_v24, %v5272_v2  ;;  %v1152_v13 = vadd.f32 %v1130_v43, %v1092_v52 }
 0x1d7   : > { %8184 = vst [vmem:[#allocation6_spill] sm:$0xff] %v5321_v15  ;;  %v1155_v31 = vadd.f32 %v1142_v37, %v1095_v16  ;;  %v4638_v32 = vpack.i.b16 %v5309_v0, %v5309_v0  ;;  %v1154_v50 = vadd.f32 %v1138_v45, %v1094_v11  ;;  %v1559_v33 = vpack.i.b16 %v1463_v18, %v1463_v18 }
 0x1d8   : > { %8185 = vst [vmem:[#allocation7_spill] sm:$0xff] %v5330_v1  ;;  %v5342_v14 = vrot.slane %v4634_v23, %v5274_v55  ;;  %v5346_v12 = vrot.slane %v1183_v63, %v5272_v2  ;;  %v1380_v40 = vcombine.high %v1378_v19, %v1378_v19  ;;  %v1160_v56 = vpack.c.bf16 %v1153_v42, %v1152_v13 }
 0x1d9   : > { %v4633_v20 = vpack.c.bf16 %v1155_v31, %v1155_v31  ;;  %v5349_v21 = vrot.slane %v1184_v54, %v5272_v2  ;;  %v1161_v60 = vpack.c.bf16 %v1155_v31, %v1154_v50  ;;  %v5354_v27 = vrot.slane %v1559_v33, %v5274_v55 }
 0x1da   : > { %8186 = vst [vmem:[#allocation8_spill] sm:$0xff] %v5342_v14  ;;  %8187 = vst [vmem:[#allocation9_spill] sm:$0xff] %v5346_v12  ;;  %2713 = vrot.lane.b32.xlu0 %v5342_v14, %s4924_s25  ;;  %v1567_v17 = vpack.i.b16 %v1471_v22, %v1471_v22  ;;  %v5357_v26 = vrot.slane %v1322_v49, %v5272_v2  ;;  %v5360_v28 = vrot.slane %v1380_v40, %v5272_v2 }
 0x1db   : > { %8188 = vst [vmem:[#allocation10_spill] sm:$0xff] %v5349_v21  ;;  %8189 = vst [vmem:[#allocation11_spill] sm:$0xff] %v5354_v27  ;;  %v1371_v30 = vrot.slane %v1160_v56, %v5272_v2  ;;  %v1427_v7 = vrot.slane %v4633_v20, %v5272_v2  ;;  %v1420_v25 = vrot.slane %v1161_v60, %v5272_v2  ;;  %2715 = vrot.lane.b32.xlu1 %v5354_v27, %s4924_s25 }
 0x1dc   : > { %8190 = vst [vmem:[#allocation12_spill] sm:$0xff] %v5360_v28  ;;  %v5368_v34 = vrot.slane %v4638_v32, %v5274_v55  ;;  %v4642_v39 = vpack.i.b16 %v5288_v5, %v5288_v5  ;;  %v1479_v29 = vunpack.i.h.s16 %v5288_v5  ;;  %v5374_v4 = vrot.slane %v1378_v19, %v5272_v2 }
 0x1dd   : > { %v1379_v38 = vcombine.high %v1371_v30, %v1371_v30  ;;  %v1429_v36 = vcombine.high %v1427_v7, %v1427_v7  ;;  %v5377_v41 = vrot.slane %v1567_v17, %v5274_v55  ;;  %v5380_v10 = vrot.slane %v1371_v30, %v5272_v2 }
 0x1de   : > { %8191 = vst [vmem:[#allocation13_spill] sm:$0xff] %v5368_v34  ;;  %v1428_v62 = vcombine.high %v1420_v25, %v1420_v25  ;;  %2729 = vrot.lane.b32.xlu0 %v5368_v34, %s4924_s25  ;;  %v1575_v42 = vpack.i.b16 %v1479_v29, %v1479_v29  ;;  %v4646_v43 = vpack.i.b16 %v5291_v35, %v5291_v35  ;;  %v1487_v49 = vunpack.i.h.s16 %v5291_v35 }
 0x1df   : > { %8192 = vst [vmem:[#allocation14_spill] sm:$0xff] %v5377_v41  ;;  %v5387_v44 = vrot.slane %v1379_v38, %v5272_v2  ;;  %v5390_v46 = vrot.slane %v1427_v7, %v5272_v2  ;;  %v5393_v48 = vrot.slane %v1429_v36, %v5272_v2  ;;  %2731 = vrot.lane.b32.xlu1 %v5377_v41, %s4924_s25  ;;  %v1495_v3 = vunpack.i.h.s16 %v5306_v61 }
 0x1e0   : > { %v5397_v51 = vrot.slane %v1428_v62, %v5272_v2  ;;  %v5402_v63 = vrot.slane %v4642_v39, %v5274_v55  ;;  %v4650_v54 = vpack.i.b16 %v5306_v61, %v5306_v61  ;;  %v1583_v9 = vpack.i.b16 %v1487_v49, %v1487_v49 }
 0x1e1   : > { %8193 = vst [vmem:[#allocation15_spill] sm:$0xff] %v5387_v44  ;;  %8194 = vst [vmem:[#allocation16_spill] sm:$0xff] %v5393_v48  ;;  %v4654_v37 = vpack.i.b16 %v5294_v47, %v5294_v47  ;;  %v1503_v24 = vunpack.i.h.s16 %v5294_v47  ;;  %v4658_v52 = vpack.i.b16 %v5357_v26, %v5357_v26  ;;  %v5413_v16 = vrot.slane %v1420_v25, %v5272_v2 }
 0x1e2   : > { %8195 = vst [vmem:[#allocation17_spill] sm:$0xff] %v5397_v51  ;;  %8196 = vst [vmem:[#allocation18_spill] sm:$0xff] %v5402_v63  ;;  %2745 = vrot.lane.b32.xlu0 %v5402_v63, %s4924_s25  ;;  %v5418_v45 = vrot.slane %v1575_v42, %v5274_v55  ;;  %v1591_v11 = vpack.i.b16 %v1495_v3, %v1495_v3  ;;  %v1511_v23 = vunpack.i.h.s16 %v5357_v26  ;;  %v1519_v33 = vunpack.i.h.s16 %v5318_v58 }
 0x1e3   : > { %v5422_v18 = vrot.slane %v4646_v43, %v5274_v55  ;;  %v5425_v19 = vrot.slane %v4650_v54, %v5274_v55  ;;  %v1599_v2 = vpack.i.b16 %v1503_v24, %v1503_v24  ;;  %v4662_v13 = vpack.i.b16 %v5318_v58, %v5318_v58 }
 0x1e4   : > { %8197 = vst [vmem:[#allocation19_spill] sm:$0xff] %v5418_v45  ;;  %2747 = vrot.lane.b32.xlu1 %v5418_v45, %s4924_s25  ;;  %v5432_v31 = vrot.slane %v1583_v9, %v5274_v55  ;;  %v5435_v32 = vrot.slane %v4654_v37, %v5274_v55  ;;  %v1607_v50 = vpack.i.b16 %v1511_v23, %v1511_v23  ;;  %v1527_v56 = vunpack.i.h.s16 %v5380_v10 }
 0x1e5   : > { %8198 = vst [vmem:[#allocation20_spill] sm:$0xff] %v5422_v18  ;;  %8199 = vst [vmem:[#allocation21_spill] sm:$0xff] %v5425_v19  ;;  %v5439_v22 = vrot.slane %v4658_v52, %v5274_v55  ;;  %v4666_v40 = vpack.i.b16 %v5380_v10, %v5380_v10  ;;  %v4670_v20 = vpack.i.b16 %v5374_v4, %v5374_v4  ;;  %v1535_v30 = vunpack.i.h.s16 %v5374_v4 }
 0x1e6   : > { %8200 = vst [vmem:[#allocation22_spill] sm:$0xff] %v5432_v31  ;;  %8201 = vst [vmem:[#allocation23_spill] sm:$0xff] %v5435_v32  ;;  %2761 = vrot.lane.b32.xlu0 %v5422_v18, %s4924_s25  ;;  %v5450_v60 = vrot.slane %v1591_v11, %v5274_v55  ;;  %v1615_v17 = vpack.i.b16 %v1519_v33, %v1519_v33  ;;  %v4674_v7 = vpack.i.b16 %v5413_v16, %v5413_v16 }
 0x1e7   : > { %8202 = vst [vmem:[#allocation24_spill] sm:$0xff] %v5439_v22  ;;  %v5456_v25 = vrot.slane %v1599_v2, %v5274_v55  ;;  %v5459_v39 = vrot.slane %v4662_v13, %v5274_v55  ;;  %v1623_v29 = vpack.i.b16 %v1527_v56, %v1527_v56  ;;  %v1543_v38 = vunpack.i.h.s16 %v5413_v16 }
 0x1e8   : > { %8203 = vst [vmem:[#allocation25_spill] sm:$0xff] %v5450_v60  ;;  %2763 = vrot.lane.b32.xlu1 %v5432_v31, %s4924_s25  ;;  %v5465_v36 = vrot.slane %v1607_v50, %v5274_v55  ;;  %v5468_v62 = vrot.slane %v4666_v40, %v5274_v55  ;;  %v5471_v42 = vrot.slane %v4670_v20, %v5274_v55  ;;  %v1551_v9 = vunpack.i.h.s16 %v5390_v46 }
 0x1e9   : > { %8204 = vst [vmem:[#allocation26_spill] sm:$0xff] %v5456_v25  ;;  %8205 = vst [vmem:[#allocation27_spill] sm:$0xff] %v5459_v39  ;;  %v1631_v43 = vpack.i.b16 %v1535_v30, %v1535_v30  ;;  %v5474_v49 = vrot.slane %v1615_v17, %v5274_v55  ;;  %v1639_v54 = vpack.i.b16 %v1543_v38, %v1543_v38  ;;  %v1465_v52 = vunpack.i.h.s16 %v5346_v12  ;;  %v2425_v38 = vld [vmem:[%s5482_s4] sm:$0x1] }
 0x1ea   : > { %8206 = vst [vmem:[#allocation28_spill] sm:$0xff] %v5465_v36  ;;  %8207 = vst [vmem:[#allocation29_spill] sm:$0xff] %v5468_v62  ;;  %v4678_v3 = vpack.i.b16 %v5390_v46, %v5390_v46  ;;  %2777 = vrot.lane.b32.xlu0 %v5425_v19, %s4924_s25  ;;  %v5487_v37 = vrot.slane %v4674_v7, %v5274_v55  ;;  %v4635_v24 = vpack.i.b16 %v5346_v12, %v5346_v12  ;;  %v2428_v12 = vld [vmem:[%s5482_s4 + $0x2] sm:$0x1] }
 0x1eb   : > { %8208 = vst [vmem:[#allocation30_spill] sm:$0xff] %v5471_v42  ;;  %8209 = vst [vmem:[#allocation31_spill] sm:$0xff] %v5474_v49  ;;  %v1213_v11 = vcombine.high %v5303_v59, %v5303_v59  ;;  %v5495_v23 = vrot.slane %v1623_v29, %v5274_v55  ;;  %v5498_v2 = vrot.slane %v1631_v43, %v5274_v55  ;;  %v1473_v20 = vunpack.i.h.s16 %v5349_v21 }
 0x1ec   : > { %8210 = vst [vmem:[#allocation32_spill] sm:$0xff] %v5487_v37  ;;  %v1647_v13 = vpack.i.b16 %v1551_v9, %v1551_v9  ;;  %v4639_v50 = vpack.i.b16 %v5349_v21, %v5349_v21  ;;  %2779 = vrot.lane.b32.xlu1 %v5450_v60, %s4924_s25  ;;  %v1561_v33 = vpack.i.b16 %v1465_v52, %v1465_v52  ;;  %v1481_v21 = vunpack.i.h.s16 %v5297_v53 }
 0x1ed   : > { %8211 = vst [vmem:[#allocation33_spill] sm:$0xff] %v5495_v23  ;;  %8212 = vst [vmem:[#allocation34_spill] sm:$0xff] %v5498_v2  ;;  %v4636_v40 = vpack.i.b16 %v1213_v11, %v1213_v11  ;;  %v1467_v56 = vunpack.i.h.s16 %v1213_v11  ;;  %v5506_v59 = vrot.slane %v1639_v54, %v5274_v55  ;;  %v5509_v17 = vrot.slane %v4678_v3, %v5274_v55 }
 0x1ee   : > { %v1214_v30 = vcombine.high %v5309_v0, %v5309_v0  ;;  %v4643_v7 = vpack.i.b16 %v5297_v53, %v5297_v53  ;;  %2793 = vrot.lane.b32.xlu0 %v5435_v32, %s4924_s25  ;;  %v5525_v43 = vrot.slane %v1647_v13, %v5274_v55  ;;  %v5528_v54 = vrot.slane %v4635_v24, %v5274_v55 }
 0x1ef   : > { %8213 = vst [vmem:[#allocation35_spill] sm:$0xff] %v5506_v59  ;;  %8214 = vst [vmem:[#allocation36_spill] sm:$0xff] %v5509_v17  ;;  %v1563_v0 = vpack.i.b16 %v1467_v56, %v1467_v56  ;;  %v1569_v3 = vpack.i.b16 %v1473_v20, %v1473_v20  ;;  %v5531_v9 = vrot.slane %v4639_v50, %v5274_v55  ;;  %v2449_v20 = vld [vmem:[%s5482_s4 + $0x10] sm:$0x1] }
 0x1f0   : > { %8217 = vst [vmem:[#allocation37_spill] sm:$0xff] %v5525_v43  ;;  %8218 = vst [vmem:[#allocation38_spill] sm:$0xff] %v5528_v54  ;;  %v4640_v52 = vpack.i.b16 %v1214_v30, %v1214_v30  ;;  %v1475_v11 = vunpack.i.h.s16 %v1214_v30  ;;  %2795 = vrot.lane.b32.xlu1 %v5456_v25, %s4924_s25  ;;  %v5538_v13 = vrot.slane %v1561_v33, %v5274_v55 }
 0x1f1   : > { %8219 = vst [vmem:[#allocation39_spill] sm:$0xff] %v5531_v9  ;;  %v5541_v24 = vrot.slane %v4636_v40, %v5274_v55  ;;  %v1262_v50 = vcombine.high %v5288_v5, %v5288_v5  ;;  %v2426_v56 = vsel %vm5517_vm4, %v5342_v14, %v2425_v38  ;;  %v5550_v30 = vrot.slane %v1563_v0, %v5274_v55  ;;  %v2452_v9 = vld [vmem:[%s5482_s4 + $0x12] sm:$0x1] }
 0x1f2   : > { %8220 = vst [vmem:[#allocation40_spill] sm:$0xff] %v5538_v13  ;;  %v1571_v53 = vpack.i.b16 %v1475_v11, %v1475_v11  ;;  %v5553_v33 = vrot.slane %v4643_v7, %v5274_v55  ;;  %v1577_v40 = vpack.i.b16 %v1481_v21, %v1481_v21  ;;  %2427 = vst [vmem:[%s5482_s4] sm:$0x1] %v2426_v56  ;;  %2809 = vrot.lane.b32.xlu0 %v5439_v22, %s4924_s25  ;;  %v2473_v7 = vld [vmem:[%s5482_s4 + $0x20] sm:$0x1]  ;;  %v2476_v11 = vld [vmem:[%s5482_s4 + $0x22] sm:$0x1] }
 0x1f3   : > { %8221 = vst [vmem:[#allocation41_spill] sm:$0xff] %v5541_v24  ;;  %8222 = vst [vmem:[#allocation42_spill] sm:$0xff] %v5550_v30  ;;  %v5560_v5 = vrot.slane %v1569_v3, %v5274_v55  ;;  %v4644_v38 = vpack.i.b16 %v1262_v50, %v1262_v50  ;;  %v1483_v24 = vunpack.i.h.s16 %v1262_v50  ;;  %v2429_v0 = vsel %vm5517_vm4, %v5354_v27, %v2428_v12 }
 0x1f4   : > { %8223 = vst [vmem:[#allocation43_spill] sm:$0xff] %v5553_v33  ;;  %v5568_v21 = vrot.slane %v4640_v52, %v5274_v55  ;;  %2430 = vst [vmem:[%s5482_s4 + $0x2] sm:$0x1] %v2429_v0  ;;  %v4647_v56 = vpack.i.b16 %v5300_v57, %v5300_v57  ;;  %v1489_v3 = vunpack.i.h.s16 %v5300_v57  ;;  %v2450_v50 = vsel %vm5517_vm4, %v5368_v34, %v2449_v20  ;;  %v2497_v33 = vld [vmem:[%s5482_s4 + $0x30] sm:$0x1] }
 0x1f5   : > { %8224 = vst [vmem:[#allocation44_spill] sm:$0xff] %v5560_v5  ;;  %2811 = vrot.lane.b32.xlu1 %v5465_v36, %s4924_s25  ;;  %v5581_v12 = vrot.slane %v1571_v53, %v5274_v55  ;;  %v5584_v52 = vrot.slane %v1577_v40, %v5274_v55  ;;  %v1579_v0 = vpack.i.b16 %v1483_v24, %v1483_v24  ;;  %2451 = vst [vmem:[%s5482_s4 + $0x10] sm:$0x1] %v2450_v50  ;;  %v2500_v20 = vld [vmem:[%s5482_s4 + $0x32] sm:$0x1] }
 0x1f6   : > { %8225 = vst [vmem:[#allocation45_spill] sm:$0xff] %v5568_v21  ;;  %v2453_v57 = vsel %vm5517_vm4, %v5377_v41, %v2452_v9  ;;  %v1585_v21 = vpack.i.b16 %v1489_v3, %v1489_v3  ;;  %v1263_v5 = vcombine.high %v5291_v35, %v5291_v35  ;;  %v2474_v53 = vsel %vm5517_vm4, %v5402_v63, %v2473_v7  ;;  %v2521_v40 = vld [vmem:[%s5482_s4 + $0x40] sm:$0x1] }
 0x1f7   : > { %2454 = vst [vmem:[%s5482_s4 + $0x12] sm:$0x1] %v2453_v57  ;;  %v2477_v24 = vsel %vm5517_vm4, %v5418_v45, %v2476_v11  ;;  %2825 = vrot.lane.b32.xlu0 %v5459_v39, %s4924_s25  ;;  %v5604_v9 = vrot.slane %v4644_v38, %v5274_v55  ;;  %2475 = vst [vmem:[%s5482_s4 + $0x20] sm:$0x1] %v2474_v53  ;;  %v4651_v35 = vpack.i.b16 %v5315_v8, %v5315_v8  ;;  %v2524_v11 = vld [vmem:[%s5482_s4 + $0x42] sm:$0x1] }
 0x1f8   : > { %2478 = vst [vmem:[%s5482_s4 + $0x22] sm:$0x1] %v2477_v24  ;;  %v1497_v57 = vunpack.i.h.s16 %v5315_v8  ;;  %v2498_v7 = vsel %vm5517_vm4, %v5422_v18, %v2497_v33  ;;  %v5616_v3 = vrot.slane %v4647_v56, %v5274_v55  ;;  %v4648_v38 = vpack.i.b16 %v1263_v5, %v1263_v5 }
 0x1f9   : > { %v1491_v50 = vunpack.i.h.s16 %v1263_v5  ;;  %2499 = vst [vmem:[%s5482_s4 + $0x30] sm:$0x1] %v2498_v7  ;;  %v2501_v53 = vsel %vm5517_vm4, %v5432_v31, %v2500_v20  ;;  %2827 = vrot.lane.b32.xlu1 %v5474_v49, %s4924_s25  ;;  %v5625_v24 = vrot.slane %v1579_v0, %v5274_v55  ;;  %v1311_v56 = vcombine.high %v5306_v61, %v5306_v61  ;;  %v2545_v7 = vld [vmem:[%s5482_s4 + $0x50] sm:$0x1]  ;;  %v2548_v20 = vld [vmem:[%s5482_s4 + $0x52] sm:$0x1] }
 0x1fa   : > { %v1593_v33 = vpack.i.b16 %v1497_v57, %v1497_v57  ;;  %2502 = vst [vmem:[%s5482_s4 + $0x32] sm:$0x1] %v2501_v53  ;;  %v2522_v5 = vsel %vm5517_vm4, %v5425_v19, %v2521_v40  ;;  %v5636_v8 = vrot.slane %v1585_v21, %v5274_v55  ;;  %v5639_v0 = vrot.slane %v4651_v35, %v5274_v55  ;;  %v2572_v53 = vld [vmem:[%s5482_s4 + $0x62] sm:$0x1] }
 0x1fb   : > { %v1587_v31 = vpack.i.b16 %v1491_v50, %v1491_v50  ;;  %2523 = vst [vmem:[%s5482_s4 + $0x40] sm:$0x1] %v2522_v5  ;;  %v2525_v57 = vsel %vm5517_vm4, %v5450_v60, %v2524_v11  ;;  %2841 = vrot.lane.b32.xlu0 %v5468_v62, %s4924_s25  ;;  %v4652_v61 = vpack.i.b16 %v1311_v56, %v1311_v56  ;;  %v1499_v40 = vunpack.i.h.s16 %v1311_v56  ;;  %v2569_v50 = vld [vmem:[%s5482_s4 + $0x60] sm:$0x1] }
 0x1fc   : > { %2526 = vst [vmem:[%s5482_s4 + $0x42] sm:$0x1] %v2525_v57  ;;  %v4655_v21 = vpack.i.b16 %v5312_v6, %v5312_v6  ;;  %v1505_v35 = vunpack.i.h.s16 %v5312_v6  ;;  %v5654_v5 = vrot.slane %v4648_v38, %v5274_v55  ;;  %v5657_v11 = vrot.slane %v1593_v33, %v5274_v55 }
 0x1fd   : > { %v2546_v56 = vsel %vm5517_vm4, %v5435_v32, %v2545_v7  ;;  %v2549_v57 = vsel %vm5517_vm4, %v5456_v25, %v2548_v20  ;;  %2843 = vrot.lane.b32.xlu1 %v5495_v23, %s4924_s25  ;;  %v5668_v6 = vrot.slane %v1587_v31, %v5274_v55  ;;  %v1595_v38 = vpack.i.b16 %v1499_v40, %v1499_v40  ;;  %v2593_v7 = vld [vmem:[%s5482_s4 + $0x70] sm:$0x1]  ;;  %v2596_v32 = vld [vmem:[%s5482_s4 + $0x72] sm:$0x1]  ;;  %v8304_v29 = vld [vmem:[#allocation45_spill] sm:$0xff] }
 0x1fe   : > { %v1601_v60 = vpack.i.b16 %v1505_v35, %v1505_v35  ;;  %2547 = vst [vmem:[%s5482_s4 + $0x50] sm:$0x1] %v2546_v56  ;;  %2550 = vst [vmem:[%s5482_s4 + $0x52] sm:$0x1] %v2549_v57  ;;  %v1312_v33 = vcombine.high %v5294_v47, %v5294_v47  ;;  %v2570_v20 = vsel %vm5517_vm4, %v5439_v22, %v2569_v50  ;;  %v1513_v35 = vunpack.i.h.s16 %v5330_v1  ;;  %v2617_v56 = vld [vmem:[%s5482_s4 + $0x80] sm:$0x1] }
 0x1ff   : > { %v2573_v31 = vsel %vm5517_vm4, %v5465_v36, %v2572_v53  ;;  %v4659_v40 = vpack.i.b16 %v5330_v1, %v5330_v1  ;;  %2857 = vrot.lane.b32.xlu0 %v5471_v42, %s4924_s25  ;;  %v5689_v47 = vrot.slane %v4652_v61, %v5274_v55  ;;  %v5692_v50 = vrot.slane %v4655_v21, %v5274_v55  ;;  %v2620_v36 = vld [vmem:[%s5482_s4 + $0x82] sm:$0x1]  ;;  %v2641_v25 = vld [vmem:[%s5482_s4 + $0x90] sm:$0x1] }
 0x200   : > { %v4656_v57 = vpack.i.b16 %v1312_v33, %v1312_v33  ;;  %v1507_v53 = vunpack.i.h.s16 %v1312_v33  ;;  %2571 = vst [vmem:[%s5482_s4 + $0x60] sm:$0x1] %v2570_v20  ;;  %2574 = vst [vmem:[%s5482_s4 + $0x62] sm:$0x1] %v2573_v31  ;;  %v5698_v1 = vrot.slane %v1595_v38, %v5274_v55  ;;  %v1609_v22 = vpack.i.b16 %v1513_v35, %v1513_v35 }
 0x201   : > { %v2594_v61 = vsel %vm5517_vm4, %v5459_v39, %v2593_v7  ;;  %v2597_v21 = vsel %vm5517_vm4, %v5474_v49, %v2596_v32  ;;  %2859 = vrot.lane.b32.xlu1 %v5498_v2, %s4924_s25  ;;  %v5710_v33 = vrot.slane %v1601_v60, %v5274_v55  ;;  %v1360_v38 = vcombine.high %v5357_v26, %v5357_v26  ;;  %v2644_v32 = vld [vmem:[%s5482_s4 + $0x92] sm:$0x1]  ;;  %v2464_v49 = vld [vmem:[%s5482_s4 + $0x1a] sm:$0x1]  ;;  %v2485_v39 = vld [vmem:[%s5482_s4 + $0x28] sm:$0x1] }
 0x202   : > { %v1603_v20 = vpack.i.b16 %v1507_v53, %v1507_v53  ;;  %2595 = vst [vmem:[%s5482_s4 + $0x70] sm:$0x1] %v2594_v61  ;;  %2598 = vst [vmem:[%s5482_s4 + $0x72] sm:$0x1] %v2597_v21  ;;  %v2618_v7 = vsel %vm5517_vm4, %v5468_v62, %v2617_v56  ;;  %v5721_v31 = vrot.slane %v4659_v40, %v5274_v55  ;;  %v1521_v26 = vunpack.i.h.s16 %v5321_v15  ;;  %v2665_v53 = vld [vmem:[%s5482_s4 + $0xa0] sm:$0x1] }
 0x203   : > { %2619 = vst [vmem:[%s5482_s4 + $0x80] sm:$0x1] %v2618_v7  ;;  %v2621_v60 = vsel %vm5517_vm4, %v5495_v23, %v2620_v36  ;;  %v4663_v35 = vpack.i.b16 %v5321_v15, %v5321_v15  ;;  %2873 = vrot.lane.b32.xlu0 %v5487_v37, %s4924_s25  ;;  %v5734_v56 = vrot.slane %v4656_v57, %v5274_v55  ;;  %v1515_v61 = vunpack.i.h.s16 %v1360_v38  ;;  %v2668_v21 = vld [vmem:[%s5482_s4 + $0xa2] sm:$0x1]  ;;  %v2689_v62 = vld [vmem:[%s5482_s4 + $0xb0] sm:$0x1] }
 0x204   : > { %v4660_v40 = vpack.i.b16 %v1360_v38, %v1360_v38  ;;  %2622 = vst [vmem:[%s5482_s4 + $0x82] sm:$0x1] %v2621_v60  ;;  %v2642_v36 = vsel %vm5517_vm4, %v5471_v42, %v2641_v25  ;;  %v5742_v7 = vrot.slane %v1609_v22, %v5274_v55  ;;  %v1617_v23 = vpack.i.b16 %v1521_v26, %v1521_v26  ;;  %v2692_v26 = vld [vmem:[%s5482_s4 + $0xb2] sm:$0x1]  ;;  %v2455_v42 = vld [vmem:[%s5482_s4 + $0x14] sm:$0x1] }
 0x205   : > { %2643 = vst [vmem:[%s5482_s4 + $0x90] sm:$0x1] %v2642_v36  ;;  %v2645_v57 = vsel %vm5517_vm4, %v5498_v2, %v2644_v32  ;;  %v1361_v38 = vcombine.high %v5318_v58, %v5318_v58  ;;  %2875 = vrot.lane.b32.xlu1 %v5506_v59, %s4924_s25  ;;  %v5754_v25 = vrot.slane %v1603_v20, %v5274_v55  ;;  %v2482_v15 = vld [vmem:[%s5482_s4 + $0x26] sm:$0x1] }
 0x206   : > { %v1611_v22 = vpack.i.b16 %v1515_v61, %v1515_v61  ;;  %2646 = vst [vmem:[%s5482_s4 + $0x92] sm:$0x1] %v2645_v57  ;;  %v2666_v60 = vsel %vm5517_vm4, %v5487_v37, %v2665_v53  ;;  %v4667_v32 = vpack.i.b16 %v5387_v44, %v5387_v44  ;;  %v5764_v58 = vrot.slane %v4663_v35, %v5274_v55  ;;  %v2434_v37 = vld [vmem:[%s5482_s4 + $0x6] sm:$0x1] }
 0x207   : > { %v4664_v36 = vpack.i.b16 %v1361_v38, %v1361_v38  ;;  %v1523_v2 = vunpack.i.h.s16 %v1361_v38  ;;  %2667 = vst [vmem:[%s5482_s4 + $0xa0] sm:$0x1] %v2666_v60  ;;  %v2669_v20 = vsel %vm5517_vm4, %v5506_v59, %v2668_v21  ;;  %2889 = vrot.lane.b32.xlu0 %v5509_v17, %s4924_s25  ;;  %v5773_v53 = vrot.slane %v4660_v40, %v5274_v55  ;;  %v2437_v59 = vld [vmem:[%s5482_s4 + $0x8] sm:$0x1] }
 0x208   : > { %8226 = vst [vmem:[#allocation46_spill] sm:$0xff] %v5764_v58  ;;  %v5776_v61 = vrot.slane %v1617_v23, %v5274_v55  ;;  %2670 = vst [vmem:[%s5482_s4 + $0xa2] sm:$0x1] %v2669_v20  ;;  %v1529_v35 = vunpack.i.h.s16 %v5387_v44  ;;  %v2690_v57 = vsel %vm5517_vm4, %v5509_v17, %v2689_v62  ;;  %v5784_v38 = vrot.slane %v1611_v22, %v5274_v55  ;;  %v2479_v44 = vld [vmem:[%s5482_s4 + $0x24] sm:$0x1] }
 0x209   : > { %v1619_v21 = vpack.i.b16 %v1523_v2, %v1523_v2  ;;  %2691 = vst [vmem:[%s5482_s4 + $0xb0] sm:$0x1] %v2690_v57  ;;  %v1409_v60 = vcombine.high %v5380_v10, %v5380_v10  ;;  %v2693_v23 = vsel %vm5517_vm4, %v5525_v43, %v2692_v26  ;;  %2891 = vrot.lane.b32.xlu1 %v5525_v43, %s4924_s25  ;;  %v1537_v26 = vunpack.i.h.s16 %v5360_v28 }
 0x20a   : > { %8227 = vst [vmem:[#allocation47_spill] sm:$0xff] %v5776_v61  ;;  %8228 = vst [vmem:[#allocation48_spill] sm:$0xff] %v5784_v38  ;;  %v5795_v40 = vrot.slane %v4664_v36, %v5274_v55  ;;  %v5798_v62 = vrot.slane %v4667_v32, %v5274_v55  ;;  %v1625_v22 = vpack.i.b16 %v1529_v35, %v1529_v35 }
 0x20b   : > { %2694 = vst [vmem:[%s5482_s4 + $0xb2] sm:$0x1] %v2693_v23  ;;  %v4671_v2 = vpack.i.b16 %v5360_v28, %v5360_v28  ;;  %v5804_v10 = vrot.slane %v1619_v21, %v5274_v55  ;;  %v4668_v20 = vpack.i.b16 %v1409_v60, %v1409_v60  ;;  %v1531_v57 = vunpack.i.h.s16 %v1409_v60  ;;  %3291 = vrot.lane.b32.xlu0 %v5342_v14, %s4931_s5 }
 0x20c   : > { %8229 = vst [vmem:[#allocation49_spill] sm:$0xff] %v5795_v40  ;;  %8230 = vst [vmem:[#allocation50_spill] sm:$0xff] %v5798_v62  ;;  %v5810_v36 = vrot.slane %v1625_v22, %v5274_v55  ;;  %v1410_v35 = vcombine.high %v5374_v4, %v5374_v4  ;;  %v4675_v21 = vpack.i.b16 %v5397_v51, %v5397_v51  ;;  %v1545_v14 = vunpack.i.h.s16 %v5397_v51 }
 0x20d   : > { %8231 = vst [vmem:[#allocation51_spill] sm:$0xff] %v5804_v10  ;;  %v5813_v32 = vrot.slane %v4671_v2, %v5274_v55  ;;  %v5820_v60 = vrot.slane %v4668_v20, %v5274_v55  ;;  %v1627_v23 = vpack.i.b16 %v1531_v57, %v1531_v57  ;;  %v1633_v43 = vpack.i.b16 %v1537_v26, %v1537_v26 }
 0x20e   : > { %8232 = vst [vmem:[#allocation52_spill] sm:$0xff] %v5810_v36  ;;  %3293 = vrot.lane.b32.xlu1 %v5354_v27, %s4931_s5  ;;  %v4672_v22 = vpack.i.b16 %v1410_v35, %v1410_v35  ;;  %v1539_v2 = vunpack.i.h.s16 %v1410_v35  ;;  %v5826_v4 = vrot.slane %v4675_v21, %v5274_v55  ;;  %v1458_v17 = vcombine.high %v5413_v16, %v5413_v16  ;;  %v2431_v35 = vld [vmem:[%s5482_s4 + $0x4] sm:$0x1] }
 0x20f   : > { %8233 = vst [vmem:[#allocation53_spill] sm:$0xff] %v5813_v32  ;;  %8234 = vst [vmem:[#allocation54_spill] sm:$0xff] %v5820_v60  ;;  %v5831_v20 = vrot.slane %v1627_v23, %v5274_v55  ;;  %v5834_v57 = vrot.slane %v1633_v43, %v5274_v55  ;;  %v1641_v26 = vpack.i.b16 %v1545_v14, %v1545_v14  ;;  %3307 = vrot.lane.b32.xlu0 %v5368_v34, %s4931_s5  ;;  %v2440_v14 = vld [vmem:[%s5482_s4 + $0xa] sm:$0x1] }
 0x210   : > { %8235 = vst [vmem:[#allocation55_spill] sm:$0xff] %v5826_v4  ;;  %v4679_v27 = vpack.i.b16 %v5393_v48, %v5393_v48  ;;  %v5843_v16 = vrot.slane %v4672_v22, %v5274_v55  ;;  %v1635_v21 = vpack.i.b16 %v1539_v2, %v1539_v2  ;;  %v4676_v23 = vpack.i.b16 %v1458_v17, %v1458_v17  ;;  %v2458_v2 = vld [vmem:[%s5482_s4 + $0x16] sm:$0x1] }
 0x211   : > { %8236 = vst [vmem:[#allocation56_spill] sm:$0xff] %v5831_v20  ;;  %8237 = vst [vmem:[#allocation57_spill] sm:$0xff] %v5834_v57  ;;  %v1547_v43 = vunpack.i.h.s16 %v1458_v17  ;;  %v5849_v51 = vrot.slane %v1641_v26, %v5274_v55  ;;  %v1553_v34 = vunpack.i.h.s16 %v5393_v48  ;;  %v1459_v22 = vcombine.high %v5390_v46, %v5390_v46  ;;  %v2461_v17 = vld [vmem:[%s5482_s4 + $0x18] sm:$0x1] }
 0x212   : > { %8238 = vst [vmem:[#allocation58_spill] sm:$0xff] %v5843_v16  ;;  %v5852_v28 = vrot.slane %v4679_v27, %v5274_v55  ;;  %3309 = vrot.lane.b32.xlu1 %v5377_v41, %s4931_s5  ;;  %v5864_v26 = vrot.slane %v1635_v21, %v5274_v55  ;;  %v5867_v27 = vrot.slane %v4676_v23, %v5274_v55  ;;  %v2503_v23 = vld [vmem:[%s5482_s4 + $0x34] sm:$0x1] }
 0x213   : > { %8239 = vst [vmem:[#allocation59_spill] sm:$0xff] %v5849_v51  ;;  %v1643_v48 = vpack.i.b16 %v1547_v43, %v1547_v43  ;;  %v2432_v46 = vsel %vm5517_vm4, %v5528_v54, %v2431_v35  ;;  %v1649_v51 = vpack.i.b16 %v1553_v34, %v1553_v34  ;;  %v4680_v41 = vpack.i.b16 %v1459_v22, %v1459_v22  ;;  %v2506_v43 = vld [vmem:[%s5482_s4 + $0x36] sm:$0x1]  ;;  %v2509_v35 = vld [vmem:[%s5482_s4 + $0x38] sm:$0x1] }
 0x214   : > { %8240 = vst [vmem:[#allocation60_spill] sm:$0xff] %v5852_v28  ;;  %8241 = vst [vmem:[#allocation61_spill] sm:$0xff] %v5864_v26  ;;  %v2488_v28 = vld [vmem:[%s5482_s4 + $0x2a] sm:$0x1]  ;;  %v1555_v4 = vunpack.i.h.s16 %v1459_v22  ;;  %v2435_v21 = vsel %vm5517_vm4, %v5538_v13, %v2434_v37  ;;  %3323 = vrot.lane.b32.xlu0 %v5402_v63, %s4931_s5  ;;  %v8244_v22 = vld [vmem:[#allocation41_spill] sm:$0xff] }
 0x215   : > { %8242 = vst [vmem:[#allocation62_spill] sm:$0xff] %v5867_v27  ;;  %2433 = vst [vmem:[%s5482_s4 + $0x4] sm:$0x1] %v2432_v46  ;;  %v5885_v34 = vrot.slane %v1643_v48, %v5274_v55  ;;  %v2438_v37 = vsel %vm5517_vm4, %v8244_v22, %v2437_v59  ;;  %v2441_v46 = vsel %vm5517_vm4, %v5550_v30, %v2440_v14  ;;  %v8245_v13 = vld [vmem:[#allocation39_spill] sm:$0xff]  ;;  %v2512_v54 = vld [vmem:[%s5482_s4 + $0x3a] sm:$0x1] }
 0x216   : > { %2436 = vst [vmem:[%s5482_s4 + $0x6] sm:$0x1] %v2435_v21  ;;  %v2456_v63 = vsel %vm5517_vm4, %v8245_v13, %v2455_v42  ;;  %v2527_v27 = vld [vmem:[%s5482_s4 + $0x44] sm:$0x1]  ;;  %v2530_v48 = vld [vmem:[%s5482_s4 + $0x46] sm:$0x1]  ;;  %v5904_v21 = vrot.slane %v4680_v41, %v5274_v55  ;;  %v1651_v59 = vpack.i.b16 %v1555_v4, %v1555_v4  ;;  %3325 = vrot.lane.b32.xlu1 %v5418_v45, %s4931_s5 }
 0x217   : > { %8243 = vst [vmem:[#allocation63_spill] sm:$0xff] %v5885_v34  ;;  %v5901_v34 = vrot.slane %v1649_v51, %v5274_v55  ;;  %2439 = vst [vmem:[%s5482_s4 + $0x8] sm:$0x1] %v2438_v37  ;;  %v8248_v14 = vld [vmem:[#allocation44_spill] sm:$0xff]  ;;  %v2533_v13 = vld [vmem:[%s5482_s4 + $0x48] sm:$0x1] }
 0x218   : > { %8247 = vst [vmem:[#allocation64_spill] sm:$0xff] %v5904_v21  ;;  %2442 = vst [vmem:[%s5482_s4 + $0xa] sm:$0x1] %v2441_v46  ;;  %v2459_v42 = vsel %vm5517_vm4, %v8248_v14, %v2458_v2  ;;  %v2536_v51 = vld [vmem:[%s5482_s4 + $0x4a] sm:$0x1]  ;;  %v8249_v41 = vld [vmem:[#allocation45_spill] sm:$0xff]  ;;  %v2483_v46 = vsel %vm5517_vm4, %v5584_v52, %v2482_v15  ;;  %v2489_v15 = vsel %vm5517_vm4, %v5625_v24, %v2488_v28  ;;  %3339 = vrot.lane.b32.xlu0 %v5422_v18, %s4931_s5 }
 0x219   : > { %8246 = vst [vmem:[#allocation41_spill] sm:$0xff] %v5901_v34  ;;  %2457 = vst [vmem:[%s5482_s4 + $0x14] sm:$0x1] %v2456_v63  ;;  %v2551_v30 = vld [vmem:[%s5482_s4 + $0x54] sm:$0x1]  ;;  %v2462_v4 = vsel %vm5517_vm4, %v8249_v41, %v2461_v17  ;;  %v2465_v63 = vsel %vm5517_vm4, %v5581_v12, %v2464_v49  ;;  %v8250_v2 = vld [vmem:[#allocation43_spill] sm:$0xff]  ;;  %v5934_v41 = vrot.slane %v1651_v59, %v5274_v55 }
 0x21a   : > { %2460 = vst [vmem:[%s5482_s4 + $0x16] sm:$0x1] %v2459_v42  ;;  %v2480_v37 = vsel %vm5517_vm4, %v8250_v2, %v2479_v44  ;;  %v2554_v42 = vld [vmem:[%s5482_s4 + $0x56] sm:$0x1]  ;;  %v2557_v45 = vld [vmem:[%s5482_s4 + $0x58] sm:$0x1]  ;;  %v2486_v44 = vsel %vm5517_vm4, %v5604_v9, %v2485_v39  ;;  %v2504_v49 = vsel %vm5517_vm4, %v5616_v3, %v2503_v23  ;;  %v2507_v28 = vsel %vm5517_vm4, %v5636_v8, %v2506_v43 }
 0x21b   : > { %v2560_v17 = vld [vmem:[%s5482_s4 + $0x5a] sm:$0x1]  ;;  %8251 = vst [vmem:[#allocation44_spill] sm:$0xff] %v5934_v41  ;;  %2463 = vst [vmem:[%s5482_s4 + $0x18] sm:$0x1] %v2462_v4  ;;  %v2510_v39 = vsel %vm5517_vm4, %v5654_v5, %v2509_v35  ;;  %v2513_v23 = vsel %vm5517_vm4, %v5668_v6, %v2512_v54  ;;  %v2531_v35 = vsel %vm5517_vm4, %v5657_v11, %v2530_v48 }
 0x21c   : > { %2466 = vst [vmem:[%s5482_s4 + $0x1a] sm:$0x1] %v2465_v63  ;;  %2481 = vst [vmem:[%s5482_s4 + $0x24] sm:$0x1] %v2480_v37  ;;  %v2575_v59 = vld [vmem:[%s5482_s4 + $0x64] sm:$0x1]  ;;  %v2528_v37 = vsel %vm5517_vm4, %v5639_v0, %v2527_v27  ;;  %v2534_v54 = vsel %vm5517_vm4, %v5689_v47, %v2533_v13  ;;  %v2537_v27 = vsel %vm5517_vm4, %v5698_v1, %v2536_v51  ;;  %3355 = vrot.lane.b32.xlu0 %v5425_v19, %s4931_s5 }
 0x21d   : > { %2484 = vst [vmem:[%s5482_s4 + $0x26] sm:$0x1] %v2483_v46  ;;  %v2578_v4 = vld [vmem:[%s5482_s4 + $0x66] sm:$0x1]  ;;  %v2581_v63 = vld [vmem:[%s5482_s4 + $0x68] sm:$0x1]  ;;  %v2555_v13 = vsel %vm5517_vm4, %v5710_v33, %v2554_v42  ;;  %v2561_v51 = vsel %vm5517_vm4, %v5754_v25, %v2560_v17 }
 0x21e   : > { %2487 = vst [vmem:[%s5482_s4 + $0x28] sm:$0x1] %v2486_v44  ;;  %2490 = vst [vmem:[%s5482_s4 + $0x2a] sm:$0x1] %v2489_v15  ;;  %v2584_v46 = vld [vmem:[%s5482_s4 + $0x6a] sm:$0x1]  ;;  %v2552_v15 = vsel %vm5517_vm4, %v5692_v50, %v2551_v30  ;;  %v2558_v30 = vsel %vm5517_vm4, %v5734_v56, %v2557_v45  ;;  %v2579_v45 = vsel %vm5517_vm4, %v5742_v7, %v2578_v4 }
 0x21f   : > { %2505 = vst [vmem:[%s5482_s4 + $0x34] sm:$0x1] %v2504_v49  ;;  %v2599_v44 = vld [vmem:[%s5482_s4 + $0x74] sm:$0x1]  ;;  %v2602_v43 = vld [vmem:[%s5482_s4 + $0x76] sm:$0x1]  ;;  %v2582_v17 = vsel %vm5517_vm4, %v5773_v53, %v2581_v63 }
 0x220   : > { %2508 = vst [vmem:[%s5482_s4 + $0x36] sm:$0x1] %v2507_v28  ;;  %2511 = vst [vmem:[%s5482_s4 + $0x38] sm:$0x1] %v2510_v39  ;;  %v2605_v49 = vld [vmem:[%s5482_s4 + $0x78] sm:$0x1]  ;;  %v2603_v63 = vsel %vm5517_vm4, %v5776_v61, %v2602_v43 }
 0x221   : > { %2514 = vst [vmem:[%s5482_s4 + $0x3a] sm:$0x1] %v2513_v23  ;;  %2529 = vst [vmem:[%s5482_s4 + $0x44] sm:$0x1] %v2528_v37  ;;  %v2608_v28 = vld [vmem:[%s5482_s4 + $0x7a] sm:$0x1]  ;;  %v2576_v23 = vsel %vm5517_vm4, %v5721_v31, %v2575_v59  ;;  %v2585_v59 = vsel %vm5517_vm4, %v5784_v38, %v2584_v46  ;;  %v2606_v46 = vsel %vm5517_vm4, %v5795_v40, %v2605_v49 }
 0x222   : > { %v2623_v48 = vld [vmem:[%s5482_s4 + $0x84] sm:$0x1]  ;;  %2532 = vst [vmem:[%s5482_s4 + $0x46] sm:$0x1] %v2531_v35  ;;  %2535 = vst [vmem:[%s5482_s4 + $0x48] sm:$0x1] %v2534_v54  ;;  %v2600_v54 = vsel %vm5517_vm4, %v5764_v58, %v2599_v44  ;;  %v2609_v44 = vsel %vm5517_vm4, %v5804_v10, %v2608_v28 }
 0x223   : > { %v8252_v39 = vld [vmem:[#allocation22_spill] sm:$0xff]  ;;  %2538 = vst [vmem:[%s5482_s4 + $0x4a] sm:$0x1] %v2537_v27  ;;  %2553 = vst [vmem:[%s5482_s4 + $0x54] sm:$0x1] %v2552_v15 }
 0x224   : > { %3341 = vrot.lane.b32.xlu1 %v8252_v39, %s4931_s5  ;;  %v2626_v37 = vld [vmem:[%s5482_s4 + $0x86] sm:$0x1]  ;;  %v2629_v35 = vld [vmem:[%s5482_s4 + $0x88] sm:$0x1]  ;;  %v2632_v42 = vld [vmem:[%s5482_s4 + $0x8a] sm:$0x1] }
 0x225   : > { %2556 = vst [vmem:[%s5482_s4 + $0x56] sm:$0x1] %v2555_v13  ;;  %2559 = vst [vmem:[%s5482_s4 + $0x58] sm:$0x1] %v2558_v30  ;;  %v2647_v27 = vld [vmem:[%s5482_s4 + $0x94] sm:$0x1]  ;;  %v2624_v13 = vsel %vm5517_vm4, %v5798_v62, %v2623_v48  ;;  %v2627_v43 = vsel %vm5517_vm4, %v5810_v36, %v2626_v37  ;;  %v2630_v49 = vsel %vm5517_vm4, %v5820_v60, %v2629_v35 }
 0x226   : > { %2562 = vst [vmem:[%s5482_s4 + $0x5a] sm:$0x1] %v2561_v51  ;;  %2577 = vst [vmem:[%s5482_s4 + $0x64] sm:$0x1] %v2576_v23  ;;  %v2650_v15 = vld [vmem:[%s5482_s4 + $0x96] sm:$0x1]  ;;  %v2633_v28 = vsel %vm5517_vm4, %v5831_v20, %v2632_v42  ;;  %v2648_v37 = vsel %vm5517_vm4, %v5813_v32, %v2647_v27 }
 0x227   : > { %v2653_v4 = vld [vmem:[%s5482_s4 + $0x98] sm:$0x1]  ;;  %2580 = vst [vmem:[%s5482_s4 + $0x66] sm:$0x1] %v2579_v45  ;;  %2583 = vst [vmem:[%s5482_s4 + $0x68] sm:$0x1] %v2582_v17  ;;  %v2651_v35 = vsel %vm5517_vm4, %v5834_v57, %v2650_v15 }
 0x228   : > { %2586 = vst [vmem:[%s5482_s4 + $0x6a] sm:$0x1] %v2585_v59  ;;  %2601 = vst [vmem:[%s5482_s4 + $0x74] sm:$0x1] %v2600_v54  ;;  %v2656_v30 = vld [vmem:[%s5482_s4 + $0x9a] sm:$0x1]  ;;  %v2654_v54 = vsel %vm5517_vm4, %v5843_v16, %v2653_v4 }
 0x229   : > { %2604 = vst [vmem:[%s5482_s4 + $0x76] sm:$0x1] %v2603_v63  ;;  %2607 = vst [vmem:[%s5482_s4 + $0x78] sm:$0x1] %v2606_v46  ;;  %v8253_v48 = vld [vmem:[#allocation9_spill] sm:$0xff]  ;;  %v8255_v42 = vld [vmem:[#allocation10_spill] sm:$0xff]  ;;  %v2657_v27 = vsel %vm5517_vm4, %v5864_v26, %v2656_v30 }
 0x22a   : > { %2610 = vst [vmem:[%s5482_s4 + $0x7a] sm:$0x1] %v2609_v44  ;;  %2625 = vst [vmem:[%s5482_s4 + $0x84] sm:$0x1] %v2624_v13  ;;  %v1215_v51 = vcombine.high %v8253_v48, %v8253_v48  ;;  %v2671_v23 = vld [vmem:[%s5482_s4 + $0xa4] sm:$0x1]  ;;  %v1216_v59 = vcombine.high %v8255_v42, %v8255_v42 }
 0x22b   : > { %v2674_v45 = vld [vmem:[%s5482_s4 + $0xa6] sm:$0x1]  ;;  %v8254_v17 = vld [vmem:[#allocation25_spill] sm:$0xff]  ;;  %2628 = vst [vmem:[%s5482_s4 + $0x86] sm:$0x1] %v2627_v43  ;;  %v8257_v43 = vld [vmem:[#allocation23_spill] sm:$0xff] }
 0x22c   : > { %3357 = vrot.lane.b32.xlu1 %v8254_v17, %s4931_s5  ;;  %2631 = vst [vmem:[%s5482_s4 + $0x88] sm:$0x1] %v2630_v49  ;;  %2634 = vst [vmem:[%s5482_s4 + $0x8a] sm:$0x1] %v2633_v28  ;;  %v4637_v63 = vpack.i.b16 %v1215_v51, %v1215_v51  ;;  %v1469_v46 = vunpack.i.h.s16 %v1215_v51  ;;  %v8256_v15 = vld [vmem:[#allocation2_spill] sm:$0xff]  ;;  %3371 = vrot.lane.b32.xlu0 %v8257_v43, %s4931_s5  ;;  %v4641_v49 = vpack.i.b16 %v1216_v59, %v1216_v59  ;;  %v8258_v28 = vld [vmem:[#allocation55_spill] sm:$0xff] }
 0x22d   : > { %2649 = vst [vmem:[%s5482_s4 + $0x94] sm:$0x1] %v2648_v37  ;;  %2652 = vst [vmem:[%s5482_s4 + $0x96] sm:$0x1] %v2651_v35  ;;  %v1264_v44 = vcombine.high %v8256_v15, %v8256_v15  ;;  %v2677_v13 = vld [vmem:[%s5482_s4 + $0xa8] sm:$0x1]  ;;  %v1477_v4 = vunpack.i.h.s16 %v1216_v59  ;;  %v2672_v48 = vsel %vm5517_vm4, %v8258_v28, %v2671_v23 }
 0x22e   : > { %2655 = vst [vmem:[%s5482_s4 + $0x98] sm:$0x1] %v2654_v54  ;;  %2658 = vst [vmem:[%s5482_s4 + $0x9a] sm:$0x1] %v2657_v27  ;;  %v8259_v51 = vld [vmem:[#allocation59_spill] sm:$0xff]  ;;  %v6103_v35 = vrot.slane %v4637_v63, %v5274_v55  ;;  %v1565_v42 = vpack.i.b16 %v1469_v46, %v1469_v46  ;;  %v8261_v59 = vld [vmem:[#allocation26_spill] sm:$0xff]  ;;  %v6110_v23 = vrot.slane %v4641_v49, %v5274_v55 }
 0x22f   : > { %v2675_v30 = vsel %vm5517_vm4, %v8259_v51, %v2674_v45  ;;  %v2680_v37 = vld [vmem:[%s5482_s4 + $0xaa] sm:$0x1]  ;;  %v4645_v54 = vpack.i.b16 %v1264_v44, %v1264_v44  ;;  %v1485_v15 = vunpack.i.h.s16 %v1264_v44  ;;  %2673 = vst [vmem:[%s5482_s4 + $0xa4] sm:$0x1] %v2672_v48  ;;  %v1573_v27 = vpack.i.b16 %v1477_v4, %v1477_v4  ;;  %v8264_v63 = vld [vmem:[#allocation62_spill] sm:$0xff]  ;;  %v8268_v39 = vld [vmem:[#allocation5_spill] sm:$0xff] }
 0x230   : > { %8260 = vst [vmem:[#allocation43_spill] sm:$0xff] %v6103_v35  ;;  %2676 = vst [vmem:[%s5482_s4 + $0xa6] sm:$0x1] %v2675_v30  ;;  %3373 = vrot.lane.b32.xlu1 %v8261_v59, %s4931_s5  ;;  %v8263_v43 = vld [vmem:[#allocation3_spill] sm:$0xff]  ;;  %v2678_v46 = vsel %vm5517_vm4, %v8264_v63, %v2677_v13  ;;  %v2695_v44 = vld [vmem:[%s5482_s4 + $0xb4] sm:$0x1]  ;;  %v6120_v30 = vrot.slane %v1565_v42, %v5274_v55 }
 0x231   : > { %8262 = vst [vmem:[#allocation9_spill] sm:$0xff] %v6110_v23  ;;  %v1265_v45 = vcombine.high %v8263_v43, %v8263_v43  ;;  %v2698_v48 = vld [vmem:[%s5482_s4 + $0xb6] sm:$0x1]  ;;  %v6123_v59 = vrot.slane %v4645_v54, %v5274_v55  ;;  %v1581_v49 = vpack.i.b16 %v1485_v15, %v1485_v15  ;;  %2679 = vst [vmem:[%s5482_s4 + $0xa8] sm:$0x1] %v2678_v46  ;;  %v8266_v4 = vld [vmem:[#allocation63_spill] sm:$0xff] }
 0x232   : > { %8265 = vst [vmem:[#allocation10_spill] sm:$0xff] %v6120_v30  ;;  %v2681_v17 = vsel %vm5517_vm4, %v8266_v4, %v2680_v37  ;;  %v8267_v43 = vld [vmem:[#allocation24_spill] sm:$0xff]  ;;  %v6132_v19 = vrot.slane %v1573_v27, %v5274_v55  ;;  %v1313_v54 = vcombine.high %v8268_v39, %v8268_v39  ;;  %v2701_v15 = vld [vmem:[%s5482_s4 + $0xb8] sm:$0x1]  ;;  %v2704_v46 = vld [vmem:[%s5482_s4 + $0xba] sm:$0x1]  ;;  %v2699_v27 = vsel %vm5517_vm4, %v5901_v34, %v2698_v48 }
 0x233   : > { %3387 = vrot.lane.b32.xlu0 %v8267_v43, %s4931_s5  ;;  %v4649_v13 = vpack.i.b16 %v1265_v45, %v1265_v45  ;;  %v1493_v42 = vunpack.i.h.s16 %v1265_v45  ;;  %2682 = vst [vmem:[%s5482_s4 + $0xaa] sm:$0x1] %v2681_v17  ;;  %v6140_v18 = vrot.slane %v1581_v49, %v5274_v55  ;;  %v8269_v37 = vld [vmem:[#allocation60_spill] sm:$0xff]  ;;  %2700 = vst [vmem:[%s5482_s4 + $0xb6] sm:$0x1] %v2699_v27  ;;  %v8284_v57 = vld [vmem:[#allocation33_spill] sm:$0xff] }
 0x234   : > { %v2696_v43 = vsel %vm5517_vm4, %v8269_v37, %v2695_v44  ;;  %v8270_v4 = vld [vmem:[#allocation4_spill] sm:$0xff]  ;;  %v4653_v63 = vpack.i.b16 %v1313_v54, %v1313_v54  ;;  %v1501_v51 = vunpack.i.h.s16 %v1313_v54  ;;  %v2702_v48 = vsel %vm5517_vm4, %v5904_v21, %v2701_v15  ;;  %v8273_v54 = vld [vmem:[#allocation7_spill] sm:$0xff]  ;;  %v2515_v60 = vld [vmem:[%s5482_s4 + $0x3c] sm:$0x1] }
 0x235   : > { %v1314_v45 = vcombine.high %v8270_v4, %v8270_v4  ;;  %v8271_v17 = vld [vmem:[#allocation28_spill] sm:$0xff]  ;;  %v6153_v39 = vrot.slane %v4649_v13, %v5274_v55  ;;  %v1589_v49 = vpack.i.b16 %v1493_v42, %v1493_v42  ;;  %2697 = vst [vmem:[%s5482_s4 + $0xb4] sm:$0x1] %v2696_v43  ;;  %v2705_v4 = vsel %vm5517_vm4, %v5934_v41, %v2704_v46  ;;  %v8275_v46 = vld [vmem:[#allocation6_spill] sm:$0xff]  ;;  %v2443_v26 = vld [vmem:[%s5482_s4 + $0xc] sm:$0x1] }
 0x236   : > { %3389 = vrot.lane.b32.xlu1 %v8271_v17, %s4931_s5  ;;  %v8272_v17 = vld [vmem:[#allocation27_spill] sm:$0xff]  ;;  %v6169_v42 = vrot.slane %v4653_v63, %v5274_v55  ;;  %v1597_v43 = vpack.i.b16 %v1501_v51, %v1501_v51  ;;  %2703 = vst [vmem:[%s5482_s4 + $0xb8] sm:$0x1] %v2702_v48  ;;  %2706 = vst [vmem:[%s5482_s4 + $0xba] sm:$0x1] %v2705_v4  ;;  %v1362_v27 = vcombine.high %v8273_v54, %v8273_v54  ;;  %v8278_v54 = vld [vmem:[#allocation12_spill] sm:$0xff] }
 0x237   : > { %v4657_v44 = vpack.i.b16 %v1314_v45, %v1314_v45  ;;  %v1509_v37 = vunpack.i.h.s16 %v1314_v45  ;;  %3403 = vrot.lane.b32.xlu0 %v8272_v17, %s4931_s5  ;;  %v6166_v13 = vrot.slane %v1589_v49, %v5274_v55  ;;  %v1363_v41 = vcombine.high %v8275_v46, %v8275_v46  ;;  %v8276_v17 = vld [vmem:[#allocation15_spill] sm:$0xff]  ;;  %v2563_v62 = vld [vmem:[%s5482_s4 + $0x5c] sm:$0x1]  ;;  %v8293_v40 = vld [vmem:[#allocation34_spill] sm:$0xff] }
 0x238   : > { %v1411_v49 = vcombine.high %v8276_v17, %v8276_v17  ;;  %v8277_v63 = vld [vmem:[#allocation31_spill] sm:$0xff]  ;;  %v6185_v51 = vrot.slane %v1597_v43, %v5274_v55  ;;  %v4661_v48 = vpack.i.b16 %v1362_v27, %v1362_v27  ;;  %v1517_v4 = vunpack.i.h.s16 %v1362_v27  ;;  %v8280_v17 = vld [vmem:[#allocation29_spill] sm:$0xff] }
 0x239   : > { %v6176_v15 = vrot.slane %v4657_v44, %v5274_v55  ;;  %v1605_v45 = vpack.i.b16 %v1509_v37, %v1509_v37  ;;  %v1412_v44 = vcombine.high %v8278_v54, %v8278_v54  ;;  %v4665_v46 = vpack.i.b16 %v1363_v41, %v1363_v41  ;;  %v2491_v20 = vld [vmem:[%s5482_s4 + $0x2c] sm:$0x1]  ;;  %v2590_v61 = vld [vmem:[%s5482_s4 + $0x6e] sm:$0x1] }
 0x23a   : > { %3405 = vrot.lane.b32.xlu1 %v8277_v63, %s4931_s5  ;;  %v1525_v21 = vunpack.i.h.s16 %v1363_v41  ;;  %v4669_v34 = vpack.i.b16 %v1411_v49, %v1411_v49  ;;  %v6195_v63 = vrot.slane %v4661_v48, %v5274_v55  ;;  %v1613_v43 = vpack.i.b16 %v1517_v4, %v1517_v4 }
 0x23b   : > { %8274 = vst [vmem:[#allocation2_spill] sm:$0xff] %v6176_v15  ;;  %v6190_v37 = vrot.slane %v1605_v45, %v5274_v55  ;;  %3419 = vrot.lane.b32.xlu0 %v8280_v17, %s4931_s5  ;;  %v1533_v28 = vunpack.i.h.s16 %v1411_v49  ;;  %v4673_v27 = vpack.i.b16 %v1412_v44, %v1412_v44  ;;  %v6199_v54 = vrot.slane %v4665_v46, %v5274_v55  ;;  %v2446_v17 = vld [vmem:[%s5482_s4 + $0xe] sm:$0x1]  ;;  %v8287_v46 = vld [vmem:[#allocation17_spill] sm:$0xff] }
 0x23c   : > { %8281 = vst [vmem:[#allocation5_spill] sm:$0xff] %v6195_v63  ;;  %v1621_v45 = vpack.i.b16 %v1525_v21, %v1525_v21  ;;  %v6202_v41 = vrot.slane %v4669_v34, %v5274_v55  ;;  %v1541_v16 = vunpack.i.h.s16 %v1412_v44  ;;  %v6208_v48 = vrot.slane %v1613_v43, %v5274_v55  ;;  %v2467_v34 = vld [vmem:[%s5482_s4 + $0x1c] sm:$0x1] }
 0x23d   : > { %8279 = vst [vmem:[#allocation3_spill] sm:$0xff] %v6190_v37  ;;  %8282 = vst [vmem:[#allocation4_spill] sm:$0xff] %v6199_v54  ;;  %v1629_v49 = vpack.i.b16 %v1533_v28, %v1533_v28  ;;  %v6211_v4 = vrot.slane %v4673_v27, %v5274_v55  ;;  %v1460_v21 = vcombine.high %v8287_v46, %v8287_v46  ;;  %v2470_v27 = vld [vmem:[%s5482_s4 + $0x1e] sm:$0x1]  ;;  %v8290_v46 = vld [vmem:[#allocation30_spill] sm:$0xff] }
 0x23e   : > { %8283 = vst [vmem:[#allocation7_spill] sm:$0xff] %v6202_v41  ;;  %3421 = vrot.lane.b32.xlu1 %v8284_v57, %s4931_s5  ;;  %8285 = vst [vmem:[#allocation6_spill] sm:$0xff] %v6208_v48  ;;  %v6217_v44 = vrot.slane %v1621_v45, %v5274_v55  ;;  %v1637_v32 = vpack.i.b16 %v1541_v16, %v1541_v16  ;;  %v8289_v57 = vld [vmem:[#allocation16_spill] sm:$0xff]  ;;  %v2444_v28 = vsel %vm5517_vm4, %v6103_v35, %v2443_v26  ;;  %v2494_v26 = vld [vmem:[%s5482_s4 + $0x2e] sm:$0x1] }
 0x23f   : > { %8286 = vst [vmem:[#allocation15_spill] sm:$0xff] %v6211_v4  ;;  %v1461_v43 = vcombine.high %v8289_v57, %v8289_v57  ;;  %3435 = vrot.lane.b32.xlu0 %v8290_v46, %s4931_s5  ;;  %v6230_v45 = vrot.slane %v1629_v49, %v5274_v55  ;;  %v4677_v16 = vpack.i.b16 %v1460_v21, %v1460_v21  ;;  %v1549_v36 = vunpack.i.h.s16 %v1460_v21  ;;  %v2539_v35 = vld [vmem:[%s5482_s4 + $0x4c] sm:$0x1] }
 0x240   : > { %8288 = vst [vmem:[#allocation12_spill] sm:$0xff] %v6217_v44  ;;  %2445 = vst [vmem:[%s5482_s4 + $0xc] sm:$0x1] %v2444_v28  ;;  %v2447_v57 = vsel %vm5517_vm4, %v6120_v30, %v2446_v17  ;;  %v6240_v10 = vrot.slane %v1637_v32, %v5274_v55  ;;  %v2468_v21 = vsel %vm5517_vm4, %v6110_v23, %v2467_v34  ;;  %v2518_v28 = vld [vmem:[%s5482_s4 + $0x3e] sm:$0x1] }
 0x241   : > { %8291 = vst [vmem:[#allocation17_spill] sm:$0xff] %v6230_v45  ;;  %v4681_v46 = vpack.i.b16 %v1461_v43, %v1461_v43  ;;  %v1557_v49 = vunpack.i.h.s16 %v1461_v43  ;;  %2448 = vst [vmem:[%s5482_s4 + $0xe] sm:$0x1] %v2447_v57  ;;  %v2542_v17 = vld [vmem:[%s5482_s4 + $0x4e] sm:$0x1]  ;;  %v6252_v32 = vrot.slane %v4677_v16, %v5274_v55  ;;  %v1645_v43 = vpack.i.b16 %v1549_v36, %v1549_v36 }
 0x242   : > { %8292 = vst [vmem:[#allocation16_spill] sm:$0xff] %v6240_v10  ;;  %v2566_v30 = vld [vmem:[%s5482_s4 + $0x5e] sm:$0x1]  ;;  %3437 = vrot.lane.b32.xlu1 %v8293_v40, %s4931_s5  ;;  %2469 = vst [vmem:[%s5482_s4 + $0x1c] sm:$0x1] %v2468_v21  ;;  %v2471_v57 = vsel %vm5517_vm4, %v6132_v19, %v2470_v27  ;;  %v2492_v34 = vsel %vm5517_vm4, %v6123_v59, %v2491_v20  ;;  %v2495_v36 = vsel %vm5517_vm4, %v6140_v18, %v2494_v26 }
 0x243   : > { %8294 = vst [vmem:[#allocation65_spill] sm:$0xff] %v6252_v32  ;;  %v2587_v23 = vld [vmem:[%s5482_s4 + $0x6c] sm:$0x1]  ;;  %v2611_v40 = vld [vmem:[%s5482_s4 + $0x7c] sm:$0x1]  ;;  %v6265_v58 = vrot.slane %v4681_v46, %v5274_v55  ;;  %v1653_v16 = vpack.i.b16 %v1557_v49, %v1557_v49  ;;  %v2516_v20 = vsel %vm5517_vm4, %v6153_v39, %v2515_v60  ;;  %v8296_v49 = vld [vmem:[#allocation32_spill] sm:$0xff]  ;;  %v2519_v60 = vsel %vm5517_vm4, %v6166_v13, %v2518_v28 }
 0x244   : > { %2472 = vst [vmem:[%s5482_s4 + $0x1e] sm:$0x1] %v2471_v57  ;;  %2493 = vst [vmem:[%s5482_s4 + $0x2c] sm:$0x1] %v2492_v34  ;;  %v2614_v27 = vld [vmem:[%s5482_s4 + $0x7e] sm:$0x1]  ;;  %3451 = vrot.lane.b32.xlu0 %v8296_v49, %s4931_s5  ;;  %v6281_v57 = vrot.slane %v1645_v43, %v5274_v55  ;;  %v2540_v26 = vsel %vm5517_vm4, %v6169_v42, %v2539_v35  ;;  %v2543_v34 = vsel %vm5517_vm4, %v6185_v51, %v2542_v17 }
 0x245   : > { %8295 = vst [vmem:[#allocation66_spill] sm:$0xff] %v6265_v58  ;;  %v2635_v46 = vld [vmem:[%s5482_s4 + $0x8c] sm:$0x1]  ;;  %v2638_v21 = vld [vmem:[%s5482_s4 + $0x8e] sm:$0x1]  ;;  %v2564_v35 = vsel %vm5517_vm4, %v6176_v15, %v2563_v62  ;;  %v2567_v28 = vsel %vm5517_vm4, %v6190_v37, %v2566_v30  ;;  %v2591_v62 = vsel %vm5517_vm4, %v6208_v48, %v2590_v61  ;;  %v2615_v30 = vsel %vm5517_vm4, %v6217_v44, %v2614_v27 }
 0x246   : > { %8297 = vst [vmem:[#allocation67_spill] sm:$0xff] %v6281_v57  ;;  %2496 = vst [vmem:[%s5482_s4 + $0x2e] sm:$0x1] %v2495_v36  ;;  %v2659_v43 = vld [vmem:[%s5482_s4 + $0x9c] sm:$0x1]  ;;  %v2639_v61 = vsel %vm5517_vm4, %v6230_v45, %v2638_v21 }
 0x247   : > { %2517 = vst [vmem:[%s5482_s4 + $0x3c] sm:$0x1] %v2516_v20  ;;  %v2662_v36 = vld [vmem:[%s5482_s4 + $0x9e] sm:$0x1]  ;;  %v2683_v49 = vld [vmem:[%s5482_s4 + $0xac] sm:$0x1]  ;;  %v6298_v20 = vrot.slane %v1653_v16, %v5274_v55  ;;  %v2588_v55 = vsel %vm5517_vm4, %v6195_v63, %v2587_v23  ;;  %v2612_v23 = vsel %vm5517_vm4, %v6199_v54, %v2611_v40  ;;  %v2660_v40 = vsel %vm5517_vm4, %v6211_v4, %v2659_v43 }
 0x248   : > { %2520 = vst [vmem:[%s5482_s4 + $0x3e] sm:$0x1] %v2519_v60  ;;  %2541 = vst [vmem:[%s5482_s4 + $0x4c] sm:$0x1] %v2540_v26  ;;  %v2686_v17 = vld [vmem:[%s5482_s4 + $0xae] sm:$0x1]  ;;  %v2663_v27 = vsel %vm5517_vm4, %v6240_v10, %v2662_v36 }
 0x249   : > { %8298 = vst [vmem:[#allocation68_spill] sm:$0xff] %v6298_v20  ;;  %2544 = vst [vmem:[%s5482_s4 + $0x4e] sm:$0x1] %v2543_v34  ;;  %v2707_v16 = vld [vmem:[%s5482_s4 + $0xbc] sm:$0x1]  ;;  %v8299_v26 = vld [vmem:[#allocation35_spill] sm:$0xff]  ;;  %v2636_v34 = vsel %vm5517_vm4, %v6202_v41, %v2635_v46  ;;  %v2684_v46 = vsel %vm5517_vm4, %v6252_v32, %v2683_v49  ;;  %v2687_v21 = vsel %vm5517_vm4, %v6281_v57, %v2686_v17 }
 0x24a   : > { %v2710_v60 = vld [vmem:[%s5482_s4 + $0xbe] sm:$0x1]  ;;  %3453 = vrot.lane.b32.xlu1 %v8299_v26, %s4931_s5  ;;  %2565 = vst [vmem:[%s5482_s4 + $0x5c] sm:$0x1] %v2564_v35  ;;  %2568 = vst [vmem:[%s5482_s4 + $0x5e] sm:$0x1] %v2567_v28  ;;  %v2708_v43 = vsel %vm5517_vm4, %v6265_v58, %v2707_v16 }
 0x24b   : > { %2589 = vst [vmem:[%s5482_s4 + $0x6c] sm:$0x1] %v2588_v55  ;;  %2592 = vst [vmem:[%s5482_s4 + $0x6e] sm:$0x1] %v2591_v62  ;;  %v8300_v35 = vld [vmem:[#allocation38_spill] sm:$0xff]  ;;  %v2711_v36 = vsel %vm5517_vm4, %v6298_v20, %v2710_v60  ;;  %v8301_v49 = vld [vmem:[#allocation40_spill] sm:$0xff] }
 0x24c   : > { %2613 = vst [vmem:[%s5482_s4 + $0x7c] sm:$0x1] %v2612_v23  ;;  %2616 = vst [vmem:[%s5482_s4 + $0x7e] sm:$0x1] %v2615_v30  ;;  %2717 = vrot.lane.b32.xlu0 %v8300_v35, %s4924_s25  ;;  %v8302_v28 = vld [vmem:[#allocation42_spill] sm:$0xff]  ;;  %v8303_v55 = vld [vmem:[#allocation39_spill] sm:$0xff]  ;;  %v2714_v60 = vpop.permute.xlu0 %2713 }
 0x24d   : > { %2637 = vst [vmem:[%s5482_s4 + $0x8c] sm:$0x1] %v2636_v34  ;;  %2640 = vst [vmem:[%s5482_s4 + $0x8e] sm:$0x1] %v2639_v61  ;;  %v3003_v16 = vld [vmem:[%s5482_s4] sm:$0x1]  ;;  %v2716_v23 = vpop.permute.xlu1 %2715 }
 0x24e   : > { %2661 = vst [vmem:[%s5482_s4 + $0x9c] sm:$0x1] %v2660_v40  ;;  %2664 = vst [vmem:[%s5482_s4 + $0x9e] sm:$0x1] %v2663_v27  ;;  %2719 = vrot.lane.b32.xlu1 %v8301_v49, %s4924_s25  ;;  %v3004_v62 = vsel %vm6387_vm6, %v2714_v60, %v3003_v16  ;;  %v3006_v30 = vld [vmem:[%s5482_s4 + $0x2] sm:$0x1] }
 0x24f   : > { %2685 = vst [vmem:[%s5482_s4 + $0xac] sm:$0x1] %v2684_v46  ;;  %2688 = vst [vmem:[%s5482_s4 + $0xae] sm:$0x1] %v2687_v21  ;;  %v3007_v34 = vsel %vm6387_vm6, %v2716_v23, %v3006_v30  ;;  %v3027_v61 = vld [vmem:[%s5482_s4 + $0x10] sm:$0x1] }
 0x250   : > { %2709 = vst [vmem:[%s5482_s4 + $0xbc] sm:$0x1] %v2708_v43  ;;  %2712 = vst [vmem:[%s5482_s4 + $0xbe] sm:$0x1] %v2711_v36  ;;  %2721 = vrot.lane.b32.xlu0 %v8244_v22, %s4924_s25  ;;  %v2730_v40 = vpop.permute.xlu0 %2729  ;;  %v3030_v46 = vld [vmem:[%s5482_s4 + $0x12] sm:$0x1] }
 0x251   : > { %3005 = vst [vmem:[%s5482_s4] sm:$0x1] %v3004_v62  ;;  %3008 = vst [vmem:[%s5482_s4 + $0x2] sm:$0x1] %v3007_v34  ;;  %v3028_v27 = vsel %vm6387_vm6, %v2730_v40, %v3027_v61  ;;  %v2732_v21 = vpop.permute.xlu1 %2731  ;;  %v3051_v36 = vld [vmem:[%s5482_s4 + $0x20] sm:$0x1]  ;;  %v8317_v57 = vld [vmem:[#allocation53_spill] sm:$0xff] }
 0x252   : > { %2723 = vrot.lane.b32.xlu1 %v8302_v28, %s4924_s25  ;;  %3029 = vst [vmem:[%s5482_s4 + $0x10] sm:$0x1] %v3028_v27  ;;  %v3031_v43 = vsel %vm6387_vm6, %v2732_v21, %v3030_v46  ;;  %v3054_v62 = vld [vmem:[%s5482_s4 + $0x22] sm:$0x1]  ;;  %v3075_v34 = vld [vmem:[%s5482_s4 + $0x30] sm:$0x1] }
 0x253   : > { %3032 = vst [vmem:[%s5482_s4 + $0x12] sm:$0x1] %v3031_v43  ;;  %v3078_v27 = vld [vmem:[%s5482_s4 + $0x32] sm:$0x1]  ;;  %v3099_v43 = vld [vmem:[%s5482_s4 + $0x40] sm:$0x1] }
 0x254   : > { %2733 = vrot.lane.b32.xlu0 %v8303_v55, %s4924_s25  ;;  %v2746_v16 = vpop.permute.xlu0 %2745  ;;  %v3582_v26 = vld [vmem:[%s5482_s4] sm:$0x2]  ;;  %v3606_v10 = vld [vmem:[%s5482_s4 + $0x10] sm:$0x2]  ;;  %v3609_v4 = vld [vmem:[%s5482_s4 + $0x12] sm:$0x2] }
 0x255   : > { %v3052_v60 = vsel %vm6387_vm6, %v2746_v16, %v3051_v36  ;;  %v3630_v45 = vld [vmem:[%s5482_s4 + $0x20] sm:$0x2]  ;;  %v3633_v41 = vld [vmem:[%s5482_s4 + $0x22] sm:$0x2]  ;;  %v3654_v44 = vld [vmem:[%s5482_s4 + $0x30] sm:$0x2] }
 0x256   : > { %2735 = vrot.lane.b32.xlu1 %v8248_v14, %s4924_s25  ;;  %3053 = vst [vmem:[%s5482_s4 + $0x20] sm:$0x1] %v3052_v60  ;;  %v2748_v23 = vpop.permute.xlu1 %2747  ;;  %v3657_v54 = vld [vmem:[%s5482_s4 + $0x32] sm:$0x2]  ;;  %v3678_v48 = vld [vmem:[%s5482_s4 + $0x40] sm:$0x2] }
 0x257   : > { %v3055_v30 = vsel %vm6387_vm6, %v2748_v23, %v3054_v62  ;;  %v3102_v62 = vld [vmem:[%s5482_s4 + $0x42] sm:$0x1]  ;;  %v3681_v63 = vld [vmem:[%s5482_s4 + $0x42] sm:$0x2]  ;;  %v3702_v37 = vld [vmem:[%s5482_s4 + $0x50] sm:$0x2] }
 0x258   : > { %2737 = vrot.lane.b32.xlu0 %v8304_v29, %s4924_s25  ;;  %3056 = vst [vmem:[%s5482_s4 + $0x22] sm:$0x1] %v3055_v30  ;;  %v2762_v61 = vpop.permute.xlu0 %2761  ;;  %v3123_v30 = vld [vmem:[%s5482_s4 + $0x50] sm:$0x1]  ;;  %v3705_v15 = vld [vmem:[%s5482_s4 + $0x52] sm:$0x2] }
 0x259   : > { %v3076_v40 = vsel %vm6387_vm6, %v2762_v61, %v3075_v34 }
 0x25a   : > { %2739 = vrot.lane.b32.xlu1 %v5581_v12, %s4924_s25  ;;  %3077 = vst [vmem:[%s5482_s4 + $0x30] sm:$0x1] %v3076_v40  ;;  %v2764_v46 = vpop.permute.xlu1 %2763  ;;  %v3126_v40 = vld [vmem:[%s5482_s4 + $0x52] sm:$0x1] }
 0x25b   : > { %v3079_v21 = vsel %vm6387_vm6, %v2764_v46, %v3078_v27 }
 0x25c   : > { %2749 = vrot.lane.b32.xlu0 %v8250_v2, %s4924_s25  ;;  %3080 = vst [vmem:[%s5482_s4 + $0x32] sm:$0x1] %v3079_v21  ;;  %v2778_v36 = vpop.permute.xlu0 %2777  ;;  %v3147_v21 = vld [vmem:[%s5482_s4 + $0x60] sm:$0x1] }
 0x25d   : > { %v3100_v16 = vsel %vm6387_vm6, %v2778_v36, %v3099_v43 }
 0x25e   : > { %2751 = vrot.lane.b32.xlu1 %v5584_v52, %s4924_s25  ;;  %3101 = vst [vmem:[%s5482_s4 + $0x40] sm:$0x1] %v3100_v16  ;;  %v2780_v60 = vpop.permute.xlu1 %2779 }
 0x25f   : > { %v3103_v23 = vsel %vm6387_vm6, %v2780_v60, %v3102_v62  ;;  %v3150_v60 = vld [vmem:[%s5482_s4 + $0x62] sm:$0x1] }
 0x260   : > { %2753 = vrot.lane.b32.xlu0 %v5604_v9, %s4924_s25  ;;  %3104 = vst [vmem:[%s5482_s4 + $0x42] sm:$0x1] %v3103_v23  ;;  %v2794_v34 = vpop.permute.xlu0 %2793  ;;  %v3171_v23 = vld [vmem:[%s5482_s4 + $0x70] sm:$0x1] }
 0x261   : > { %v3124_v61 = vsel %vm6387_vm6, %v2794_v34, %v3123_v30 }
 0x262   : > { %2755 = vrot.lane.b32.xlu1 %v5625_v24, %s4924_s25  ;;  %3125 = vst [vmem:[%s5482_s4 + $0x50] sm:$0x1] %v3124_v61  ;;  %v2796_v27 = vpop.permute.xlu1 %2795  ;;  %v3174_v61 = vld [vmem:[%s5482_s4 + $0x72] sm:$0x1] }
 0x263   : > { %v3127_v46 = vsel %vm6387_vm6, %v2796_v27, %v3126_v40 }
 0x264   : > { %2765 = vrot.lane.b32.xlu0 %v5616_v3, %s4924_s25  ;;  %3128 = vst [vmem:[%s5482_s4 + $0x52] sm:$0x1] %v3127_v46  ;;  %v2810_v43 = vpop.permute.xlu0 %2809  ;;  %v3195_v46 = vld [vmem:[%s5482_s4 + $0x80] sm:$0x1] }
 0x265   : > { %v3148_v36 = vsel %vm6387_vm6, %v2810_v43, %v3147_v21 }
 0x266   : > { %2767 = vrot.lane.b32.xlu1 %v5636_v8, %s4924_s25  ;;  %3149 = vst [vmem:[%s5482_s4 + $0x60] sm:$0x1] %v3148_v36 }
 0x267   : > { %v2812_v16 = vpop.permute.xlu1 %2811 }
 0x268   : > { %2769 = vrot.lane.b32.xlu0 %v5654_v5, %s4924_s25  ;;  %v3151_v62 = vsel %vm6387_vm6, %v2812_v16, %v3150_v60  ;;  %v3198_v16 = vld [vmem:[%s5482_s4 + $0x82] sm:$0x1] }
 0x269   : > { %3152 = vst [vmem:[%s5482_s4 + $0x62] sm:$0x1] %v3151_v62  ;;  %v2826_v30 = vpop.permute.xlu0 %2825  ;;  %v8307_v60 = vld [vmem:[#allocation46_spill] sm:$0xff] }
 0x26a   : > { %2771 = vrot.lane.b32.xlu1 %v5668_v6, %s4924_s25  ;;  %v3172_v34 = vsel %vm6387_vm6, %v2826_v30, %v3171_v23  ;;  %v8308_v23 = vld [vmem:[#allocation47_spill] sm:$0xff]  ;;  %v3219_v30 = vld [vmem:[%s5482_s4 + $0x90] sm:$0x1] }
 0x26b   : > { %3173 = vst [vmem:[%s5482_s4 + $0x70] sm:$0x1] %v3172_v34  ;;  %v2828_v40 = vpop.permute.xlu1 %2827 }
 0x26c   : > { %2781 = vrot.lane.b32.xlu0 %v5639_v0, %s4924_s25  ;;  %v3175_v27 = vsel %vm6387_vm6, %v2828_v40, %v3174_v61  ;;  %v3222_v40 = vld [vmem:[%s5482_s4 + $0x92] sm:$0x1] }
 0x26d   : > { %3176 = vst [vmem:[%s5482_s4 + $0x72] sm:$0x1] %v3175_v27  ;;  %v2842_v21 = vpop.permute.xlu0 %2841 }
 0x26e   : > { %2783 = vrot.lane.b32.xlu1 %v5657_v11, %s4924_s25  ;;  %v3196_v43 = vsel %vm6387_vm6, %v2842_v21, %v3195_v46  ;;  %v8309_v46 = vld [vmem:[#allocation49_spill] sm:$0xff] }
 0x26f   : > { %3197 = vst [vmem:[%s5482_s4 + $0x80] sm:$0x1] %v3196_v43  ;;  %v2844_v36 = vpop.permute.xlu1 %2843  ;;  %v8310_v43 = vld [vmem:[#allocation51_spill] sm:$0xff] }
 0x270   : > { %2785 = vrot.lane.b32.xlu0 %v5689_v47, %s4924_s25  ;;  %v3199_v62 = vsel %vm6387_vm6, %v2844_v36, %v3198_v16  ;;  %v3243_v36 = vld [vmem:[%s5482_s4 + $0xa0] sm:$0x1] }
 0x271   : > { %3200 = vst [vmem:[%s5482_s4 + $0x82] sm:$0x1] %v3199_v62  ;;  %v2858_v34 = vpop.permute.xlu0 %2857 }
 0x272   : > { %2787 = vrot.lane.b32.xlu1 %v5698_v1, %s4924_s25  ;;  %v3220_v61 = vsel %vm6387_vm6, %v2858_v34, %v3219_v30  ;;  %v8311_v30 = vld [vmem:[#allocation50_spill] sm:$0xff] }
 0x273   : > { %3221 = vst [vmem:[%s5482_s4 + $0x90] sm:$0x1] %v3220_v61  ;;  %v2860_v27 = vpop.permute.xlu1 %2859  ;;  %v3246_v61 = vld [vmem:[%s5482_s4 + $0xa2] sm:$0x1] }
 0x274   : > { %2797 = vrot.lane.b32.xlu0 %v5692_v50, %s4924_s25  ;;  %v3223_v21 = vsel %vm6387_vm6, %v2860_v27, %v3222_v40  ;;  %v8312_v27 = vld [vmem:[#allocation52_spill] sm:$0xff] }
 0x275   : > { %3224 = vst [vmem:[%s5482_s4 + $0x92] sm:$0x1] %v3223_v21  ;;  %v2874_v16 = vpop.permute.xlu0 %2873  ;;  %v3267_v21 = vld [vmem:[%s5482_s4 + $0xb0] sm:$0x1] }
 0x276   : > { %2799 = vrot.lane.b32.xlu1 %v5710_v33, %s4924_s25  ;;  %v3244_v62 = vsel %vm6387_vm6, %v2874_v16, %v3243_v36 }
 0x277   : > { %3245 = vst [vmem:[%s5482_s4 + $0xa0] sm:$0x1] %v3244_v62  ;;  %v2876_v34 = vpop.permute.xlu1 %2875  ;;  %v8313_v62 = vld [vmem:[#allocation54_spill] sm:$0xff] }
 0x278   : > { %2801 = vrot.lane.b32.xlu0 %v5734_v56, %s4924_s25  ;;  %v3247_v40 = vsel %vm6387_vm6, %v2876_v34, %v3246_v61  ;;  %v3270_v34 = vld [vmem:[%s5482_s4 + $0xb2] sm:$0x1] }
 0x279   : > { %3248 = vst [vmem:[%s5482_s4 + $0xa2] sm:$0x1] %v3247_v40  ;;  %v2890_v36 = vpop.permute.xlu0 %2889 }
 0x27a   : > { %2803 = vrot.lane.b32.xlu1 %v5754_v25, %s4924_s25  ;;  %v3268_v16 = vsel %vm6387_vm6, %v2890_v36, %v3267_v21  ;;  %v8316_v21 = vld [vmem:[#allocation56_spill] sm:$0xff] }
 0x27b   : > { %3269 = vst [vmem:[%s5482_s4 + $0xb0] sm:$0x1] %v3268_v16  ;;  %v2892_v61 = vpop.permute.xlu1 %2891  ;;  %v3585_v16 = vld [vmem:[%s5482_s4 + $0x2] sm:$0x2] }
 0x27c   : > { %2813 = vrot.lane.b32.xlu0 %v5721_v31, %s4924_s25  ;;  %v3271_v20 = vsel %vm6387_vm6, %v2892_v61, %v3270_v34  ;;  %v8318_v34 = vld [vmem:[#allocation57_spill] sm:$0xff] }
 0x27d   : > { %3272 = vst [vmem:[%s5482_s4 + $0xb2] sm:$0x1] %v3271_v20  ;;  %v3292_v36 = vpop.permute.xlu0 %3291 }
 0x27e   : > { %2815 = vrot.lane.b32.xlu1 %v5742_v7, %s4924_s25  ;;  %v3583_v58 = vsel %vm6533_vm9, %v3292_v36, %v3582_v26  ;;  %v8319_v26 = vld [vmem:[#allocation58_spill] sm:$0xff] }
 0x27f   : > { %3584 = vst [vmem:[%s5482_s4] sm:$0x2] %v3583_v58 }
 0x280   : > { %2817 = vrot.lane.b32.xlu0 %v5773_v53, %s4924_s25  ;;  %v3294_v32 = vpop.permute.xlu1 %3293 }
 0x281   : > { %v3586_v20 = vsel %vm6533_vm9, %v3294_v32, %v3585_v16  ;;  %v3308_v61 = vpop.permute.xlu0 %3307  ;;  %v8320_v16 = vld [vmem:[#allocation61_spill] sm:$0xff] }
 0x282   : > { %2819 = vrot.lane.b32.xlu1 %v5784_v38, %s4924_s25  ;;  %3587 = vst [vmem:[%s5482_s4 + $0x2] sm:$0x2] %v3586_v20  ;;  %v3607_v58 = vsel %vm6533_vm9, %v3308_v61, %v3606_v10 }
 0x283   : > { %3608 = vst [vmem:[%s5482_s4 + $0x10] sm:$0x2] %v3607_v58  ;;  %v8321_v58 = vld [vmem:[#allocation55_spill] sm:$0xff] }
 0x284   : > { %2829 = vrot.lane.b32.xlu0 %v8307_v60, %s4924_s25  ;;  %v3310_v36 = vpop.permute.xlu1 %3309 }
 0x285   : > { %v3610_v32 = vsel %vm6533_vm9, %v3310_v36, %v3609_v4  ;;  %v8322_v36 = vld [vmem:[#allocation59_spill] sm:$0xff] }
 0x286   : > { %2831 = vrot.lane.b32.xlu1 %v8308_v23, %s4924_s25  ;;  %3611 = vst [vmem:[%s5482_s4 + $0x12] sm:$0x2] %v3610_v32  ;;  %v3324_v20 = vpop.permute.xlu0 %3323 }
 0x287   : > { %v3631_v10 = vsel %vm6533_vm9, %v3324_v20, %v3630_v45 }
 0x288   : > { %2833 = vrot.lane.b32.xlu0 %v8309_v46, %s4924_s25  ;;  %3632 = vst [vmem:[%s5482_s4 + $0x20] sm:$0x2] %v3631_v10  ;;  %v3326_v61 = vpop.permute.xlu1 %3325  ;;  %v8323_v10 = vld [vmem:[#allocation62_spill] sm:$0xff] }
 0x289   : > { %v3634_v4 = vsel %vm6533_vm9, %v3326_v61, %v3633_v41  ;;  %v8324_v61 = vld [vmem:[#allocation63_spill] sm:$0xff] }
 0x28a   : > { %2835 = vrot.lane.b32.xlu1 %v8310_v43, %s4924_s25  ;;  %3635 = vst [vmem:[%s5482_s4 + $0x22] sm:$0x2] %v3634_v4  ;;  %v3340_v32 = vpop.permute.xlu0 %3339 }
 0x28b   : > { %v3655_v45 = vsel %vm6533_vm9, %v3340_v32, %v3654_v44 }
 0x28c   : > { %2845 = vrot.lane.b32.xlu0 %v8311_v30, %s4924_s25  ;;  %3656 = vst [vmem:[%s5482_s4 + $0x30] sm:$0x2] %v3655_v45  ;;  %v8325_v45 = vld [vmem:[#allocation60_spill] sm:$0xff] }
 0x28e   : > { %2847 = vrot.lane.b32.xlu1 %v8312_v27, %s4924_s25  ;;  %v3356_v4 = vpop.permute.xlu0 %3355 }
 0x28f   : > { %v3679_v44 = vsel %vm6533_vm9, %v3356_v4, %v3678_v48 }
 0x290   : > { %2849 = vrot.lane.b32.xlu0 %v8313_v62, %s4924_s25  ;;  %3680 = vst [vmem:[%s5482_s4 + $0x40] sm:$0x2] %v3679_v44  ;;  %v8327_v44 = vld [vmem:[#allocation64_spill] sm:$0xff] }
 0x292   : > { %2851 = vrot.lane.b32.xlu1 %v8316_v21, %s4924_s25 }
 0x294   : > { %2861 = vrot.lane.b32.xlu0 %v8317_v57, %s4924_s25 }
 0x296   : > { %2863 = vrot.lane.b32.xlu1 %v8318_v34, %s4924_s25  ;;  %v3342_v20 = vpop.permute.xlu1 %3341 }
 0x297   : > { %v3658_v41 = vsel %vm6533_vm9, %v3342_v20, %v3657_v54  ;;  %v8326_v20 = vld [vmem:[#allocation41_spill] sm:$0xff] }
 0x298   : > { %2865 = vrot.lane.b32.xlu0 %v8319_v26, %s4924_s25  ;;  %3659 = vst [vmem:[%s5482_s4 + $0x32] sm:$0x2] %v3658_v41 }
 0x29a   : > { %2867 = vrot.lane.b32.xlu1 %v8320_v16, %s4924_s25 }
 0x29c   : > { %2877 = vrot.lane.b32.xlu0 %v8321_v58, %s4924_s25 }
 0x29e   : > { %2879 = vrot.lane.b32.xlu1 %v8322_v36, %s4924_s25  ;;  %v3358_v32 = vpop.permute.xlu1 %3357  ;;  %v3372_v41 = vpop.permute.xlu0 %3371 }
 0x29f   : > { %v3682_v54 = vsel %vm6533_vm9, %v3358_v32, %v3681_v63  ;;  %v3703_v48 = vsel %vm6533_vm9, %v3372_v41, %v3702_v37  ;;  %v8328_v32 = vld [vmem:[#allocation44_spill] sm:$0xff] }
 0x2a0   : > { %2881 = vrot.lane.b32.xlu0 %v8323_v10, %s4924_s25  ;;  %3683 = vst [vmem:[%s5482_s4 + $0x42] sm:$0x2] %v3682_v54  ;;  %3704 = vst [vmem:[%s5482_s4 + $0x50] sm:$0x2] %v3703_v48  ;;  %v3750_v48 = vld [vmem:[%s5482_s4 + $0x70] sm:$0x2] }
 0x2a2   : > { %2883 = vrot.lane.b32.xlu1 %v8324_v61, %s4924_s25  ;;  %v3374_v4 = vpop.permute.xlu1 %3373 }
 0x2a3   : > { %v3706_v63 = vsel %vm6533_vm9, %v3374_v4, %v3705_v15 }
 0x2a4   : > { %2893 = vrot.lane.b32.xlu0 %v8325_v45, %s4924_s25  ;;  %v3726_v45 = vld [vmem:[%s5482_s4 + $0x60] sm:$0x2]  ;;  %3707 = vst [vmem:[%s5482_s4 + $0x52] sm:$0x2] %v3706_v63  ;;  %v3753_v63 = vld [vmem:[%s5482_s4 + $0x72] sm:$0x2] }
 0x2a5   : > { %v3388_v54 = vpop.permute.xlu0 %3387 }
 0x2a6   : > { %2895 = vrot.lane.b32.xlu1 %v8326_v20, %s4924_s25  ;;  %v3729_v20 = vld [vmem:[%s5482_s4 + $0x62] sm:$0x2]  ;;  %v3727_v37 = vsel %vm6533_vm9, %v3388_v54, %v3726_v45 }
 0x2a7   : > { %3728 = vst [vmem:[%s5482_s4 + $0x60] sm:$0x2] %v3727_v37  ;;  %v3774_v37 = vld [vmem:[%s5482_s4 + $0x80] sm:$0x2] }
 0x2a8   : > { %2897 = vrot.lane.b32.xlu0 %v8327_v44, %s4924_s25  ;;  %v3390_v41 = vpop.permute.xlu1 %3389 }
 0x2a9   : > { %v3730_v15 = vsel %vm6533_vm9, %v3390_v41, %v3729_v20  ;;  %v3404_v4 = vpop.permute.xlu0 %3403 }
 0x2aa   : > { %2899 = vrot.lane.b32.xlu1 %v8328_v32, %s4924_s25  ;;  %3731 = vst [vmem:[%s5482_s4 + $0x62] sm:$0x2] %v3730_v15  ;;  %v3751_v45 = vsel %vm6533_vm9, %v3404_v4, %v3750_v48  ;;  %v3777_v15 = vld [vmem:[%s5482_s4 + $0x82] sm:$0x2] }
 0x2ab   : > { %3752 = vst [vmem:[%s5482_s4 + $0x70] sm:$0x2] %v3751_v45  ;;  %v3798_v45 = vld [vmem:[%s5482_s4 + $0x90] sm:$0x2] }
 0x2ac   : > { %3295 = vrot.lane.b32.xlu0 %v8300_v35, %s4931_s5  ;;  %v3406_v54 = vpop.permute.xlu1 %3405 }
 0x2ad   : > { %v3754_v20 = vsel %vm6533_vm9, %v3406_v54, %v3753_v63  ;;  %v3420_v41 = vpop.permute.xlu0 %3419 }
 0x2ae   : > { %3297 = vrot.lane.b32.xlu1 %v8301_v49, %s4931_s5  ;;  %3755 = vst [vmem:[%s5482_s4 + $0x72] sm:$0x2] %v3754_v20  ;;  %v3775_v48 = vsel %vm6533_vm9, %v3420_v41, %v3774_v37  ;;  %v3801_v20 = vld [vmem:[%s5482_s4 + $0x92] sm:$0x2] }
 0x2af   : > { %3776 = vst [vmem:[%s5482_s4 + $0x80] sm:$0x2] %v3775_v48  ;;  %v3822_v48 = vld [vmem:[%s5482_s4 + $0xa0] sm:$0x2] }
 0x2b0   : > { %3299 = vrot.lane.b32.xlu0 %v8244_v22, %s4931_s5  ;;  %v3422_v4 = vpop.permute.xlu1 %3421 }
 0x2b1   : > { %v3778_v63 = vsel %vm6533_vm9, %v3422_v4, %v3777_v15  ;;  %v3436_v54 = vpop.permute.xlu0 %3435 }
 0x2b2   : > { %3301 = vrot.lane.b32.xlu1 %v8302_v28, %s4931_s5  ;;  %3779 = vst [vmem:[%s5482_s4 + $0x82] sm:$0x2] %v3778_v63  ;;  %v3799_v37 = vsel %vm6533_vm9, %v3436_v54, %v3798_v45  ;;  %v3825_v63 = vld [vmem:[%s5482_s4 + $0xa2] sm:$0x2] }
 0x2b3   : > { %3800 = vst [vmem:[%s5482_s4 + $0x90] sm:$0x2] %v3799_v37  ;;  %v3009_v37 = vld [vmem:[%s5482_s4 + $0x4] sm:$0x1] }
 0x2b4   : > { %3311 = vrot.lane.b32.xlu0 %v8303_v55, %s4931_s5  ;;  %v3438_v41 = vpop.permute.xlu1 %3437 }
 0x2b5   : > { %v3802_v15 = vsel %vm6533_vm9, %v3438_v41, %v3801_v20 }
 0x2b6   : > { %3313 = vrot.lane.b32.xlu1 %v8248_v14, %s4931_s5  ;;  %3803 = vst [vmem:[%s5482_s4 + $0x92] sm:$0x2] %v3802_v15  ;;  %v3452_v4 = vpop.permute.xlu0 %3451  ;;  %v3012_v15 = vld [vmem:[%s5482_s4 + $0x6] sm:$0x1] }
 0x2b7   : > { %v3823_v45 = vsel %vm6533_vm9, %v3452_v4, %v3822_v48 }
 0x2b8   : > { %3315 = vrot.lane.b32.xlu0 %v8304_v29, %s4931_s5  ;;  %3824 = vst [vmem:[%s5482_s4 + $0xa0] sm:$0x2] %v3823_v45  ;;  %v3015_v45 = vld [vmem:[%s5482_s4 + $0x8] sm:$0x1] }
 0x2ba   : > { %3317 = vrot.lane.b32.xlu1 %v5581_v12, %s4931_s5 }
 0x2bc   : > { %v3454_v54 = vpop.permute.xlu1 %3453  ;;  %3327 = vrot.lane.b32.xlu0 %v8250_v2, %s4931_s5 }
 0x2bd   : > { %v3826_v20 = vsel %vm6533_vm9, %v3454_v54, %v3825_v63 }
 0x2be   : > { %3827 = vst [vmem:[%s5482_s4 + $0xa2] sm:$0x2] %v3826_v20  ;;  %3329 = vrot.lane.b32.xlu1 %v5584_v52, %s4931_s5  ;;  %v2718_v41 = vpop.permute.xlu0 %2717 }
 0x2bf   : > { %v3010_v48 = vsel %vm6387_vm6, %v2718_v41, %v3009_v37  ;;  %v3018_v37 = vld [vmem:[%s5482_s4 + $0xa] sm:$0x1] }
 0x2c0   : > { %3011 = vst [vmem:[%s5482_s4 + $0x4] sm:$0x1] %v3010_v48  ;;  %v2720_v4 = vpop.permute.xlu1 %2719  ;;  %3331 = vrot.lane.b32.xlu0 %v5604_v9, %s4931_s5 }
 0x2c1   : > { %v3013_v63 = vsel %vm6387_vm6, %v2720_v4, %v3012_v15  ;;  %v3033_v15 = vld [vmem:[%s5482_s4 + $0x14] sm:$0x1] }
 0x2c2   : > { %3014 = vst [vmem:[%s5482_s4 + $0x6] sm:$0x1] %v3013_v63  ;;  %3333 = vrot.lane.b32.xlu1 %v5625_v24, %s4931_s5  ;;  %v2722_v54 = vpop.permute.xlu0 %2721 }
 0x2c3   : > { %v3016_v20 = vsel %vm6387_vm6, %v2722_v54, %v3015_v45  ;;  %v3036_v45 = vld [vmem:[%s5482_s4 + $0x16] sm:$0x1] }
 0x2c4   : > { %3017 = vst [vmem:[%s5482_s4 + $0x8] sm:$0x1] %v3016_v20  ;;  %v2724_v41 = vpop.permute.xlu1 %2723  ;;  %3343 = vrot.lane.b32.xlu0 %v5616_v3, %s4931_s5 }
 0x2c5   : > { %v3019_v48 = vsel %vm6387_vm6, %v2724_v41, %v3018_v37  ;;  %v3039_v37 = vld [vmem:[%s5482_s4 + $0x18] sm:$0x1] }
 0x2c6   : > { %3020 = vst [vmem:[%s5482_s4 + $0xa] sm:$0x1] %v3019_v48  ;;  %3345 = vrot.lane.b32.xlu1 %v5636_v8, %s4931_s5  ;;  %v2734_v4 = vpop.permute.xlu0 %2733 }
 0x2c7   : > { %v3034_v63 = vsel %vm6387_vm6, %v2734_v4, %v3033_v15  ;;  %v3042_v15 = vld [vmem:[%s5482_s4 + $0x1a] sm:$0x1] }
 0x2c8   : > { %3035 = vst [vmem:[%s5482_s4 + $0x14] sm:$0x1] %v3034_v63  ;;  %v2736_v54 = vpop.permute.xlu1 %2735  ;;  %3347 = vrot.lane.b32.xlu0 %v5654_v5, %s4931_s5 }
 0x2c9   : > { %v3037_v20 = vsel %vm6387_vm6, %v2736_v54, %v3036_v45  ;;  %v3057_v45 = vld [vmem:[%s5482_s4 + $0x24] sm:$0x1] }
 0x2ca   : > { %3038 = vst [vmem:[%s5482_s4 + $0x16] sm:$0x1] %v3037_v20  ;;  %3349 = vrot.lane.b32.xlu1 %v5668_v6, %s4931_s5  ;;  %v2738_v41 = vpop.permute.xlu0 %2737 }
 0x2cb   : > { %v3040_v48 = vsel %vm6387_vm6, %v2738_v41, %v3039_v37  ;;  %v3060_v37 = vld [vmem:[%s5482_s4 + $0x26] sm:$0x1] }
 0x2cc   : > { %3041 = vst [vmem:[%s5482_s4 + $0x18] sm:$0x1] %v3040_v48  ;;  %v2740_v4 = vpop.permute.xlu1 %2739  ;;  %3359 = vrot.lane.b32.xlu0 %v5639_v0, %s4931_s5 }
 0x2cd   : > { %v3043_v63 = vsel %vm6387_vm6, %v2740_v4, %v3042_v15  ;;  %v3063_v15 = vld [vmem:[%s5482_s4 + $0x28] sm:$0x1] }
 0x2ce   : > { %3044 = vst [vmem:[%s5482_s4 + $0x1a] sm:$0x1] %v3043_v63  ;;  %3361 = vrot.lane.b32.xlu1 %v5657_v11, %s4931_s5  ;;  %v2750_v54 = vpop.permute.xlu0 %2749 }
 0x2cf   : > { %v3058_v20 = vsel %vm6387_vm6, %v2750_v54, %v3057_v45  ;;  %v3066_v45 = vld [vmem:[%s5482_s4 + $0x2a] sm:$0x1] }
 0x2d0   : > { %3059 = vst [vmem:[%s5482_s4 + $0x24] sm:$0x1] %v3058_v20  ;;  %v2752_v41 = vpop.permute.xlu1 %2751  ;;  %3363 = vrot.lane.b32.xlu0 %v5689_v47, %s4931_s5 }
 0x2d1   : > { %v3061_v48 = vsel %vm6387_vm6, %v2752_v41, %v3060_v37  ;;  %v3081_v37 = vld [vmem:[%s5482_s4 + $0x34] sm:$0x1] }
 0x2d2   : > { %3062 = vst [vmem:[%s5482_s4 + $0x26] sm:$0x1] %v3061_v48  ;;  %3365 = vrot.lane.b32.xlu1 %v5698_v1, %s4931_s5  ;;  %v2754_v4 = vpop.permute.xlu0 %2753 }
 0x2d3   : > { %v3064_v63 = vsel %vm6387_vm6, %v2754_v4, %v3063_v15  ;;  %v3084_v15 = vld [vmem:[%s5482_s4 + $0x36] sm:$0x1] }
 0x2d4   : > { %3065 = vst [vmem:[%s5482_s4 + $0x28] sm:$0x1] %v3064_v63  ;;  %v2756_v54 = vpop.permute.xlu1 %2755  ;;  %3375 = vrot.lane.b32.xlu0 %v5692_v50, %s4931_s5 }
 0x2d5   : > { %v3067_v20 = vsel %vm6387_vm6, %v2756_v54, %v3066_v45  ;;  %v3087_v45 = vld [vmem:[%s5482_s4 + $0x38] sm:$0x1] }
 0x2d6   : > { %3068 = vst [vmem:[%s5482_s4 + $0x2a] sm:$0x1] %v3067_v20  ;;  %3377 = vrot.lane.b32.xlu1 %v5710_v33, %s4931_s5  ;;  %v2766_v41 = vpop.permute.xlu0 %2765 }
 0x2d7   : > { %v3082_v48 = vsel %vm6387_vm6, %v2766_v41, %v3081_v37  ;;  %v3090_v37 = vld [vmem:[%s5482_s4 + $0x3a] sm:$0x1] }
 0x2d8   : > { %3083 = vst [vmem:[%s5482_s4 + $0x34] sm:$0x1] %v3082_v48  ;;  %v2768_v4 = vpop.permute.xlu1 %2767  ;;  %3379 = vrot.lane.b32.xlu0 %v5734_v56, %s4931_s5 }
 0x2d9   : > { %v3085_v63 = vsel %vm6387_vm6, %v2768_v4, %v3084_v15  ;;  %v3105_v15 = vld [vmem:[%s5482_s4 + $0x44] sm:$0x1] }
 0x2da   : > { %3086 = vst [vmem:[%s5482_s4 + $0x36] sm:$0x1] %v3085_v63  ;;  %3381 = vrot.lane.b32.xlu1 %v5754_v25, %s4931_s5  ;;  %v2770_v54 = vpop.permute.xlu0 %2769 }
 0x2db   : > { %v3088_v20 = vsel %vm6387_vm6, %v2770_v54, %v3087_v45  ;;  %v3108_v45 = vld [vmem:[%s5482_s4 + $0x46] sm:$0x1] }
 0x2dc   : > { %3089 = vst [vmem:[%s5482_s4 + $0x38] sm:$0x1] %v3088_v20  ;;  %v2772_v41 = vpop.permute.xlu1 %2771  ;;  %3391 = vrot.lane.b32.xlu0 %v5721_v31, %s4931_s5 }
 0x2dd   : > { %v3091_v48 = vsel %vm6387_vm6, %v2772_v41, %v3090_v37  ;;  %v3111_v37 = vld [vmem:[%s5482_s4 + $0x48] sm:$0x1] }
 0x2de   : > { %3092 = vst [vmem:[%s5482_s4 + $0x3a] sm:$0x1] %v3091_v48  ;;  %3393 = vrot.lane.b32.xlu1 %v5742_v7, %s4931_s5  ;;  %v2782_v4 = vpop.permute.xlu0 %2781 }
 0x2df   : > { %v3106_v63 = vsel %vm6387_vm6, %v2782_v4, %v3105_v15  ;;  %v3114_v15 = vld [vmem:[%s5482_s4 + $0x4a] sm:$0x1] }
 0x2e0   : > { %3107 = vst [vmem:[%s5482_s4 + $0x44] sm:$0x1] %v3106_v63  ;;  %v2784_v54 = vpop.permute.xlu1 %2783  ;;  %3395 = vrot.lane.b32.xlu0 %v5773_v53, %s4931_s5 }
 0x2e1   : > { %v3109_v20 = vsel %vm6387_vm6, %v2784_v54, %v3108_v45  ;;  %v3129_v45 = vld [vmem:[%s5482_s4 + $0x54] sm:$0x1] }
 0x2e2   : > { %3110 = vst [vmem:[%s5482_s4 + $0x46] sm:$0x1] %v3109_v20  ;;  %3397 = vrot.lane.b32.xlu1 %v5784_v38, %s4931_s5  ;;  %v2786_v41 = vpop.permute.xlu0 %2785  ;;  %v3645_v38 = vld [vmem:[%s5482_s4 + $0x2a] sm:$0x2] }
 0x2e3   : > { %v3112_v48 = vsel %vm6387_vm6, %v2786_v41, %v3111_v37  ;;  %v3132_v37 = vld [vmem:[%s5482_s4 + $0x56] sm:$0x1] }
 0x2e4   : > { %3113 = vst [vmem:[%s5482_s4 + $0x48] sm:$0x1] %v3112_v48  ;;  %v2788_v4 = vpop.permute.xlu1 %2787  ;;  %3407 = vrot.lane.b32.xlu0 %v8307_v60, %s4931_s5  ;;  %v3642_v60 = vld [vmem:[%s5482_s4 + $0x28] sm:$0x2] }
 0x2e5   : > { %v3115_v63 = vsel %vm6387_vm6, %v2788_v4, %v3114_v15  ;;  %v3135_v15 = vld [vmem:[%s5482_s4 + $0x58] sm:$0x1] }
 0x2e6   : > { %3116 = vst [vmem:[%s5482_s4 + $0x4a] sm:$0x1] %v3115_v63  ;;  %3409 = vrot.lane.b32.xlu1 %v8308_v23, %s4931_s5  ;;  %v2798_v54 = vpop.permute.xlu0 %2797  ;;  %v3639_v23 = vld [vmem:[%s5482_s4 + $0x26] sm:$0x2] }
 0x2e7   : > { %v3130_v20 = vsel %vm6387_vm6, %v2798_v54, %v3129_v45  ;;  %v3138_v45 = vld [vmem:[%s5482_s4 + $0x5a] sm:$0x1] }
 0x2e8   : > { %3131 = vst [vmem:[%s5482_s4 + $0x54] sm:$0x1] %v3130_v20  ;;  %v2800_v41 = vpop.permute.xlu1 %2799  ;;  %3411 = vrot.lane.b32.xlu0 %v8309_v46, %s4931_s5  ;;  %v3636_v46 = vld [vmem:[%s5482_s4 + $0x24] sm:$0x2] }
 0x2e9   : > { %v3133_v48 = vsel %vm6387_vm6, %v2800_v41, %v3132_v37  ;;  %v3153_v37 = vld [vmem:[%s5482_s4 + $0x64] sm:$0x1] }
 0x2ea   : > { %3134 = vst [vmem:[%s5482_s4 + $0x56] sm:$0x1] %v3133_v48  ;;  %3413 = vrot.lane.b32.xlu1 %v8310_v43, %s4931_s5  ;;  %v2802_v4 = vpop.permute.xlu0 %2801  ;;  %v3621_v43 = vld [vmem:[%s5482_s4 + $0x1a] sm:$0x2] }
 0x2eb   : > { %v3136_v63 = vsel %vm6387_vm6, %v2802_v4, %v3135_v15  ;;  %v3156_v15 = vld [vmem:[%s5482_s4 + $0x66] sm:$0x1] }
 0x2ec   : > { %3137 = vst [vmem:[%s5482_s4 + $0x58] sm:$0x1] %v3136_v63  ;;  %v2804_v54 = vpop.permute.xlu1 %2803  ;;  %3423 = vrot.lane.b32.xlu0 %v8311_v30, %s4931_s5  ;;  %v3618_v30 = vld [vmem:[%s5482_s4 + $0x18] sm:$0x2] }
 0x2ed   : > { %v3139_v20 = vsel %vm6387_vm6, %v2804_v54, %v3138_v45  ;;  %v3159_v45 = vld [vmem:[%s5482_s4 + $0x68] sm:$0x1] }
 0x2ee   : > { %3140 = vst [vmem:[%s5482_s4 + $0x5a] sm:$0x1] %v3139_v20  ;;  %3425 = vrot.lane.b32.xlu1 %v8312_v27, %s4931_s5  ;;  %v2814_v41 = vpop.permute.xlu0 %2813  ;;  %v3615_v27 = vld [vmem:[%s5482_s4 + $0x16] sm:$0x2] }
 0x2ef   : > { %v3154_v48 = vsel %vm6387_vm6, %v2814_v41, %v3153_v37  ;;  %v3162_v37 = vld [vmem:[%s5482_s4 + $0x6a] sm:$0x1] }
 0x2f0   : > { %3155 = vst [vmem:[%s5482_s4 + $0x64] sm:$0x1] %v3154_v48  ;;  %v2816_v4 = vpop.permute.xlu1 %2815  ;;  %3427 = vrot.lane.b32.xlu0 %v8313_v62, %s4931_s5  ;;  %v3612_v62 = vld [vmem:[%s5482_s4 + $0x14] sm:$0x2] }
 0x2f1   : > { %v3157_v63 = vsel %vm6387_vm6, %v2816_v4, %v3156_v15  ;;  %v3177_v15 = vld [vmem:[%s5482_s4 + $0x74] sm:$0x1] }
 0x2f2   : > { %3158 = vst [vmem:[%s5482_s4 + $0x66] sm:$0x1] %v3157_v63  ;;  %3429 = vrot.lane.b32.xlu1 %v8316_v21, %s4931_s5  ;;  %v2818_v54 = vpop.permute.xlu0 %2817  ;;  %v3597_v21 = vld [vmem:[%s5482_s4 + $0xa] sm:$0x2] }
 0x2f3   : > { %v3160_v20 = vsel %vm6387_vm6, %v2818_v54, %v3159_v45  ;;  %v3180_v45 = vld [vmem:[%s5482_s4 + $0x76] sm:$0x1] }
 0x2f4   : > { %3161 = vst [vmem:[%s5482_s4 + $0x68] sm:$0x1] %v3160_v20  ;;  %v2820_v41 = vpop.permute.xlu1 %2819  ;;  %3439 = vrot.lane.b32.xlu0 %v8317_v57, %s4931_s5  ;;  %v3594_v57 = vld [vmem:[%s5482_s4 + $0x8] sm:$0x2] }
 0x2f5   : > { %v3163_v48 = vsel %vm6387_vm6, %v2820_v41, %v3162_v37  ;;  %v3183_v37 = vld [vmem:[%s5482_s4 + $0x78] sm:$0x1] }
 0x2f6   : > { %3164 = vst [vmem:[%s5482_s4 + $0x6a] sm:$0x1] %v3163_v48  ;;  %3441 = vrot.lane.b32.xlu1 %v8318_v34, %s4931_s5  ;;  %v2830_v4 = vpop.permute.xlu0 %2829  ;;  %v8336_v34 = vld [vmem:[#allocation4_spill] sm:$0xff] }
 0x2f7   : > { %v3178_v63 = vsel %vm6387_vm6, %v2830_v4, %v3177_v15  ;;  %v3186_v15 = vld [vmem:[%s5482_s4 + $0x7a] sm:$0x1] }
 0x2f8   : > { %3179 = vst [vmem:[%s5482_s4 + $0x74] sm:$0x1] %v3178_v63  ;;  %v2832_v54 = vpop.permute.xlu1 %2831  ;;  %3443 = vrot.lane.b32.xlu0 %v8319_v26, %s4931_s5 }
 0x2f9   : > { %v3181_v20 = vsel %vm6387_vm6, %v2832_v54, %v3180_v45  ;;  %v3201_v45 = vld [vmem:[%s5482_s4 + $0x84] sm:$0x1] }
 0x2fa   : > { %3182 = vst [vmem:[%s5482_s4 + $0x76] sm:$0x1] %v3181_v20  ;;  %3445 = vrot.lane.b32.xlu1 %v8320_v16, %s4931_s5  ;;  %v2834_v41 = vpop.permute.xlu0 %2833  ;;  %v8334_v16 = vld [vmem:[#allocation5_spill] sm:$0xff] }
 0x2fb   : > { %v3184_v48 = vsel %vm6387_vm6, %v2834_v41, %v3183_v37  ;;  %v3204_v37 = vld [vmem:[%s5482_s4 + $0x86] sm:$0x1] }
 0x2fc   : > { %3185 = vst [vmem:[%s5482_s4 + $0x78] sm:$0x1] %v3184_v48  ;;  %v2836_v4 = vpop.permute.xlu1 %2835  ;;  %3455 = vrot.lane.b32.xlu0 %v8321_v58, %s4931_s5 }
 0x2fd   : > { %v3187_v63 = vsel %vm6387_vm6, %v2836_v4, %v3186_v15  ;;  %v3207_v15 = vld [vmem:[%s5482_s4 + $0x88] sm:$0x1] }
 0x2fe   : > { %3188 = vst [vmem:[%s5482_s4 + $0x7a] sm:$0x1] %v3187_v63  ;;  %3457 = vrot.lane.b32.xlu1 %v8322_v36, %s4931_s5  ;;  %v2846_v54 = vpop.permute.xlu0 %2845  ;;  %v8332_v36 = vld [vmem:[#allocation2_spill] sm:$0xff] }
 0x2ff   : > { %v3202_v20 = vsel %vm6387_vm6, %v2846_v54, %v3201_v45  ;;  %v3210_v45 = vld [vmem:[%s5482_s4 + $0x8a] sm:$0x1] }
 0x300   : > { %3203 = vst [vmem:[%s5482_s4 + $0x84] sm:$0x1] %v3202_v20  ;;  %v2848_v41 = vpop.permute.xlu1 %2847  ;;  %3459 = vrot.lane.b32.xlu0 %v8323_v10, %s4931_s5  ;;  %v8329_v20 = vld [vmem:[#allocation43_spill] sm:$0xff]  ;;  %v8331_v10 = vld [vmem:[#allocation9_spill] sm:$0xff] }
 0x301   : > { %v3205_v48 = vsel %vm6387_vm6, %v2848_v41, %v3204_v37  ;;  %v8330_v41 = vld [vmem:[#allocation10_spill] sm:$0xff] }
 0x302   : > { %3206 = vst [vmem:[%s5482_s4 + $0x86] sm:$0x1] %v3205_v48  ;;  %3461 = vrot.lane.b32.xlu1 %v8324_v61, %s4931_s5  ;;  %v2850_v4 = vpop.permute.xlu0 %2849  ;;  %v3225_v48 = vld [vmem:[%s5482_s4 + $0x94] sm:$0x1] }
 0x303   : > { %v3208_v63 = vsel %vm6387_vm6, %v2850_v4, %v3207_v15  ;;  %v3228_v4 = vld [vmem:[%s5482_s4 + $0x96] sm:$0x1] }
 0x304   : > { %3209 = vst [vmem:[%s5482_s4 + $0x88] sm:$0x1] %v3208_v63  ;;  %v2852_v54 = vpop.permute.xlu1 %2851  ;;  %2725 = vrot.lane.b32.xlu0 %v8329_v20, %s4924_s25 }
 0x305   : > { %v3211_v37 = vsel %vm6387_vm6, %v2852_v54, %v3210_v45  ;;  %v3231_v54 = vld [vmem:[%s5482_s4 + $0x98] sm:$0x1] }
 0x306   : > { %3212 = vst [vmem:[%s5482_s4 + $0x8a] sm:$0x1] %v3211_v37  ;;  %2727 = vrot.lane.b32.xlu1 %v8330_v41, %s4924_s25  ;;  %v2862_v61 = vpop.permute.xlu0 %2861 }
 0x307   : > { %v3226_v15 = vsel %vm6387_vm6, %v2862_v61, %v3225_v48  ;;  %v3234_v48 = vld [vmem:[%s5482_s4 + $0x9a] sm:$0x1] }
 0x308   : > { %3227 = vst [vmem:[%s5482_s4 + $0x94] sm:$0x1] %v3226_v15  ;;  %v2864_v63 = vpop.permute.xlu1 %2863  ;;  %2741 = vrot.lane.b32.xlu0 %v8331_v10, %s4924_s25 }
 0x309   : > { %v3229_v45 = vsel %vm6387_vm6, %v2864_v63, %v3228_v4  ;;  %v3249_v63 = vld [vmem:[%s5482_s4 + $0xa4] sm:$0x1] }
 0x30a   : > { %3230 = vst [vmem:[%s5482_s4 + $0x96] sm:$0x1] %v3229_v45  ;;  %2743 = vrot.lane.b32.xlu1 %v6132_v19, %s4924_s25  ;;  %v2866_v37 = vpop.permute.xlu0 %2865 }
 0x30b   : > { %v3232_v61 = vsel %vm6387_vm6, %v2866_v37, %v3231_v54 }
 0x30c   : > { %3233 = vst [vmem:[%s5482_s4 + $0x98] sm:$0x1] %v3232_v61  ;;  %v2868_v15 = vpop.permute.xlu1 %2867  ;;  %2757 = vrot.lane.b32.xlu0 %v6123_v59, %s4924_s25  ;;  %v3252_v61 = vld [vmem:[%s5482_s4 + $0xa6] sm:$0x1] }
 0x30d   : > { %v3235_v4 = vsel %vm6387_vm6, %v2868_v15, %v3234_v48  ;;  %v3255_v15 = vld [vmem:[%s5482_s4 + $0xa8] sm:$0x1] }
 0x30e   : > { %3236 = vst [vmem:[%s5482_s4 + $0x9a] sm:$0x1] %v3235_v4  ;;  %2759 = vrot.lane.b32.xlu1 %v6140_v18, %s4924_s25  ;;  %v2878_v45 = vpop.permute.xlu0 %2877 }
 0x30f   : > { %v3250_v54 = vsel %vm6387_vm6, %v2878_v45, %v3249_v63  ;;  %v3258_v45 = vld [vmem:[%s5482_s4 + $0xaa] sm:$0x1] }
 0x310   : > { %3251 = vst [vmem:[%s5482_s4 + $0xa4] sm:$0x1] %v3250_v54  ;;  %v2880_v37 = vpop.permute.xlu1 %2879  ;;  %2773 = vrot.lane.b32.xlu0 %v6153_v39, %s4924_s25 }
 0x311   : > { %v3253_v48 = vsel %vm6387_vm6, %v2880_v37, %v3252_v61  ;;  %v3273_v61 = vld [vmem:[%s5482_s4 + $0xb4] sm:$0x1] }
 0x312   : > { %3254 = vst [vmem:[%s5482_s4 + $0xa6] sm:$0x1] %v3253_v48  ;;  %2775 = vrot.lane.b32.xlu1 %v6166_v13, %s4924_s25  ;;  %v2882_v4 = vpop.permute.xlu0 %2881 }
 0x313   : > { %v3256_v63 = vsel %vm6387_vm6, %v2882_v4, %v3255_v15  ;;  %v3276_v4 = vld [vmem:[%s5482_s4 + $0xb6] sm:$0x1] }
 0x314   : > { %3257 = vst [vmem:[%s5482_s4 + $0xa8] sm:$0x1] %v3256_v63  ;;  %v2884_v54 = vpop.permute.xlu1 %2883  ;;  %2789 = vrot.lane.b32.xlu0 %v6169_v42, %s4924_s25 }
 0x315   : > { %v3259_v37 = vsel %vm6387_vm6, %v2884_v54, %v3258_v45  ;;  %v8333_v54 = vld [vmem:[#allocation3_spill] sm:$0xff] }
 0x316   : > { %3260 = vst [vmem:[%s5482_s4 + $0xaa] sm:$0x1] %v3259_v37  ;;  %2791 = vrot.lane.b32.xlu1 %v6185_v51, %s4924_s25  ;;  %v2894_v48 = vpop.permute.xlu0 %2893  ;;  %v3279_v37 = vld [vmem:[%s5482_s4 + $0xb8] sm:$0x1] }
 0x317   : > { %v3274_v15 = vsel %vm6387_vm6, %v2894_v48, %v3273_v61  ;;  %v3282_v48 = vld [vmem:[%s5482_s4 + $0xba] sm:$0x1] }
 0x318   : > { %3275 = vst [vmem:[%s5482_s4 + $0xb4] sm:$0x1] %v3274_v15  ;;  %v2896_v63 = vpop.permute.xlu1 %2895  ;;  %2805 = vrot.lane.b32.xlu0 %v8332_v36, %s4924_s25 }
 0x319   : > { %v3277_v45 = vsel %vm6387_vm6, %v2896_v63, %v3276_v4  ;;  %v3588_v4 = vld [vmem:[%s5482_s4 + $0x4] sm:$0x2] }
 0x31a   : > { %3278 = vst [vmem:[%s5482_s4 + $0xb6] sm:$0x1] %v3277_v45  ;;  %2807 = vrot.lane.b32.xlu1 %v8333_v54, %s4924_s25  ;;  %v2898_v58 = vpop.permute.xlu0 %2897  ;;  %v8335_v45 = vld [vmem:[#allocation6_spill] sm:$0xff] }
 0x31b   : > { %v3280_v61 = vsel %vm6387_vm6, %v2898_v58, %v3279_v37  ;;  %v3591_v58 = vld [vmem:[%s5482_s4 + $0x6] sm:$0x2] }
 0x31c   : > { %3281 = vst [vmem:[%s5482_s4 + $0xb8] sm:$0x1] %v3280_v61  ;;  %v2900_v15 = vpop.permute.xlu1 %2899  ;;  %2821 = vrot.lane.b32.xlu0 %v8334_v16, %s4924_s25 }
 0x31d   : > { %v3283_v63 = vsel %vm6387_vm6, %v2900_v15, %v3282_v48  ;;  %v8337_v15 = vld [vmem:[#allocation12_spill] sm:$0xff] }
 0x31e   : > { %3284 = vst [vmem:[%s5482_s4 + $0xba] sm:$0x1] %v3283_v63  ;;  %2823 = vrot.lane.b32.xlu1 %v8335_v45, %s4924_s25  ;;  %v3296_v26 = vpop.permute.xlu0 %3295 }
 0x31f   : > { %v3589_v37 = vsel %vm6533_vm9, %v3296_v26, %v3588_v4 }
 0x320   : > { %3590 = vst [vmem:[%s5482_s4 + $0x4] sm:$0x2] %v3589_v37  ;;  %v3298_v61 = vpop.permute.xlu1 %3297  ;;  %2837 = vrot.lane.b32.xlu0 %v8336_v34, %s4924_s25  ;;  %v8338_v37 = vld [vmem:[#allocation7_spill] sm:$0xff] }
 0x321   : > { %v3592_v48 = vsel %vm6533_vm9, %v3298_v61, %v3591_v58  ;;  %v8339_v61 = vld [vmem:[#allocation17_spill] sm:$0xff] }
 0x322   : > { %3593 = vst [vmem:[%s5482_s4 + $0x6] sm:$0x2] %v3592_v48  ;;  %2839 = vrot.lane.b32.xlu1 %v8337_v15, %s4924_s25  ;;  %v3300_v63 = vpop.permute.xlu0 %3299 }
 0x323   : > { %v3595_v26 = vsel %vm6533_vm9, %v3300_v63, %v3594_v57 }
 0x324   : > { %3596 = vst [vmem:[%s5482_s4 + $0x8] sm:$0x2] %v3595_v26  ;;  %v3302_v4 = vpop.permute.xlu1 %3301  ;;  %2853 = vrot.lane.b32.xlu0 %v8338_v37, %s4924_s25  ;;  %v8340_v26 = vld [vmem:[#allocation15_spill] sm:$0xff] }
 0x325   : > { %v3598_v58 = vsel %vm6533_vm9, %v3302_v4, %v3597_v21  ;;  %v8341_v4 = vld [vmem:[#allocation16_spill] sm:$0xff] }
 0x326   : > { %3599 = vst [vmem:[%s5482_s4 + $0xa] sm:$0x2] %v3598_v58  ;;  %2855 = vrot.lane.b32.xlu1 %v8339_v61, %s4924_s25  ;;  %v3312_v48 = vpop.permute.xlu0 %3311 }
 0x327   : > { %v3613_v57 = vsel %vm6533_vm9, %v3312_v48, %v3612_v62 }
 0x328   : > { %3614 = vst [vmem:[%s5482_s4 + $0x14] sm:$0x2] %v3613_v57  ;;  %v3314_v63 = vpop.permute.xlu1 %3313  ;;  %2869 = vrot.lane.b32.xlu0 %v8340_v26, %s4924_s25  ;;  %v8342_v57 = vld [vmem:[#allocation65_spill] sm:$0xff] }
 0x329   : > { %v3616_v21 = vsel %vm6533_vm9, %v3314_v63, %v3615_v27  ;;  %v8343_v63 = vld [vmem:[#allocation67_spill] sm:$0xff] }
 0x32a   : > { %3617 = vst [vmem:[%s5482_s4 + $0x16] sm:$0x2] %v3616_v21  ;;  %2871 = vrot.lane.b32.xlu1 %v8341_v4, %s4924_s25  ;;  %v3316_v58 = vpop.permute.xlu0 %3315 }
 0x32b   : > { %v3619_v62 = vsel %vm6533_vm9, %v3316_v58, %v3618_v30 }
 0x32c   : > { %3620 = vst [vmem:[%s5482_s4 + $0x18] sm:$0x2] %v3619_v62  ;;  %v3318_v48 = vpop.permute.xlu1 %3317  ;;  %2885 = vrot.lane.b32.xlu0 %v8342_v57, %s4924_s25  ;;  %v8344_v62 = vld [vmem:[#allocation66_spill] sm:$0xff] }
 0x32d   : > { %v3622_v27 = vsel %vm6533_vm9, %v3318_v48, %v3621_v43  ;;  %v8345_v48 = vld [vmem:[#allocation68_spill] sm:$0xff] }
 0x32e   : > { %3623 = vst [vmem:[%s5482_s4 + $0x1a] sm:$0x2] %v3622_v27  ;;  %2887 = vrot.lane.b32.xlu1 %v8343_v63, %s4924_s25  ;;  %v3328_v21 = vpop.permute.xlu0 %3327 }
 0x32f   : > { %v3637_v30 = vsel %vm6533_vm9, %v3328_v21, %v3636_v46 }
 0x330   : > { %3638 = vst [vmem:[%s5482_s4 + $0x24] sm:$0x2] %v3637_v30  ;;  %v3330_v58 = vpop.permute.xlu1 %3329  ;;  %2901 = vrot.lane.b32.xlu0 %v8344_v62, %s4924_s25  ;;  %v3660_v30 = vld [vmem:[%s5482_s4 + $0x34] sm:$0x2] }
 0x331   : > { %v3640_v43 = vsel %vm6533_vm9, %v3330_v58, %v3639_v23 }
 0x332   : > { %3641 = vst [vmem:[%s5482_s4 + $0x26] sm:$0x2] %v3640_v43  ;;  %2903 = vrot.lane.b32.xlu1 %v8345_v48, %s4924_s25  ;;  %v3332_v27 = vpop.permute.xlu0 %3331  ;;  %v3663_v43 = vld [vmem:[%s5482_s4 + $0x36] sm:$0x2]  ;;  %s4932_s25 = smov 113  }
 0x333   : > { %v3643_v46 = vsel %vm6533_vm9, %v3332_v27, %v3642_v60 }
 0x334   : > { %3644 = vst [vmem:[%s5482_s4 + $0x28] sm:$0x2] %v3643_v46  ;;  %v3334_v21 = vpop.permute.xlu1 %3333  ;;  %3303 = vrot.lane.b32.xlu0 %v8329_v20, %s4931_s5  ;;  %v3666_v46 = vld [vmem:[%s5482_s4 + $0x38] sm:$0x2] }
 0x335   : > { %v3646_v23 = vsel %vm6533_vm9, %v3334_v21, %v3645_v38 }
 0x336   : > { %3647 = vst [vmem:[%s5482_s4 + $0x2a] sm:$0x2] %v3646_v23  ;;  %3305 = vrot.lane.b32.xlu1 %v8330_v41, %s4931_s5  ;;  %v3344_v58 = vpop.permute.xlu0 %3343  ;;  %v3669_v23 = vld [vmem:[%s5482_s4 + $0x3a] sm:$0x2] }
 0x337   : > { %v3661_v60 = vsel %vm6533_vm9, %v3344_v58, %v3660_v30 }
 0x338   : > { %3662 = vst [vmem:[%s5482_s4 + $0x34] sm:$0x2] %v3661_v60  ;;  %v3346_v27 = vpop.permute.xlu1 %3345  ;;  %3319 = vrot.lane.b32.xlu0 %v8331_v10, %s4931_s5  ;;  %v3684_v60 = vld [vmem:[%s5482_s4 + $0x44] sm:$0x2] }
 0x339   : > { %v3664_v38 = vsel %vm6533_vm9, %v3346_v27, %v3663_v43 }
 0x33a   : > { %3665 = vst [vmem:[%s5482_s4 + $0x36] sm:$0x2] %v3664_v38  ;;  %3321 = vrot.lane.b32.xlu1 %v6132_v19, %s4931_s5  ;;  %v3348_v21 = vpop.permute.xlu0 %3347  ;;  %v3687_v38 = vld [vmem:[%s5482_s4 + $0x46] sm:$0x2] }
 0x33b   : > { %v3667_v30 = vsel %vm6533_vm9, %v3348_v21, %v3666_v46 }
 0x33c   : > { %3668 = vst [vmem:[%s5482_s4 + $0x38] sm:$0x2] %v3667_v30  ;;  %v3350_v58 = vpop.permute.xlu1 %3349  ;;  %3335 = vrot.lane.b32.xlu0 %v6123_v59, %s4931_s5  ;;  %v3690_v30 = vld [vmem:[%s5482_s4 + $0x48] sm:$0x2] }
 0x33d   : > { %v3670_v43 = vsel %vm6533_vm9, %v3350_v58, %v3669_v23 }
 0x33e   : > { %3671 = vst [vmem:[%s5482_s4 + $0x3a] sm:$0x2] %v3670_v43  ;;  %3337 = vrot.lane.b32.xlu1 %v6140_v18, %s4931_s5  ;;  %v3360_v27 = vpop.permute.xlu0 %3359  ;;  %v3693_v43 = vld [vmem:[%s5482_s4 + $0x4a] sm:$0x2] }
 0x33f   : > { %v3685_v46 = vsel %vm6533_vm9, %v3360_v27, %v3684_v60 }
 0x340   : > { %3686 = vst [vmem:[%s5482_s4 + $0x44] sm:$0x2] %v3685_v46  ;;  %v3362_v21 = vpop.permute.xlu1 %3361  ;;  %3351 = vrot.lane.b32.xlu0 %v6153_v39, %s4931_s5  ;;  %v3708_v46 = vld [vmem:[%s5482_s4 + $0x54] sm:$0x2] }
 0x341   : > { %v3688_v23 = vsel %vm6533_vm9, %v3362_v21, %v3687_v38 }
 0x342   : > { %3689 = vst [vmem:[%s5482_s4 + $0x46] sm:$0x2] %v3688_v23  ;;  %3353 = vrot.lane.b32.xlu1 %v6166_v13, %s4931_s5  ;;  %v3364_v58 = vpop.permute.xlu0 %3363  ;;  %v3711_v23 = vld [vmem:[%s5482_s4 + $0x56] sm:$0x2] }
 0x343   : > { %v3691_v60 = vsel %vm6533_vm9, %v3364_v58, %v3690_v30 }
 0x344   : > { %3692 = vst [vmem:[%s5482_s4 + $0x48] sm:$0x2] %v3691_v60  ;;  %v3366_v27 = vpop.permute.xlu1 %3365  ;;  %3367 = vrot.lane.b32.xlu0 %v6169_v42, %s4931_s5  ;;  %v3714_v60 = vld [vmem:[%s5482_s4 + $0x58] sm:$0x2] }
 0x345   : > { %v3694_v38 = vsel %vm6533_vm9, %v3366_v27, %v3693_v43 }
 0x346   : > { %3695 = vst [vmem:[%s5482_s4 + $0x4a] sm:$0x2] %v3694_v38  ;;  %3369 = vrot.lane.b32.xlu1 %v6185_v51, %s4931_s5  ;;  %v3376_v21 = vpop.permute.xlu0 %3375  ;;  %v3717_v38 = vld [vmem:[%s5482_s4 + $0x5a] sm:$0x2] }
 0x347   : > { %v3709_v30 = vsel %vm6533_vm9, %v3376_v21, %v3708_v46 }
 0x348   : > { %3710 = vst [vmem:[%s5482_s4 + $0x54] sm:$0x2] %v3709_v30  ;;  %v3378_v58 = vpop.permute.xlu1 %3377  ;;  %3383 = vrot.lane.b32.xlu0 %v8332_v36, %s4931_s5  ;;  %v3732_v30 = vld [vmem:[%s5482_s4 + $0x64] sm:$0x2] }
 0x349   : > { %v3712_v43 = vsel %vm6533_vm9, %v3378_v58, %v3711_v23 }
 0x34a   : > { %3713 = vst [vmem:[%s5482_s4 + $0x56] sm:$0x2] %v3712_v43  ;;  %3385 = vrot.lane.b32.xlu1 %v8333_v54, %s4931_s5  ;;  %v3380_v27 = vpop.permute.xlu0 %3379  ;;  %v3735_v43 = vld [vmem:[%s5482_s4 + $0x66] sm:$0x2] }
 0x34b   : > { %v3715_v46 = vsel %vm6533_vm9, %v3380_v27, %v3714_v60 }
 0x34c   : > { %3716 = vst [vmem:[%s5482_s4 + $0x58] sm:$0x2] %v3715_v46  ;;  %v3382_v21 = vpop.permute.xlu1 %3381  ;;  %3399 = vrot.lane.b32.xlu0 %v8334_v16, %s4931_s5  ;;  %v3738_v46 = vld [vmem:[%s5482_s4 + $0x68] sm:$0x2] }
 0x34d   : > { %v3718_v23 = vsel %vm6533_vm9, %v3382_v21, %v3717_v38 }
 0x34e   : > { %3719 = vst [vmem:[%s5482_s4 + $0x5a] sm:$0x2] %v3718_v23  ;;  %3401 = vrot.lane.b32.xlu1 %v8335_v45, %s4931_s5  ;;  %v3392_v58 = vpop.permute.xlu0 %3391  ;;  %v3741_v23 = vld [vmem:[%s5482_s4 + $0x6a] sm:$0x2] }
 0x34f   : > { %v3733_v60 = vsel %vm6533_vm9, %v3392_v58, %v3732_v30 }
 0x350   : > { %3734 = vst [vmem:[%s5482_s4 + $0x64] sm:$0x2] %v3733_v60  ;;  %v3394_v27 = vpop.permute.xlu1 %3393  ;;  %3415 = vrot.lane.b32.xlu0 %v8336_v34, %s4931_s5  ;;  %v3756_v60 = vld [vmem:[%s5482_s4 + $0x74] sm:$0x2] }
 0x351   : > { %v3736_v38 = vsel %vm6533_vm9, %v3394_v27, %v3735_v43 }
 0x352   : > { %3737 = vst [vmem:[%s5482_s4 + $0x66] sm:$0x2] %v3736_v38  ;;  %3417 = vrot.lane.b32.xlu1 %v8337_v15, %s4931_s5  ;;  %v3396_v21 = vpop.permute.xlu0 %3395  ;;  %v3759_v38 = vld [vmem:[%s5482_s4 + $0x76] sm:$0x2] }
 0x353   : > { %v3739_v30 = vsel %vm6533_vm9, %v3396_v21, %v3738_v46 }
 0x354   : > { %3740 = vst [vmem:[%s5482_s4 + $0x68] sm:$0x2] %v3739_v30  ;;  %v3398_v58 = vpop.permute.xlu1 %3397  ;;  %3431 = vrot.lane.b32.xlu0 %v8338_v37, %s4931_s5  ;;  %v3762_v30 = vld [vmem:[%s5482_s4 + $0x78] sm:$0x2] }
 0x355   : > { %v3742_v43 = vsel %vm6533_vm9, %v3398_v58, %v3741_v23 }
 0x356   : > { %3743 = vst [vmem:[%s5482_s4 + $0x6a] sm:$0x2] %v3742_v43  ;;  %3433 = vrot.lane.b32.xlu1 %v8339_v61, %s4931_s5  ;;  %v3408_v27 = vpop.permute.xlu0 %3407  ;;  %v3765_v43 = vld [vmem:[%s5482_s4 + $0x7a] sm:$0x2] }
 0x357   : > { %v3757_v46 = vsel %vm6533_vm9, %v3408_v27, %v3756_v60 }
 0x358   : > { %3758 = vst [vmem:[%s5482_s4 + $0x74] sm:$0x2] %v3757_v46  ;;  %v3410_v21 = vpop.permute.xlu1 %3409  ;;  %3447 = vrot.lane.b32.xlu0 %v8340_v26, %s4931_s5  ;;  %v3780_v46 = vld [vmem:[%s5482_s4 + $0x84] sm:$0x2] }
 0x359   : > { %v3760_v23 = vsel %vm6533_vm9, %v3410_v21, %v3759_v38 }
 0x35a   : > { %3761 = vst [vmem:[%s5482_s4 + $0x76] sm:$0x2] %v3760_v23  ;;  %3449 = vrot.lane.b32.xlu1 %v8341_v4, %s4931_s5  ;;  %v3412_v58 = vpop.permute.xlu0 %3411  ;;  %v3783_v23 = vld [vmem:[%s5482_s4 + $0x86] sm:$0x2] }
 0x35b   : > { %v3763_v60 = vsel %vm6533_vm9, %v3412_v58, %v3762_v30 }
 0x35c   : > { %3764 = vst [vmem:[%s5482_s4 + $0x78] sm:$0x2] %v3763_v60  ;;  %v3414_v27 = vpop.permute.xlu1 %3413  ;;  %3463 = vrot.lane.b32.xlu0 %v8342_v57, %s4931_s5  ;;  %v8346_v60 = vld [vmem:[#allocation36_spill] sm:$0xff]  ;;  %v3786_v57 = vld [vmem:[%s5482_s4 + $0x88] sm:$0x2] }
 0x35d   : > { %v3766_v38 = vsel %vm6533_vm9, %v3414_v27, %v3765_v43  ;;  %v8347_v27 = vld [vmem:[#allocation37_spill] sm:$0xff] }
 0x35e   : > { %3767 = vst [vmem:[%s5482_s4 + $0x7a] sm:$0x2] %v3766_v38  ;;  %3465 = vrot.lane.b32.xlu1 %v8343_v63, %s4931_s5  ;;  %v3424_v21 = vpop.permute.xlu0 %3423  ;;  %v3789_v63 = vld [vmem:[%s5482_s4 + $0x8a] sm:$0x2] }
 0x35f   : > { %v3781_v30 = vsel %vm6533_vm9, %v3424_v21, %v3780_v46 }
 0x360   : > { %3782 = vst [vmem:[%s5482_s4 + $0x84] sm:$0x2] %v3781_v30  ;;  %v3426_v58 = vpop.permute.xlu1 %3425  ;;  %3467 = vrot.lane.b32.xlu0 %v8346_v60, %s4931_s5  ;;  %v8348_v30 = vld [vmem:[#allocation60_spill] sm:$0xff] }
 0x361   : > { %v3784_v43 = vsel %vm6533_vm9, %v3426_v58, %v3783_v23  ;;  %v3804_v60 = vld [vmem:[%s5482_s4 + $0x94] sm:$0x2]  ;;  %v8349_v58 = vld [vmem:[#allocation41_spill] sm:$0xff] }
 0x362   : > { %3785 = vst [vmem:[%s5482_s4 + $0x86] sm:$0x2] %v3784_v43  ;;  %3469 = vrot.lane.b32.xlu1 %v8347_v27, %s4931_s5  ;;  %v3428_v38 = vpop.permute.xlu0 %3427  ;;  %v3807_v27 = vld [vmem:[%s5482_s4 + $0x96] sm:$0x2] }
 0x363   : > { %v3787_v46 = vsel %vm6533_vm9, %v3428_v38, %v3786_v57 }
 0x364   : > { %3788 = vst [vmem:[%s5482_s4 + $0x88] sm:$0x2] %v3787_v46  ;;  %v3430_v21 = vpop.permute.xlu1 %3429  ;;  %3471 = vrot.lane.b32.xlu0 %v8348_v30, %s4931_s5  ;;  %v3810_v46 = vld [vmem:[%s5482_s4 + $0x98] sm:$0x2] }
 0x365   : > { %v3790_v23 = vsel %vm6533_vm9, %v3430_v21, %v3789_v63 }
 0x366   : > { %3791 = vst [vmem:[%s5482_s4 + $0x8a] sm:$0x2] %v3790_v23  ;;  %3473 = vrot.lane.b32.xlu1 %v8349_v58, %s4931_s5  ;;  %v3440_v43 = vpop.permute.xlu0 %3439  ;;  %v3813_v23 = vld [vmem:[%s5482_s4 + $0x9a] sm:$0x2] }
 0x367   : > { %v3805_v57 = vsel %vm6533_vm9, %v3440_v43, %v3804_v60 }
 0x368   : > { %3806 = vst [vmem:[%s5482_s4 + $0x94] sm:$0x2] %v3805_v57  ;;  %v3442_v38 = vpop.permute.xlu1 %3441  ;;  %3475 = vrot.lane.b32.xlu0 %v8327_v44, %s4931_s5  ;;  %v3828_v57 = vld [vmem:[%s5482_s4 + $0xa4] sm:$0x2] }
 0x369   : > { %v3808_v63 = vsel %vm6533_vm9, %v3442_v38, %v3807_v27 }
 0x36a   : > { %3809 = vst [vmem:[%s5482_s4 + $0x96] sm:$0x2] %v3808_v63  ;;  %3477 = vrot.lane.b32.xlu1 %v8328_v32, %s4931_s5  ;;  %v3444_v21 = vpop.permute.xlu0 %3443  ;;  %v3831_v63 = vld [vmem:[%s5482_s4 + $0xa6] sm:$0x2] }
 0x36b   : > { %v3811_v60 = vsel %vm6533_vm9, %v3444_v21, %v3810_v46 }
 0x36c   : > { %3812 = vst [vmem:[%s5482_s4 + $0x98] sm:$0x2] %v3811_v60  ;;  %v3446_v43 = vpop.permute.xlu1 %3445  ;;  %3479 = vrot.lane.b32.xlu0 %v8344_v62, %s4931_s5  ;;  %v8350_v60 = vld [vmem:[#allocation8_spill] sm:$0xff]  ;;  %v3834_v62 = vld [vmem:[%s5482_s4 + $0xa8] sm:$0x2] }
 0x36d   : > { %v3814_v27 = vsel %vm6533_vm9, %v3446_v43, %v3813_v23  ;;  %v8351_v43 = vld [vmem:[#allocation11_spill] sm:$0xff] }
 0x36e   : > { %3815 = vst [vmem:[%s5482_s4 + $0x9a] sm:$0x2] %v3814_v27  ;;  %3481 = vrot.lane.b32.xlu1 %v8345_v48, %s4931_s5  ;;  %v3456_v38 = vpop.permute.xlu0 %3455 }
 0x36f   : > { %v3829_v46 = vsel %vm6533_vm9, %v3456_v38, %v3828_v57  ;;  %v3837_v57 = vld [vmem:[%s5482_s4 + $0xaa] sm:$0x2] }
 0x370   : > { %3830 = vst [vmem:[%s5482_s4 + $0xa4] sm:$0x2] %v3829_v46  ;;  %v3458_v21 = vpop.permute.xlu1 %3457  ;;  %3870 = vrot.lane.b32.xlu0 %v8350_v60, %s4932_s25 }
 0x371   : > { %v3832_v23 = vsel %vm6533_vm9, %v3458_v21, %v3831_v63  ;;  %v3021_v21 = vld [vmem:[%s5482_s4 + $0xc] sm:$0x1] }
 0x372   : > { %3833 = vst [vmem:[%s5482_s4 + $0xa6] sm:$0x2] %v3832_v23  ;;  %3872 = vrot.lane.b32.xlu1 %v8351_v43, %s4932_s25  ;;  %v3460_v27 = vpop.permute.xlu0 %3459  ;;  %v3024_v23 = vld [vmem:[%s5482_s4 + $0xe] sm:$0x1] }
 0x373   : > { %v3835_v38 = vsel %vm6533_vm9, %v3460_v27, %v3834_v62 }
 0x374   : > { %3836 = vst [vmem:[%s5482_s4 + $0xa8] sm:$0x2] %v3835_v38  ;;  %v3462_v46 = vpop.permute.xlu1 %3461  ;;  %3874 = vrot.lane.b32.xlu0 %v8300_v35, %s4932_s25  ;;  %v3048_v38 = vld [vmem:[%s5482_s4 + $0x1e] sm:$0x1] }
 0x375   : > { %v3838_v63 = vsel %vm6533_vm9, %v3462_v46, %v3837_v57 }
 0x376   : > { %3839 = vst [vmem:[%s5482_s4 + $0xaa] sm:$0x2] %v3838_v63  ;;  %3876 = vrot.lane.b32.xlu1 %v8301_v49, %s4932_s25  ;;  %v2726_v60 = vpop.permute.xlu0 %2725  ;;  %v3045_v49 = vld [vmem:[%s5482_s4 + $0x1c] sm:$0x1] }
 0x377   : > { %v3022_v62 = vsel %vm6387_vm6, %v2726_v60, %v3021_v21  ;;  %v3072_v60 = vld [vmem:[%s5482_s4 + $0x2e] sm:$0x1] }
 0x378   : > { %3023 = vst [vmem:[%s5482_s4 + $0xc] sm:$0x1] %v3022_v62  ;;  %v2728_v43 = vpop.permute.xlu1 %2727  ;;  %3878 = vrot.lane.b32.xlu0 %v8244_v22, %s4932_s25 }
 0x379   : > { %v3025_v35 = vsel %vm6387_vm6, %v2728_v43, %v3024_v23  ;;  %v3093_v43 = vld [vmem:[%s5482_s4 + $0x3c] sm:$0x1] }
 0x37a   : > { %3026 = vst [vmem:[%s5482_s4 + $0xe] sm:$0x1] %v3025_v35  ;;  %3880 = vrot.lane.b32.xlu1 %v8302_v28, %s4932_s25  ;;  %v2742_v27 = vpop.permute.xlu0 %2741  ;;  %v3069_v28 = vld [vmem:[%s5482_s4 + $0x2c] sm:$0x1] }
 0x37b   : > { %v3046_v57 = vsel %vm6387_vm6, %v2742_v27, %v3045_v49  ;;  %v3096_v27 = vld [vmem:[%s5482_s4 + $0x3e] sm:$0x1] }
 0x37c   : > { %3047 = vst [vmem:[%s5482_s4 + $0x1c] sm:$0x1] %v3046_v57  ;;  %v2744_v46 = vpop.permute.xlu1 %2743  ;;  %3882 = vrot.lane.b32.xlu0 %v8329_v20, %s4932_s25  ;;  %v8352_v20 = vld [vmem:[#allocation13_spill] sm:$0xff] }
 0x37d   : > { %v3049_v22 = vsel %vm6387_vm6, %v2744_v46, %v3048_v38  ;;  %v3117_v46 = vld [vmem:[%s5482_s4 + $0x4c] sm:$0x1] }
 0x37e   : > { %3050 = vst [vmem:[%s5482_s4 + $0x1e] sm:$0x1] %v3049_v22  ;;  %3884 = vrot.lane.b32.xlu1 %v8330_v41, %s4932_s25  ;;  %v2758_v63 = vpop.permute.xlu0 %2757  ;;  %v8353_v41 = vld [vmem:[#allocation14_spill] sm:$0xff] }
 0x37f   : > { %v3070_v21 = vsel %vm6387_vm6, %v2758_v63, %v3069_v28  ;;  %v3120_v63 = vld [vmem:[%s5482_s4 + $0x4e] sm:$0x1] }
 0x380   : > { %3071 = vst [vmem:[%s5482_s4 + $0x2c] sm:$0x1] %v3070_v21  ;;  %v2760_v62 = vpop.permute.xlu1 %2759  ;;  %3886 = vrot.lane.b32.xlu0 %v8352_v20, %s4932_s25  ;;  %v3144_v20 = vld [vmem:[%s5482_s4 + $0x5e] sm:$0x1] }
 0x381   : > { %v3073_v23 = vsel %vm6387_vm6, %v2760_v62, %v3072_v60 }
 0x382   : > { %3074 = vst [vmem:[%s5482_s4 + $0x2e] sm:$0x1] %v3073_v23  ;;  %3888 = vrot.lane.b32.xlu1 %v8353_v41, %s4932_s25  ;;  %v2774_v35 = vpop.permute.xlu0 %2773 }
 0x383   : > { %v3094_v49 = vsel %vm6387_vm6, %v2774_v35, %v3093_v43  ;;  %v3168_v35 = vld [vmem:[%s5482_s4 + $0x6e] sm:$0x1] }
 0x384   : > { %3095 = vst [vmem:[%s5482_s4 + $0x3c] sm:$0x1] %v3094_v49  ;;  %v2776_v57 = vpop.permute.xlu1 %2775  ;;  %3890 = vrot.lane.b32.xlu0 %v8303_v55, %s4932_s25 }
 0x385   : > { %v3097_v38 = vsel %vm6387_vm6, %v2776_v57, %v3096_v27  ;;  %v3189_v57 = vld [vmem:[%s5482_s4 + $0x7c] sm:$0x1] }
 0x386   : > { %3098 = vst [vmem:[%s5482_s4 + $0x3e] sm:$0x1] %v3097_v38  ;;  %3892 = vrot.lane.b32.xlu1 %v8248_v14, %s4932_s25  ;;  %v2790_v22 = vpop.permute.xlu0 %2789  ;;  %v3141_v14 = vld [vmem:[%s5482_s4 + $0x5c] sm:$0x1] }
 0x387   : > { %v3118_v28 = vsel %vm6387_vm6, %v2790_v22, %v3117_v46  ;;  %v3192_v22 = vld [vmem:[%s5482_s4 + $0x7e] sm:$0x1] }
 0x388   : > { %3119 = vst [vmem:[%s5482_s4 + $0x4c] sm:$0x1] %v3118_v28  ;;  %v2792_v21 = vpop.permute.xlu1 %2791  ;;  %3894 = vrot.lane.b32.xlu0 %v8304_v29, %s4932_s25 }
 0x389   : > { %v3121_v55 = vsel %vm6387_vm6, %v2792_v21, %v3120_v63  ;;  %v3213_v21 = vld [vmem:[%s5482_s4 + $0x8c] sm:$0x1] }
 0x38a   : > { %3122 = vst [vmem:[%s5482_s4 + $0x4e] sm:$0x1] %v3121_v55  ;;  %3896 = vrot.lane.b32.xlu1 %v5581_v12, %s4932_s25  ;;  %v2806_v60 = vpop.permute.xlu0 %2805  ;;  %v3165_v12 = vld [vmem:[%s5482_s4 + $0x6c] sm:$0x1] }
 0x38b   : > { %v3142_v62 = vsel %vm6387_vm6, %v2806_v60, %v3141_v14  ;;  %v3216_v60 = vld [vmem:[%s5482_s4 + $0x8e] sm:$0x1] }
 0x38c   : > { %3143 = vst [vmem:[%s5482_s4 + $0x5c] sm:$0x1] %v3142_v62  ;;  %v2808_v23 = vpop.permute.xlu1 %2807  ;;  %3898 = vrot.lane.b32.xlu0 %v8331_v10, %s4932_s25  ;;  %v8354_v10 = vld [vmem:[#allocation18_spill] sm:$0xff] }
 0x38d   : > { %v3145_v29 = vsel %vm6387_vm6, %v2808_v23, %v3144_v20 }
 0x38e   : > { %3146 = vst [vmem:[%s5482_s4 + $0x5e] sm:$0x1] %v3145_v29  ;;  %3900 = vrot.lane.b32.xlu1 %v6132_v19, %s4932_s25  ;;  %v2822_v41 = vpop.permute.xlu0 %2821  ;;  %v8355_v19 = vld [vmem:[#allocation19_spill] sm:$0xff]  ;;  %v3240_v29 = vld [vmem:[%s5482_s4 + $0x9e] sm:$0x1] }
 0x38f   : > { %v3166_v43 = vsel %vm6387_vm6, %v2822_v41, %v3165_v12 }
 0x390   : > { %3167 = vst [vmem:[%s5482_s4 + $0x6c] sm:$0x1] %v3166_v43  ;;  %v2824_v49 = vpop.permute.xlu1 %2823  ;;  %3902 = vrot.lane.b32.xlu0 %v8354_v10, %s4932_s25 }
 0x391   : > { %v3169_v27 = vsel %vm6387_vm6, %v2824_v49, %v3168_v35  ;;  %v3264_v49 = vld [vmem:[%s5482_s4 + $0xae] sm:$0x1] }
 0x392   : > { %3170 = vst [vmem:[%s5482_s4 + $0x6e] sm:$0x1] %v3169_v27  ;;  %3904 = vrot.lane.b32.xlu1 %v8355_v19, %s4932_s25  ;;  %v2838_v38 = vpop.permute.xlu0 %2837  ;;  %v3285_v27 = vld [vmem:[%s5482_s4 + $0xbc] sm:$0x1] }
 0x393   : > { %v3190_v46 = vsel %vm6387_vm6, %v2838_v38, %v3189_v57  ;;  %v3288_v38 = vld [vmem:[%s5482_s4 + $0xbe] sm:$0x1] }
 0x394   : > { %3191 = vst [vmem:[%s5482_s4 + $0x7c] sm:$0x1] %v3190_v46  ;;  %v2840_v28 = vpop.permute.xlu1 %2839  ;;  %3906 = vrot.lane.b32.xlu0 %v8250_v2, %s4932_s25 }
 0x395   : > { %v3193_v63 = vsel %vm6387_vm6, %v2840_v28, %v3192_v22  ;;  %v3600_v22 = vld [vmem:[%s5482_s4 + $0xc] sm:$0x2] }
 0x396   : > { %3194 = vst [vmem:[%s5482_s4 + $0x7e] sm:$0x1] %v3193_v63  ;;  %3908 = vrot.lane.b32.xlu1 %v5584_v52, %s4932_s25  ;;  %v2854_v55 = vpop.permute.xlu0 %2853  ;;  %v3237_v52 = vld [vmem:[%s5482_s4 + $0x9c] sm:$0x1] }
 0x397   : > { %v3214_v14 = vsel %vm6387_vm6, %v2854_v55, %v3213_v21  ;;  %v3603_v21 = vld [vmem:[%s5482_s4 + $0xe] sm:$0x2] }
 0x398   : > { %3215 = vst [vmem:[%s5482_s4 + $0x8c] sm:$0x1] %v3214_v14  ;;  %v2856_v62 = vpop.permute.xlu1 %2855  ;;  %3910 = vrot.lane.b32.xlu0 %v5604_v9, %s4932_s25 }
 0x399   : > { %v3217_v2 = vsel %vm6387_vm6, %v2856_v62, %v3216_v60  ;;  %v3627_v60 = vld [vmem:[%s5482_s4 + $0x1e] sm:$0x2] }
 0x39a   : > { %3218 = vst [vmem:[%s5482_s4 + $0x8e] sm:$0x1] %v3217_v2  ;;  %3912 = vrot.lane.b32.xlu1 %v5625_v24, %s4932_s25  ;;  %v2870_v20 = vpop.permute.xlu0 %2869  ;;  %v3261_v24 = vld [vmem:[%s5482_s4 + $0xac] sm:$0x1] }
 0x39b   : > { %v3238_v23 = vsel %vm6387_vm6, %v2870_v20, %v3237_v52  ;;  %v3651_v20 = vld [vmem:[%s5482_s4 + $0x2e] sm:$0x2] }
 0x39c   : > { %3239 = vst [vmem:[%s5482_s4 + $0x9c] sm:$0x1] %v3238_v23  ;;  %v2872_v12 = vpop.permute.xlu1 %2871  ;;  %3914 = vrot.lane.b32.xlu0 %v6123_v59, %s4932_s25  ;;  %v8356_v59 = vld [vmem:[#allocation20_spill] sm:$0xff] }
 0x39d   : > { %v3241_v9 = vsel %vm6387_vm6, %v2872_v12, %v3240_v29  ;;  %v3672_v12 = vld [vmem:[%s5482_s4 + $0x3c] sm:$0x2] }
 0x39e   : > { %3242 = vst [vmem:[%s5482_s4 + $0x9e] sm:$0x1] %v3241_v9  ;;  %3916 = vrot.lane.b32.xlu1 %v6140_v18, %s4932_s25  ;;  %v2886_v41 = vpop.permute.xlu0 %2885  ;;  %v8357_v18 = vld [vmem:[#allocation22_spill] sm:$0xff] }
 0x39f   : > { %v3262_v43 = vsel %vm6387_vm6, %v2886_v41, %v3261_v24  ;;  %v3675_v41 = vld [vmem:[%s5482_s4 + $0x3e] sm:$0x2] }
 0x3a0   : > { %3263 = vst [vmem:[%s5482_s4 + $0xac] sm:$0x1] %v3262_v43  ;;  %v2888_v35 = vpop.permute.xlu1 %2887  ;;  %3918 = vrot.lane.b32.xlu0 %v8356_v59, %s4932_s25 }
 0x3a1   : > { %v3265_v10 = vsel %vm6387_vm6, %v2888_v35, %v3264_v49  ;;  %v3696_v49 = vld [vmem:[%s5482_s4 + $0x4c] sm:$0x2] }
 0x3a2   : > { %3266 = vst [vmem:[%s5482_s4 + $0xae] sm:$0x1] %v3265_v10  ;;  %3920 = vrot.lane.b32.xlu1 %v8357_v18, %s4932_s25  ;;  %v2902_v19 = vpop.permute.xlu0 %2901  ;;  %v3699_v18 = vld [vmem:[%s5482_s4 + $0x4e] sm:$0x2] }
 0x3a3   : > { %v3286_v57 = vsel %vm6387_vm6, %v2902_v19, %v3285_v27 }
 0x3a4   : > { %3287 = vst [vmem:[%s5482_s4 + $0xbc] sm:$0x1] %v3286_v57  ;;  %v2904_v46 = vpop.permute.xlu1 %2903  ;;  %3922 = vrot.lane.b32.xlu0 %v5616_v3, %s4932_s25  ;;  %v3624_v3 = vld [vmem:[%s5482_s4 + $0x1c] sm:$0x2] }
 0x3a5   : > { %v3289_v28 = vsel %vm6387_vm6, %v2904_v46, %v3288_v38  ;;  %v3723_v38 = vld [vmem:[%s5482_s4 + $0x5e] sm:$0x2] }
 0x3a6   : > { %3290 = vst [vmem:[%s5482_s4 + $0xbe] sm:$0x1] %v3289_v28  ;;  %3924 = vrot.lane.b32.xlu1 %v5636_v8, %s4932_s25  ;;  %v3304_v63 = vpop.permute.xlu0 %3303 }
 0x3a7   : > { %v3601_v55 = vsel %vm6533_vm9, %v3304_v63, %v3600_v22  ;;  %v3747_v63 = vld [vmem:[%s5482_s4 + $0x6e] sm:$0x2] }
 0x3a8   : > { %3602 = vst [vmem:[%s5482_s4 + $0xc] sm:$0x2] %v3601_v55  ;;  %v3306_v14 = vpop.permute.xlu1 %3305  ;;  %3926 = vrot.lane.b32.xlu0 %v5654_v5, %s4932_s25  ;;  %v3648_v5 = vld [vmem:[%s5482_s4 + $0x2c] sm:$0x2] }
 0x3a9   : > { %v3604_v17 = vsel %vm6533_vm9, %v3306_v14, %v3603_v21  ;;  %v3768_v14 = vld [vmem:[%s5482_s4 + $0x7c] sm:$0x2] }
 0x3aa   : > { %3605 = vst [vmem:[%s5482_s4 + $0xe] sm:$0x2] %v3604_v17  ;;  %3928 = vrot.lane.b32.xlu1 %v5668_v6, %s4932_s25  ;;  %v3320_v8 = vpop.permute.xlu0 %3319 }
 0x3ab   : > { %v3625_v62 = vsel %vm6533_vm9, %v3320_v8, %v3624_v3  ;;  %v3771_v8 = vld [vmem:[%s5482_s4 + $0x7e] sm:$0x2] }
 0x3ac   : > { %3626 = vst [vmem:[%s5482_s4 + $0x1c] sm:$0x2] %v3625_v62  ;;  %v3322_v2 = vpop.permute.xlu1 %3321  ;;  %3930 = vrot.lane.b32.xlu0 %v6153_v39, %s4932_s25  ;;  %v8358_v39 = vld [vmem:[#allocation21_spill] sm:$0xff] }
 0x3ad   : > { %v3628_v52 = vsel %vm6533_vm9, %v3322_v2, %v3627_v60  ;;  %v3792_v2 = vld [vmem:[%s5482_s4 + $0x8c] sm:$0x2] }
 0x3ae   : > { %3629 = vst [vmem:[%s5482_s4 + $0x1e] sm:$0x2] %v3628_v52  ;;  %3932 = vrot.lane.b32.xlu1 %v6166_v13, %s4932_s25  ;;  %v3336_v6 = vpop.permute.xlu0 %3335  ;;  %v8359_v13 = vld [vmem:[#allocation25_spill] sm:$0xff] }
 0x3af   : > { %v3649_v23 = vsel %vm6533_vm9, %v3336_v6, %v3648_v5  ;;  %v3795_v6 = vld [vmem:[%s5482_s4 + $0x8e] sm:$0x2] }
 0x3b0   : > { %3650 = vst [vmem:[%s5482_s4 + $0x2c] sm:$0x2] %v3649_v23  ;;  %v3338_v29 = vpop.permute.xlu1 %3337  ;;  %3934 = vrot.lane.b32.xlu0 %v8358_v39, %s4932_s25  ;;  %v3819_v39 = vld [vmem:[%s5482_s4 + $0x9e] sm:$0x2] }
 0x3b1   : > { %v3652_v9 = vsel %vm6533_vm9, %v3338_v29, %v3651_v20 }
 0x3b2   : > { %3653 = vst [vmem:[%s5482_s4 + $0x2e] sm:$0x2] %v3652_v9  ;;  %3936 = vrot.lane.b32.xlu1 %v8359_v13, %s4932_s25  ;;  %v3352_v24 = vpop.permute.xlu0 %3351 }
 0x3b3   : > { %v3673_v43 = vsel %vm6533_vm9, %v3352_v24, %v3672_v12  ;;  %v3843_v24 = vld [vmem:[%s5482_s4 + $0xae] sm:$0x2] }
 0x3b4   : > { %3674 = vst [vmem:[%s5482_s4 + $0x3c] sm:$0x2] %v3673_v43  ;;  %v3354_v35 = vpop.permute.xlu1 %3353  ;;  %3938 = vrot.lane.b32.xlu0 %v5639_v0, %s4932_s25  ;;  %v3720_v0 = vld [vmem:[%s5482_s4 + $0x5c] sm:$0x2] }
 0x3b5   : > { %v3676_v59 = vsel %vm6533_vm9, %v3354_v35, %v3675_v41  ;;  %v3846_v35 = vld [vmem:[%s5482_s4 + $0xb0] sm:$0x2] }
 0x3b6   : > { %3677 = vst [vmem:[%s5482_s4 + $0x3e] sm:$0x2] %v3676_v59  ;;  %3940 = vrot.lane.b32.xlu1 %v5657_v11, %s4932_s25  ;;  %v3368_v10 = vpop.permute.xlu0 %3367 }
 0x3b7   : > { %v3697_v27 = vsel %vm6533_vm9, %v3368_v10, %v3696_v49  ;;  %v3849_v10 = vld [vmem:[%s5482_s4 + $0xb2] sm:$0x2] }
 0x3b8   : > { %3698 = vst [vmem:[%s5482_s4 + $0x4c] sm:$0x2] %v3697_v27  ;;  %v3370_v19 = vpop.permute.xlu1 %3369  ;;  %3942 = vrot.lane.b32.xlu0 %v5689_v47, %s4932_s25  ;;  %v3744_v47 = vld [vmem:[%s5482_s4 + $0x6c] sm:$0x2] }
 0x3b9   : > { %v3700_v57 = vsel %vm6533_vm9, %v3370_v19, %v3699_v18  ;;  %v3852_v19 = vld [vmem:[%s5482_s4 + $0xb4] sm:$0x2] }
 0x3ba   : > { %3701 = vst [vmem:[%s5482_s4 + $0x4e] sm:$0x2] %v3700_v57  ;;  %3944 = vrot.lane.b32.xlu1 %v5698_v1, %s4932_s25  ;;  %v3384_v11 = vpop.permute.xlu0 %3383 }
 0x3bb   : > { %v3721_v46 = vsel %vm6533_vm9, %v3384_v11, %v3720_v0  ;;  %v3855_v11 = vld [vmem:[%s5482_s4 + $0xb6] sm:$0x2] }
 0x3bc   : > { %3722 = vst [vmem:[%s5482_s4 + $0x5c] sm:$0x2] %v3721_v46  ;;  %v3386_v22 = vpop.permute.xlu1 %3385  ;;  %3946 = vrot.lane.b32.xlu0 %v6169_v42, %s4932_s25  ;;  %v8360_v42 = vld [vmem:[#allocation23_spill] sm:$0xff] }
 0x3bd   : > { %v3724_v28 = vsel %vm6533_vm9, %v3386_v22, %v3723_v38 }
 0x3be   : > { %3725 = vst [vmem:[%s5482_s4 + $0x5e] sm:$0x2] %v3724_v28  ;;  %3948 = vrot.lane.b32.xlu1 %v6185_v51, %s4932_s25  ;;  %v3400_v1 = vpop.permute.xlu0 %3399  ;;  %v8361_v51 = vld [vmem:[#allocation26_spill] sm:$0xff]  ;;  %v3861_v28 = vld [vmem:[%s5482_s4 + $0xba] sm:$0x2] }
 0x3bf   : > { %v3745_v21 = vsel %vm6533_vm9, %v3400_v1, %v3744_v47 }
 0x3c0   : > { %3746 = vst [vmem:[%s5482_s4 + $0x6c] sm:$0x2] %v3745_v21  ;;  %v3402_v55 = vpop.permute.xlu1 %3401  ;;  %3950 = vrot.lane.b32.xlu0 %v8360_v42, %s4932_s25  ;;  %v3867_v42 = vld [vmem:[%s5482_s4 + $0xbe] sm:$0x2] }
 0x3c1   : > { %v3748_v3 = vsel %vm6533_vm9, %v3402_v55, %v3747_v63 }
 0x3c2   : > { %3749 = vst [vmem:[%s5482_s4 + $0x6e] sm:$0x2] %v3748_v3  ;;  %3952 = vrot.lane.b32.xlu1 %v8361_v51, %s4932_s25  ;;  %v3416_v17 = vpop.permute.xlu0 %3415  ;;  %v8365_v3 = vld [vmem:[#allocation27_spill] sm:$0xff] }
 0x3c3   : > { %v3769_v60 = vsel %vm6533_vm9, %v3416_v17, %v3768_v14  ;;  %v8368_v17 = vld [vmem:[#allocation31_spill] sm:$0xff] }
 0x3c4   : > { %3770 = vst [vmem:[%s5482_s4 + $0x7c] sm:$0x2] %v3769_v60  ;;  %v3418_v62 = vpop.permute.xlu1 %3417  ;;  %3954 = vrot.lane.b32.xlu0 %v5692_v50, %s4932_s25  ;;  %v3816_v50 = vld [vmem:[%s5482_s4 + $0x9c] sm:$0x2] }
 0x3c5   : > { %v3772_v5 = vsel %vm6533_vm9, %v3418_v62, %v3771_v8  ;;  %v4160_v8 = vld [vmem:[%s5482_s4] sm:$0x2] }
 0x3c6   : > { %3773 = vst [vmem:[%s5482_s4 + $0x7e] sm:$0x2] %v3772_v5  ;;  %3956 = vrot.lane.b32.xlu1 %v5710_v33, %s4932_s25  ;;  %v3432_v52 = vpop.permute.xlu0 %3431 }
 0x3c7   : > { %v3793_v20 = vsel %vm6533_vm9, %v3432_v52, %v3792_v2  ;;  %v4163_v2 = vld [vmem:[%s5482_s4 + $0x2] sm:$0x2] }
 0x3c8   : > { %3794 = vst [vmem:[%s5482_s4 + $0x8c] sm:$0x2] %v3793_v20  ;;  %v3434_v23 = vpop.permute.xlu1 %3433  ;;  %3958 = vrot.lane.b32.xlu0 %v5734_v56, %s4932_s25  ;;  %v3840_v56 = vld [vmem:[%s5482_s4 + $0xac] sm:$0x2]  ;;  %v8369_v52 = vld [vmem:[#allocation46_spill] sm:$0xff] }
 0x3c9   : > { %v3796_v29 = vsel %vm6533_vm9, %v3434_v23, %v3795_v6  ;;  %v8370_v6 = vld [vmem:[#allocation47_spill] sm:$0xff]  ;;  %v4166_v20 = vld [vmem:[%s5482_s4 + $0x4] sm:$0x2] }
 0x3ca   : > { %3797 = vst [vmem:[%s5482_s4 + $0x8e] sm:$0x2] %v3796_v29  ;;  %3960 = vrot.lane.b32.xlu1 %v5754_v25, %s4932_s25  ;;  %v3448_v33 = vpop.permute.xlu0 %3447  ;;  %v4169_v29 = vld [vmem:[%s5482_s4 + $0x6] sm:$0x2] }
 0x3cb   : > { %v3817_v12 = vsel %vm6533_vm9, %v3448_v33, %v3816_v50 }
 0x3cc   : > { %3818 = vst [vmem:[%s5482_s4 + $0x9c] sm:$0x2] %v3817_v12  ;;  %v3450_v9 = vpop.permute.xlu1 %3449  ;;  %3962 = vrot.lane.b32.xlu0 %v8332_v36, %s4932_s25  ;;  %v8362_v36 = vld [vmem:[#allocation24_spill] sm:$0xff] }
 0x3cd   : > { %v3820_v13 = vsel %vm6533_vm9, %v3450_v9, %v3819_v39  ;;  %v8371_v39 = vld [vmem:[#allocation49_spill] sm:$0xff]  ;;  %v8372_v9 = vld [vmem:[#allocation51_spill] sm:$0xff] }
 0x3ce   : > { %3821 = vst [vmem:[%s5482_s4 + $0x9e] sm:$0x2] %v3820_v13  ;;  %3964 = vrot.lane.b32.xlu1 %v8333_v54, %s4932_s25  ;;  %v3464_v25 = vpop.permute.xlu0 %3463  ;;  %v8363_v54 = vld [vmem:[#allocation28_spill] sm:$0xff] }
 0x3cf   : > { %v3841_v41 = vsel %vm6533_vm9, %v3464_v25, %v3840_v56  ;;  %v4172_v56 = vld [vmem:[%s5482_s4 + $0x8] sm:$0x2] }
 0x3d0   : > { %3842 = vst [vmem:[%s5482_s4 + $0xac] sm:$0x2] %v3841_v41  ;;  %v3466_v43 = vpop.permute.xlu1 %3465  ;;  %3966 = vrot.lane.b32.xlu0 %v8362_v36, %s4932_s25  ;;  %v4178_v36 = vld [vmem:[%s5482_s4 + $0xc] sm:$0x2] }
 0x3d1   : > { %v3844_v49 = vsel %vm6533_vm9, %v3466_v43, %v3843_v24  ;;  %v4175_v24 = vld [vmem:[%s5482_s4 + $0xa] sm:$0x2] }
 0x3d2   : > { %3845 = vst [vmem:[%s5482_s4 + $0xae] sm:$0x2] %v3844_v49  ;;  %3968 = vrot.lane.b32.xlu1 %v8363_v54, %s4932_s25  ;;  %v3468_v59 = vpop.permute.xlu0 %3467  ;;  %v4181_v54 = vld [vmem:[%s5482_s4 + $0xe] sm:$0x2] }
 0x3d3   : > { %v3847_v18 = vsel %vm6533_vm9, %v3468_v59, %v3846_v35 }
 0x3d4   : > { %3848 = vst [vmem:[%s5482_s4 + $0xb0] sm:$0x2] %v3847_v18  ;;  %v3470_v27 = vpop.permute.xlu1 %3469  ;;  %3970 = vrot.lane.b32.xlu0 %v5721_v31, %s4932_s25  ;;  %v3858_v31 = vld [vmem:[%s5482_s4 + $0xb8] sm:$0x2]  ;;  %v4184_v18 = vld [vmem:[%s5482_s4 + $0x10] sm:$0x2] }
 0x3d5   : > { %v3850_v0 = vsel %vm6533_vm9, %v3470_v27, %v3849_v10 }
 0x3d6   : > { %3851 = vst [vmem:[%s5482_s4 + $0xb2] sm:$0x2] %v3850_v0  ;;  %3972 = vrot.lane.b32.xlu1 %v5742_v7, %s4932_s25  ;;  %v3472_v57 = vpop.permute.xlu0 %3471  ;;  %v8364_v7 = vld [vmem:[#allocation48_spill] sm:$0xff] }
 0x3d7   : > { %v3853_v38 = vsel %vm6533_vm9, %v3472_v57, %v3852_v19  ;;  %v4187_v0 = vld [vmem:[%s5482_s4 + $0x12] sm:$0x2] }
 0x3d8   : > { %3854 = vst [vmem:[%s5482_s4 + $0xb4] sm:$0x2] %v3853_v38  ;;  %v3474_v46 = vpop.permute.xlu1 %3473  ;;  %3974 = vrot.lane.b32.xlu0 %v5773_v53, %s4932_s25  ;;  %v3864_v53 = vld [vmem:[%s5482_s4 + $0xbc] sm:$0x2] }
 0x3d9   : > { %v3856_v22 = vsel %vm6533_vm9, %v3474_v46, %v3855_v11  ;;  %v8375_v11 = vld [vmem:[#allocation50_spill] sm:$0xff]  ;;  %v8376_v46 = vld [vmem:[#allocation52_spill] sm:$0xff] }
 0x3da   : > { %3857 = vst [vmem:[%s5482_s4 + $0xb6] sm:$0x2] %v3856_v22  ;;  %3976 = vrot.lane.b32.xlu1 %v8364_v7, %s4932_s25  ;;  %v3476_v47 = vpop.permute.xlu0 %3475 }
 0x3db   : > { %v3859_v1 = vsel %vm6533_vm9, %v3476_v47, %v3858_v31  ;;  %v4190_v31 = vld [vmem:[%s5482_s4 + $0x14] sm:$0x2]  ;;  %v4193_v47 = vld [vmem:[%s5482_s4 + $0x16] sm:$0x2] }
 0x3dc   : > { %3860 = vst [vmem:[%s5482_s4 + $0xb8] sm:$0x2] %v3859_v1  ;;  %v3478_v63 = vpop.permute.xlu1 %3477  ;;  %3978 = vrot.lane.b32.xlu0 %v8334_v16, %s4932_s25  ;;  %v8377_v1 = vld [vmem:[#allocation54_spill] sm:$0xff] }
 0x3dd   : > { %v3862_v21 = vsel %vm6533_vm9, %v3478_v63, %v3861_v28 }
 0x3de   : > { %3863 = vst [vmem:[%s5482_s4 + $0xba] sm:$0x2] %v3862_v21  ;;  %3980 = vrot.lane.b32.xlu1 %v8335_v45, %s4932_s25  ;;  %v3480_v55 = vpop.permute.xlu0 %3479  ;;  %v4196_v21 = vld [vmem:[%s5482_s4 + $0x18] sm:$0x2] }
 0x3df   : > { %v3865_v14 = vsel %vm6533_vm9, %v3480_v55, %v3864_v53  ;;  %v8378_v53 = vld [vmem:[#allocation56_spill] sm:$0xff] }
 0x3e0   : > { %3866 = vst [vmem:[%s5482_s4 + $0xbc] sm:$0x2] %v3865_v14  ;;  %v3482_v16 = vpop.permute.xlu1 %3481  ;;  %3982 = vrot.lane.b32.xlu0 %v8365_v3, %s4932_s25  ;;  %v4199_v14 = vld [vmem:[%s5482_s4 + $0x1a] sm:$0x2] }
 0x3e1   : > { %v3868_v45 = vsel %vm6533_vm9, %v3482_v16, %v3867_v42 }
 0x3e2   : > { %3869 = vst [vmem:[%s5482_s4 + $0xbe] sm:$0x2] %v3868_v45  ;;  %3984 = vrot.lane.b32.xlu1 %v8368_v17, %s4932_s25  ;;  %v3871_v60 = vpop.permute.xlu0 %3870  ;;  %v4202_v45 = vld [vmem:[%s5482_s4 + $0x1c] sm:$0x2] }
 0x3e3   : > { %v4161_v62 = vsel %vm7546_vm11, %v3871_v60, %v4160_v8  ;;  %v4205_v60 = vld [vmem:[%s5482_s4 + $0x1e] sm:$0x2] }
 0x3e4   : > { %4162 = vst [vmem:[%s5482_s4] sm:$0x2] %v4161_v62  ;;  %v3873_v5 = vpop.permute.xlu1 %3872  ;;  %3986 = vrot.lane.b32.xlu0 %v8369_v52, %s4932_s25 }
 0x3e5   : > { %v4164_v40 = vsel %vm7546_vm11, %v3873_v5, %v4163_v2  ;;  %v4208_v5 = vld [vmem:[%s5482_s4 + $0x20] sm:$0x2] }
 0x3e6   : > { %4165 = vst [vmem:[%s5482_s4 + $0x2] sm:$0x2] %v4164_v40  ;;  %3988 = vrot.lane.b32.xlu1 %v8370_v6, %s4932_s25  ;;  %v3875_v23 = vpop.permute.xlu0 %3874  ;;  %v4211_v6 = vld [vmem:[%s5482_s4 + $0x22] sm:$0x2] }
 0x3e7   : > { %v4167_v50 = vsel %vm7546_vm11, %v3875_v23, %v4166_v20  ;;  %v8381_v23 = vld [vmem:[#allocation53_spill] sm:$0xff] }
 0x3e8   : > { %4168 = vst [vmem:[%s5482_s4 + $0x4] sm:$0x2] %v4167_v50  ;;  %v3877_v33 = vpop.permute.xlu1 %3876  ;;  %3990 = vrot.lane.b32.xlu0 %v8371_v39, %s4932_s25 }
 0x3e9   : > { %v4170_v12 = vsel %vm7546_vm11, %v3877_v33, %v4169_v29  ;;  %v8382_v29 = vld [vmem:[#allocation57_spill] sm:$0xff]  ;;  %v4214_v33 = vld [vmem:[%s5482_s4 + $0x24] sm:$0x2] }
 0x3ea   : > { %4171 = vst [vmem:[%s5482_s4 + $0x6] sm:$0x2] %v4170_v12  ;;  %3992 = vrot.lane.b32.xlu1 %v8372_v9, %s4932_s25  ;;  %v3879_v13 = vpop.permute.xlu0 %3878  ;;  %v4217_v9 = vld [vmem:[%s5482_s4 + $0x26] sm:$0x2] }
 0x3eb   : > { %v4173_v25 = vsel %vm7546_vm11, %v3879_v13, %v4172_v56  ;;  %v8383_v13 = vld [vmem:[#allocation58_spill] sm:$0xff] }
 0x3ec   : > { %4174 = vst [vmem:[%s5482_s4 + $0x8] sm:$0x2] %v4173_v25  ;;  %v3881_v41 = vpop.permute.xlu1 %3880  ;;  %3994 = vrot.lane.b32.xlu0 %v8336_v34, %s4932_s25  ;;  %v8373_v34 = vld [vmem:[#allocation29_spill] sm:$0xff] }
 0x3ed   : > { %v4176_v43 = vsel %vm7546_vm11, %v3881_v41, %v4175_v24  ;;  %v8384_v24 = vld [vmem:[#allocation61_spill] sm:$0xff]  ;;  %v4220_v41 = vld [vmem:[%s5482_s4 + $0x28] sm:$0x2] }
 0x3ee   : > { %4177 = vst [vmem:[%s5482_s4 + $0xa] sm:$0x2] %v4176_v43  ;;  %3996 = vrot.lane.b32.xlu1 %v8337_v15, %s4932_s25  ;;  %v3883_v35 = vpop.permute.xlu0 %3882  ;;  %v8374_v15 = vld [vmem:[#allocation33_spill] sm:$0xff] }
 0x3ef   : > { %v4179_v49 = vsel %vm7546_vm11, %v3883_v35, %v4178_v36  ;;  %v4223_v35 = vld [vmem:[%s5482_s4 + $0x2a] sm:$0x2] }
 0x3f0   : > { %4180 = vst [vmem:[%s5482_s4 + $0xc] sm:$0x2] %v4179_v49  ;;  %v3885_v59 = vpop.permute.xlu1 %3884  ;;  %3998 = vrot.lane.b32.xlu0 %v8373_v34, %s4932_s25 }
 0x3f1   : > { %v4182_v10 = vsel %vm7546_vm11, %v3885_v59, %v4181_v54  ;;  %v4226_v59 = vld [vmem:[%s5482_s4 + $0x2c] sm:$0x2] }
 0x3f2   : > { %4183 = vst [vmem:[%s5482_s4 + $0xe] sm:$0x2] %v4182_v10  ;;  %4000 = vrot.lane.b32.xlu1 %v8374_v15, %s4932_s25  ;;  %v3887_v27 = vpop.permute.xlu0 %3886  ;;  %v4229_v15 = vld [vmem:[%s5482_s4 + $0x2e] sm:$0x2] }
 0x3f3   : > { %v4185_v19 = vsel %vm7546_vm11, %v3887_v27, %v4184_v18 }
 0x3f4   : > { %4186 = vst [vmem:[%s5482_s4 + $0x10] sm:$0x2] %v4185_v19  ;;  %v3889_v57 = vpop.permute.xlu1 %3888  ;;  %4002 = vrot.lane.b32.xlu0 %v8375_v11, %s4932_s25  ;;  %v4232_v19 = vld [vmem:[%s5482_s4 + $0x30] sm:$0x2]  ;;  %v4235_v11 = vld [vmem:[%s5482_s4 + $0x32] sm:$0x2] }
 0x3f5   : > { %v4188_v38 = vsel %vm7546_vm11, %v3889_v57, %v4187_v0 }
 0x3f6   : > { %4189 = vst [vmem:[%s5482_s4 + $0x12] sm:$0x2] %v4188_v38  ;;  %4004 = vrot.lane.b32.xlu1 %v8376_v46, %s4932_s25  ;;  %v3891_v22 = vpop.permute.xlu0 %3890  ;;  %v8387_v46 = vld [vmem:[#allocation55_spill] sm:$0xff] }
 0x3f7   : > { %v4191_v7 = vsel %vm7546_vm11, %v3891_v22, %v4190_v31  ;;  %v8388_v22 = vld [vmem:[#allocation59_spill] sm:$0xff] }
 0x3f8   : > { %4192 = vst [vmem:[%s5482_s4 + $0x14] sm:$0x2] %v4191_v7  ;;  %v3893_v28 = vpop.permute.xlu1 %3892  ;;  %4006 = vrot.lane.b32.xlu0 %v8377_v1, %s4932_s25  ;;  %v4238_v7 = vld [vmem:[%s5482_s4 + $0x34] sm:$0x2]  ;;  %v4241_v1 = vld [vmem:[%s5482_s4 + $0x36] sm:$0x2] }
 0x3f9   : > { %v4194_v63 = vsel %vm7546_vm11, %v3893_v28, %v4193_v47 }
 0x3fa   : > { %4195 = vst [vmem:[%s5482_s4 + $0x16] sm:$0x2] %v4194_v63  ;;  %4008 = vrot.lane.b32.xlu1 %v8378_v53, %s4932_s25  ;;  %v3895_v55 = vpop.permute.xlu0 %3894  ;;  %v8389_v53 = vld [vmem:[#allocation62_spill] sm:$0xff] }
 0x3fb   : > { %v4197_v42 = vsel %vm7546_vm11, %v3895_v55, %v4196_v21  ;;  %v8390_v55 = vld [vmem:[#allocation63_spill] sm:$0xff] }
 0x3fc   : > { %4198 = vst [vmem:[%s5482_s4 + $0x18] sm:$0x2] %v4197_v42  ;;  %v3897_v16 = vpop.permute.xlu1 %3896  ;;  %4010 = vrot.lane.b32.xlu0 %v8338_v37, %s4932_s25  ;;  %v8379_v37 = vld [vmem:[#allocation30_spill] sm:$0xff]  ;;  %v4244_v42 = vld [vmem:[%s5482_s4 + $0x38] sm:$0x2] }
 0x3fd   : > { %v4200_v3 = vsel %vm7546_vm11, %v3897_v16, %v4199_v14 }
 0x3fe   : > { %4201 = vst [vmem:[%s5482_s4 + $0x1a] sm:$0x2] %v4200_v3  ;;  %4012 = vrot.lane.b32.xlu1 %v8339_v61, %s4932_s25  ;;  %v3899_v17 = vpop.permute.xlu0 %3898  ;;  %v8380_v61 = vld [vmem:[#allocation34_spill] sm:$0xff]  ;;  %v4247_v3 = vld [vmem:[%s5482_s4 + $0x3a] sm:$0x2] }
 0x3ff   : > { %v4203_v8 = vsel %vm7546_vm11, %v3899_v17, %v4202_v45  ;;  %v8391_v17 = vld [vmem:[#allocation65_spill] sm:$0xff] }
 0x400   : > { %4204 = vst [vmem:[%s5482_s4 + $0x1c] sm:$0x2] %v4203_v8  ;;  %v3901_v62 = vpop.permute.xlu1 %3900  ;;  %4014 = vrot.lane.b32.xlu0 %v8379_v37, %s4932_s25 }
 0x401   : > { %v4206_v2 = vsel %vm7546_vm11, %v3901_v62, %v4205_v60  ;;  %v8392_v60 = vld [vmem:[#allocation67_spill] sm:$0xff]  ;;  %v4250_v62 = vld [vmem:[%s5482_s4 + $0x3c] sm:$0x2] }
 0x402   : > { %4207 = vst [vmem:[%s5482_s4 + $0x1e] sm:$0x2] %v4206_v2  ;;  %4016 = vrot.lane.b32.xlu1 %v8380_v61, %s4932_s25  ;;  %v3903_v52 = vpop.permute.xlu0 %3902  ;;  %v4253_v61 = vld [vmem:[%s5482_s4 + $0x3e] sm:$0x2] }
 0x403   : > { %v4209_v40 = vsel %vm7546_vm11, %v3903_v52, %v4208_v5  ;;  %v8393_v52 = vld [vmem:[#allocation36_spill] sm:$0xff] }
 0x404   : > { %4210 = vst [vmem:[%s5482_s4 + $0x20] sm:$0x2] %v4209_v40  ;;  %v3905_v20 = vpop.permute.xlu1 %3904  ;;  %4018 = vrot.lane.b32.xlu0 %v8381_v23, %s4932_s25 }
 0x405   : > { %v4212_v50 = vsel %vm7546_vm11, %v3905_v20, %v4211_v6  ;;  %v8394_v6 = vld [vmem:[#allocation37_spill] sm:$0xff]  ;;  %v4256_v20 = vld [vmem:[%s5482_s4 + $0x40] sm:$0x2] }
 0x406   : > { %4213 = vst [vmem:[%s5482_s4 + $0x22] sm:$0x2] %v4212_v50  ;;  %4020 = vrot.lane.b32.xlu1 %v8382_v29, %s4932_s25  ;;  %v3907_v39 = vpop.permute.xlu0 %3906  ;;  %v4259_v29 = vld [vmem:[%s5482_s4 + $0x42] sm:$0x2] }
 0x407   : > { %v4215_v12 = vsel %vm7546_vm11, %v3907_v39, %v4214_v33 }
 0x408   : > { %4216 = vst [vmem:[%s5482_s4 + $0x24] sm:$0x2] %v4215_v12  ;;  %v3909_v56 = vpop.permute.xlu1 %3908  ;;  %4022 = vrot.lane.b32.xlu0 %v8383_v13, %s4932_s25  ;;  %v4262_v12 = vld [vmem:[%s5482_s4 + $0x44] sm:$0x2]  ;;  %v4265_v13 = vld [vmem:[%s5482_s4 + $0x46] sm:$0x2] }
 0x409   : > { %v4218_v25 = vsel %vm7546_vm11, %v3909_v56, %v4217_v9 }
 0x40a   : > { %4219 = vst [vmem:[%s5482_s4 + $0x26] sm:$0x2] %v4218_v25  ;;  %4024 = vrot.lane.b32.xlu1 %v8384_v24, %s4932_s25  ;;  %v3911_v43 = vpop.permute.xlu0 %3910 }
 0x40b   : > { %v4221_v36 = vsel %vm7546_vm11, %v3911_v43, %v4220_v41  ;;  %v4271_v43 = vld [vmem:[%s5482_s4 + $0x4a] sm:$0x2] }
 0x40c   : > { %4222 = vst [vmem:[%s5482_s4 + $0x28] sm:$0x2] %v4221_v36  ;;  %v3913_v49 = vpop.permute.xlu1 %3912  ;;  %4026 = vrot.lane.b32.xlu0 %v8340_v26, %s4932_s25  ;;  %v8385_v26 = vld [vmem:[#allocation32_spill] sm:$0xff] }
 0x40d   : > { %v4224_v54 = vsel %vm7546_vm11, %v3913_v49, %v4223_v35 }
 0x40e   : > { %4225 = vst [vmem:[%s5482_s4 + $0x2a] sm:$0x2] %v4224_v54  ;;  %4028 = vrot.lane.b32.xlu1 %v8341_v4, %s4932_s25  ;;  %v3915_v34 = vpop.permute.xlu0 %3914  ;;  %v8386_v4 = vld [vmem:[#allocation35_spill] sm:$0xff] }
 0x40f   : > { %v4227_v10 = vsel %vm7546_vm11, %v3915_v34, %v4226_v59  ;;  %v4277_v59 = vld [vmem:[%s5482_s4 + $0x4e] sm:$0x2] }
 0x410   : > { %4228 = vst [vmem:[%s5482_s4 + $0x2c] sm:$0x2] %v4227_v10  ;;  %v3917_v18 = vpop.permute.xlu1 %3916  ;;  %4030 = vrot.lane.b32.xlu0 %v8385_v26, %s4932_s25  ;;  %v4283_v26 = vld [vmem:[%s5482_s4 + $0x52] sm:$0x2] }
 0x411   : > { %v4230_v27 = vsel %vm7546_vm11, %v3917_v18, %v4229_v15  ;;  %v4280_v15 = vld [vmem:[%s5482_s4 + $0x50] sm:$0x2] }
 0x412   : > { %4231 = vst [vmem:[%s5482_s4 + $0x2e] sm:$0x2] %v4230_v27  ;;  %4032 = vrot.lane.b32.xlu1 %v8386_v4, %s4932_s25  ;;  %v3919_v0 = vpop.permute.xlu0 %3918 }
 0x413   : > { %v4233_v57 = vsel %vm7546_vm11, %v3919_v0, %v4232_v19  ;;  %v4286_v19 = vld [vmem:[%s5482_s4 + $0x54] sm:$0x2] }
 0x414   : > { %4234 = vst [vmem:[%s5482_s4 + $0x30] sm:$0x2] %v4233_v57  ;;  %v3921_v38 = vpop.permute.xlu1 %3920  ;;  %4034 = vrot.lane.b32.xlu0 %v8387_v46, %s4932_s25 }
 0x415   : > { %v4236_v31 = vsel %vm7546_vm11, %v3921_v38, %v4235_v11  ;;  %v4289_v11 = vld [vmem:[%s5482_s4 + $0x56] sm:$0x2] }
 0x416   : > { %4237 = vst [vmem:[%s5482_s4 + $0x32] sm:$0x2] %v4236_v31  ;;  %4036 = vrot.lane.b32.xlu1 %v8388_v22, %s4932_s25  ;;  %v3923_v47 = vpop.permute.xlu0 %3922  ;;  %v4292_v31 = vld [vmem:[%s5482_s4 + $0x58] sm:$0x2] }
 0x417   : > { %v4239_v28 = vsel %vm7546_vm11, %v3923_v47, %v4238_v7  ;;  %v4295_v47 = vld [vmem:[%s5482_s4 + $0x5a] sm:$0x2] }
 0x418   : > { %4240 = vst [vmem:[%s5482_s4 + $0x34] sm:$0x2] %v4239_v28  ;;  %v3925_v63 = vpop.permute.xlu1 %3924  ;;  %4038 = vrot.lane.b32.xlu0 %v8389_v53, %s4932_s25 }
 0x419   : > { %v4242_v21 = vsel %vm7546_vm11, %v3925_v63, %v4241_v1  ;;  %v4298_v63 = vld [vmem:[%s5482_s4 + $0x5c] sm:$0x2] }
 0x41a   : > { %4243 = vst [vmem:[%s5482_s4 + $0x36] sm:$0x2] %v4242_v21  ;;  %4040 = vrot.lane.b32.xlu1 %v8390_v55, %s4932_s25  ;;  %v3927_v14 = vpop.permute.xlu0 %3926  ;;  %v4301_v55 = vld [vmem:[%s5482_s4 + $0x5e] sm:$0x2] }
 0x41b   : > { %v4245_v16 = vsel %vm7546_vm11, %v3927_v14, %v4244_v42 }
 0x41c   : > { %4246 = vst [vmem:[%s5482_s4 + $0x38] sm:$0x2] %v4245_v16  ;;  %v3929_v45 = vpop.permute.xlu1 %3928  ;;  %4042 = vrot.lane.b32.xlu0 %v8391_v17, %s4932_s25  ;;  %v4304_v16 = vld [vmem:[%s5482_s4 + $0x60] sm:$0x2]  ;;  %v4307_v17 = vld [vmem:[%s5482_s4 + $0x62] sm:$0x2] }
 0x41d   : > { %v4248_v8 = vsel %vm7546_vm11, %v3929_v45, %v4247_v3 }
 0x41e   : > { %4249 = vst [vmem:[%s5482_s4 + $0x3a] sm:$0x2] %v4248_v8  ;;  %4044 = vrot.lane.b32.xlu1 %v8392_v60, %s4932_s25  ;;  %v3931_v37 = vpop.permute.xlu0 %3930 }
 0x41f   : > { %v4251_v2 = vsel %vm7546_vm11, %v3931_v37, %v4250_v62  ;;  %v4310_v62 = vld [vmem:[%s5482_s4 + $0x64] sm:$0x2] }
 0x420   : > { %4252 = vst [vmem:[%s5482_s4 + $0x3c] sm:$0x2] %v4251_v2  ;;  %v3933_v5 = vpop.permute.xlu1 %3932  ;;  %4046 = vrot.lane.b32.xlu0 %v8393_v52, %s4932_s25 }
 0x421   : > { %v4254_v40 = vsel %vm7546_vm11, %v3933_v5, %v4253_v61  ;;  %v4313_v61 = vld [vmem:[%s5482_s4 + $0x66] sm:$0x2] }
 0x422   : > { %4255 = vst [vmem:[%s5482_s4 + $0x3e] sm:$0x2] %v4254_v40  ;;  %4048 = vrot.lane.b32.xlu1 %v8394_v6, %s4932_s25  ;;  %v3935_v23 = vpop.permute.xlu0 %3934  ;;  %v4316_v40 = vld [vmem:[%s5482_s4 + $0x68] sm:$0x2] }
 0x423   : > { %v4257_v50 = vsel %vm7546_vm11, %v3935_v23, %v4256_v20  ;;  %v4319_v23 = vld [vmem:[%s5482_s4 + $0x6a] sm:$0x2] }
 0x424   : > { %4258 = vst [vmem:[%s5482_s4 + $0x40] sm:$0x2] %v4257_v50  ;;  %v3937_v33 = vpop.permute.xlu1 %3936  ;;  %4050 = vrot.lane.b32.xlu0 %v8348_v30, %s4932_s25 }
 0x425   : > { %v4260_v39 = vsel %vm7546_vm11, %v3937_v33, %v4259_v29  ;;  %v4322_v33 = vld [vmem:[%s5482_s4 + $0x6c] sm:$0x2] }
 0x426   : > { %4261 = vst [vmem:[%s5482_s4 + $0x42] sm:$0x2] %v4260_v39  ;;  %4052 = vrot.lane.b32.xlu1 %v8349_v58, %s4932_s25  ;;  %v3939_v9 = vpop.permute.xlu0 %3938  ;;  %v4268_v58 = vld [vmem:[%s5482_s4 + $0x48] sm:$0x2] }
 0x427   : > { %v4263_v56 = vsel %vm7546_vm11, %v3939_v9, %v4262_v12  ;;  %v4325_v9 = vld [vmem:[%s5482_s4 + $0x6e] sm:$0x2] }
 0x428   : > { %4264 = vst [vmem:[%s5482_s4 + $0x44] sm:$0x2] %v4263_v56  ;;  %v3941_v25 = vpop.permute.xlu1 %3940  ;;  %4054 = vrot.lane.b32.xlu0 %v8327_v44, %s4932_s25  ;;  %v8395_v44 = vld [vmem:[#allocation66_spill] sm:$0xff] }
 0x429   : > { %v4266_v30 = vsel %vm7546_vm11, %v3941_v25, %v4265_v13  ;;  %v4328_v25 = vld [vmem:[%s5482_s4 + $0x70] sm:$0x2] }
 0x42a   : > { %4267 = vst [vmem:[%s5482_s4 + $0x46] sm:$0x2] %v4266_v30  ;;  %4056 = vrot.lane.b32.xlu1 %v8328_v32, %s4932_s25  ;;  %v3943_v24 = vpop.permute.xlu0 %3942  ;;  %v4274_v32 = vld [vmem:[%s5482_s4 + $0x4c] sm:$0x2] }
 0x42b   : > { %v4269_v41 = vsel %vm7546_vm11, %v3943_v24, %v4268_v58  ;;  %v4331_v24 = vld [vmem:[%s5482_s4 + $0x72] sm:$0x2] }
 0x42c   : > { %4270 = vst [vmem:[%s5482_s4 + $0x48] sm:$0x2] %v4269_v41  ;;  %v3945_v36 = vpop.permute.xlu1 %3944  ;;  %4058 = vrot.lane.b32.xlu0 %v8395_v44, %s4932_s25 }
 0x42d   : > { %v4272_v35 = vsel %vm7546_vm11, %v3945_v36, %v4271_v43  ;;  %v4334_v36 = vld [vmem:[%s5482_s4 + $0x74] sm:$0x2] }
 0x42e   : > { %4273 = vst [vmem:[%s5482_s4 + $0x4a] sm:$0x2] %v4272_v35  ;;  %4060 = vrot.lane.b32.xlu1 %v8345_v48, %s4932_s25  ;;  %v3947_v49 = vpop.permute.xlu0 %3946 }
 0x42f   : > { %v4275_v54 = vsel %vm7546_vm11, %v3947_v49, %v4274_v32  ;;  %v4337_v32 = vld [vmem:[%s5482_s4 + $0x76] sm:$0x2] }
 0x430   : > { %4276 = vst [vmem:[%s5482_s4 + $0x4c] sm:$0x2] %v4275_v54  ;;  %v3949_v34 = vpop.permute.xlu1 %3948 }
 0x431   : > { %v4278_v10 = vsel %vm7546_vm11, %v3949_v34, %v4277_v59  ;;  %v4340_v59 = vld [vmem:[%s5482_s4 + $0x78] sm:$0x2] }
 0x432   : > { %4279 = vst [vmem:[%s5482_s4 + $0x4e] sm:$0x2] %v4278_v10  ;;  %v3951_v48 = vpop.permute.xlu0 %3950 }
 0x433   : > { %v4281_v18 = vsel %vm7546_vm11, %v3951_v48, %v4280_v15  ;;  %v4343_v15 = vld [vmem:[%s5482_s4 + $0x7a] sm:$0x2] }
 0x434   : > { %4282 = vst [vmem:[%s5482_s4 + $0x50] sm:$0x2] %v4281_v18  ;;  %v3953_v27 = vpop.permute.xlu1 %3952 }
 0x435   : > { %v4284_v4 = vsel %vm7546_vm11, %v3953_v27, %v4283_v26  ;;  %v4346_v26 = vld [vmem:[%s5482_s4 + $0x7c] sm:$0x2] }
 0x436   : > { %4285 = vst [vmem:[%s5482_s4 + $0x52] sm:$0x2] %v4284_v4  ;;  %v3955_v0 = vpop.permute.xlu0 %3954 }
 0x437   : > { %v4287_v57 = vsel %vm7546_vm11, %v3955_v0, %v4286_v19  ;;  %v4349_v19 = vld [vmem:[%s5482_s4 + $0x7e] sm:$0x2] }
 0x438   : > { %4288 = vst [vmem:[%s5482_s4 + $0x54] sm:$0x2] %v4287_v57  ;;  %v3957_v38 = vpop.permute.xlu1 %3956 }
 0x439   : > { %v4290_v46 = vsel %vm7546_vm11, %v3957_v38, %v4289_v11  ;;  %v4352_v11 = vld [vmem:[%s5482_s4 + $0x80] sm:$0x2] }
 0x43a   : > { %4291 = vst [vmem:[%s5482_s4 + $0x56] sm:$0x2] %v4290_v46  ;;  %v3959_v22 = vpop.permute.xlu0 %3958 }
 0x43b   : > { %v4293_v7 = vsel %vm7546_vm11, %v3959_v22, %v4292_v31  ;;  %v4355_v31 = vld [vmem:[%s5482_s4 + $0x82] sm:$0x2] }
 0x43c   : > { %4294 = vst [vmem:[%s5482_s4 + $0x58] sm:$0x2] %v4293_v7  ;;  %v3961_v28 = vpop.permute.xlu1 %3960 }
 0x43d   : > { %v4296_v1 = vsel %vm7546_vm11, %v3961_v28, %v4295_v47  ;;  %v4358_v47 = vld [vmem:[%s5482_s4 + $0x84] sm:$0x2] }
 0x43e   : > { %4297 = vst [vmem:[%s5482_s4 + $0x5a] sm:$0x2] %v4296_v1  ;;  %v3963_v53 = vpop.permute.xlu0 %3962 }
 0x43f   : > { %v4299_v21 = vsel %vm7546_vm11, %v3963_v53, %v4298_v63  ;;  %v4361_v63 = vld [vmem:[%s5482_s4 + $0x86] sm:$0x2] }
 0x440   : > { %4300 = vst [vmem:[%s5482_s4 + $0x5c] sm:$0x2] %v4299_v21  ;;  %v3965_v42 = vpop.permute.xlu1 %3964 }
 0x441   : > { %v4302_v14 = vsel %vm7546_vm11, %v3965_v42, %v4301_v55  ;;  %v4364_v55 = vld [vmem:[%s5482_s4 + $0x88] sm:$0x2] }
 0x442   : > { %4303 = vst [vmem:[%s5482_s4 + $0x5e] sm:$0x2] %v4302_v14  ;;  %v3967_v3 = vpop.permute.xlu0 %3966 }
 0x443   : > { %v4305_v45 = vsel %vm7546_vm11, %v3967_v3, %v4304_v16  ;;  %v4367_v16 = vld [vmem:[%s5482_s4 + $0x8a] sm:$0x2] }
 0x444   : > { %4306 = vst [vmem:[%s5482_s4 + $0x60] sm:$0x2] %v4305_v45  ;;  %v3969_v8 = vpop.permute.xlu1 %3968 }
 0x445   : > { %v4308_v60 = vsel %vm7546_vm11, %v3969_v8, %v4307_v17  ;;  %v4370_v17 = vld [vmem:[%s5482_s4 + $0x8c] sm:$0x2] }
 0x446   : > { %4309 = vst [vmem:[%s5482_s4 + $0x62] sm:$0x2] %v4308_v60  ;;  %v3971_v37 = vpop.permute.xlu0 %3970 }
 0x447   : > { %v4311_v2 = vsel %vm7546_vm11, %v3971_v37, %v4310_v62  ;;  %v4373_v62 = vld [vmem:[%s5482_s4 + $0x8e] sm:$0x2] }
 0x448   : > { %4312 = vst [vmem:[%s5482_s4 + $0x64] sm:$0x2] %v4311_v2  ;;  %v3973_v5 = vpop.permute.xlu1 %3972 }
 0x449   : > { %v4314_v52 = vsel %vm7546_vm11, %v3973_v5, %v4313_v61  ;;  %v4376_v61 = vld [vmem:[%s5482_s4 + $0x90] sm:$0x2] }
 0x44a   : > { %4315 = vst [vmem:[%s5482_s4 + $0x66] sm:$0x2] %v4314_v52  ;;  %v3975_v6 = vpop.permute.xlu0 %3974 }
 0x44b   : > { %v4317_v20 = vsel %vm7546_vm11, %v3975_v6, %v4316_v40  ;;  %v4379_v40 = vld [vmem:[%s5482_s4 + $0x92] sm:$0x2] }
 0x44c   : > { %4318 = vst [vmem:[%s5482_s4 + $0x68] sm:$0x2] %v4317_v20  ;;  %v3977_v50 = vpop.permute.xlu1 %3976 }
 0x44d   : > { %v4320_v29 = vsel %vm7546_vm11, %v3977_v50, %v4319_v23  ;;  %v4382_v23 = vld [vmem:[%s5482_s4 + $0x94] sm:$0x2] }
 0x44e   : > { %4321 = vst [vmem:[%s5482_s4 + $0x6a] sm:$0x2] %v4320_v29  ;;  %v3979_v39 = vpop.permute.xlu0 %3978 }
 0x44f   : > { %v4323_v12 = vsel %vm7546_vm11, %v3979_v39, %v4322_v33  ;;  %v4385_v33 = vld [vmem:[%s5482_s4 + $0x96] sm:$0x2] }
 0x450   : > { %4324 = vst [vmem:[%s5482_s4 + $0x6c] sm:$0x2] %v4323_v12  ;;  %v3981_v56 = vpop.permute.xlu1 %3980 }
 0x451   : > { %v4326_v13 = vsel %vm7546_vm11, %v3981_v56, %v4325_v9  ;;  %v4388_v9 = vld [vmem:[%s5482_s4 + $0x98] sm:$0x2] }
 0x452   : > { %4327 = vst [vmem:[%s5482_s4 + $0x6e] sm:$0x2] %v4326_v13  ;;  %v3983_v30 = vpop.permute.xlu0 %3982 }
 0x453   : > { %v4329_v58 = vsel %vm7546_vm11, %v3983_v30, %v4328_v25  ;;  %v4391_v25 = vld [vmem:[%s5482_s4 + $0x9a] sm:$0x2] }
 0x454   : > { %4330 = vst [vmem:[%s5482_s4 + $0x70] sm:$0x2] %v4329_v58  ;;  %v3985_v41 = vpop.permute.xlu1 %3984 }
 0x455   : > { %v4332_v43 = vsel %vm7546_vm11, %v3985_v41, %v4331_v24  ;;  %v4394_v24 = vld [vmem:[%s5482_s4 + $0x9c] sm:$0x2] }
 0x456   : > { %4333 = vst [vmem:[%s5482_s4 + $0x72] sm:$0x2] %v4332_v43  ;;  %v3987_v44 = vpop.permute.xlu0 %3986 }
 0x457   : > { %v4335_v35 = vsel %vm7546_vm11, %v3987_v44, %v4334_v36  ;;  %v4397_v36 = vld [vmem:[%s5482_s4 + $0x9e] sm:$0x2] }
 0x458   : > { %4336 = vst [vmem:[%s5482_s4 + $0x74] sm:$0x2] %v4335_v35  ;;  %v3989_v49 = vpop.permute.xlu1 %3988 }
 0x459   : > { %v4338_v54 = vsel %vm7546_vm11, %v3989_v49, %v4337_v32  ;;  %v4400_v32 = vld [vmem:[%s5482_s4 + $0xa0] sm:$0x2] }
 0x45a   : > { %4339 = vst [vmem:[%s5482_s4 + $0x76] sm:$0x2] %v4338_v54  ;;  %v3991_v34 = vpop.permute.xlu0 %3990 }
 0x45b   : > { %v4341_v10 = vsel %vm7546_vm11, %v3991_v34, %v4340_v59  ;;  %v4403_v59 = vld [vmem:[%s5482_s4 + $0xa2] sm:$0x2] }
 0x45c   : > { %4342 = vst [vmem:[%s5482_s4 + $0x78] sm:$0x2] %v4341_v10  ;;  %v3993_v48 = vpop.permute.xlu1 %3992 }
 0x45d   : > { %v4344_v18 = vsel %vm7546_vm11, %v3993_v48, %v4343_v15  ;;  %v4406_v15 = vld [vmem:[%s5482_s4 + $0xa4] sm:$0x2] }
 0x45e   : > { %4345 = vst [vmem:[%s5482_s4 + $0x7a] sm:$0x2] %v4344_v18  ;;  %v3995_v27 = vpop.permute.xlu0 %3994 }
 0x45f   : > { %v4347_v4 = vsel %vm7546_vm11, %v3995_v27, %v4346_v26  ;;  %v4409_v26 = vld [vmem:[%s5482_s4 + $0xa6] sm:$0x2] }
 0x460   : > { %4348 = vst [vmem:[%s5482_s4 + $0x7c] sm:$0x2] %v4347_v4  ;;  %v3997_v0 = vpop.permute.xlu1 %3996 }
 0x461   : > { %v4350_v57 = vsel %vm7546_vm11, %v3997_v0, %v4349_v19  ;;  %v4412_v19 = vld [vmem:[%s5482_s4 + $0xa8] sm:$0x2] }
 0x462   : > { %4351 = vst [vmem:[%s5482_s4 + $0x7e] sm:$0x2] %v4350_v57  ;;  %v3999_v38 = vpop.permute.xlu0 %3998 }
 0x463   : > { %v4353_v46 = vsel %vm7546_vm11, %v3999_v38, %v4352_v11  ;;  %v4415_v11 = vld [vmem:[%s5482_s4 + $0xaa] sm:$0x2] }
 0x464   : > { %4354 = vst [vmem:[%s5482_s4 + $0x80] sm:$0x2] %v4353_v46  ;;  %v4001_v22 = vpop.permute.xlu1 %4000 }
 0x465   : > { %v4356_v7 = vsel %vm7546_vm11, %v4001_v22, %v4355_v31  ;;  %v4418_v31 = vld [vmem:[%s5482_s4 + $0xac] sm:$0x2] }
 0x466   : > { %4357 = vst [vmem:[%s5482_s4 + $0x82] sm:$0x2] %v4356_v7  ;;  %v4003_v28 = vpop.permute.xlu0 %4002 }
 0x467   : > { %v4359_v1 = vsel %vm7546_vm11, %v4003_v28, %v4358_v47  ;;  %v4421_v47 = vld [vmem:[%s5482_s4 + $0xae] sm:$0x2] }
 0x468   : > { %4360 = vst [vmem:[%s5482_s4 + $0x84] sm:$0x2] %v4359_v1  ;;  %v4005_v53 = vpop.permute.xlu1 %4004 }
 0x469   : > { %v4362_v21 = vsel %vm7546_vm11, %v4005_v53, %v4361_v63  ;;  %v4424_v63 = vld [vmem:[%s5482_s4 + $0xb0] sm:$0x2] }
 0x46a   : > { %4363 = vst [vmem:[%s5482_s4 + $0x86] sm:$0x2] %v4362_v21  ;;  %v4007_v42 = vpop.permute.xlu0 %4006 }
 0x46b   : > { %v4365_v14 = vsel %vm7546_vm11, %v4007_v42, %v4364_v55  ;;  %v4427_v55 = vld [vmem:[%s5482_s4 + $0xb2] sm:$0x2] }
 0x46c   : > { %4366 = vst [vmem:[%s5482_s4 + $0x88] sm:$0x2] %v4365_v14  ;;  %v4009_v3 = vpop.permute.xlu1 %4008 }
 0x46d   : > { %v4368_v45 = vsel %vm7546_vm11, %v4009_v3, %v4367_v16  ;;  %v4430_v16 = vld [vmem:[%s5482_s4 + $0xb4] sm:$0x2] }
 0x46e   : > { %4369 = vst [vmem:[%s5482_s4 + $0x8a] sm:$0x2] %v4368_v45  ;;  %v4011_v8 = vpop.permute.xlu0 %4010 }
 0x46f   : > { %v4371_v60 = vsel %vm7546_vm11, %v4011_v8, %v4370_v17  ;;  %v4433_v17 = vld [vmem:[%s5482_s4 + $0xb6] sm:$0x2] }
 0x470   : > { %4372 = vst [vmem:[%s5482_s4 + $0x8c] sm:$0x2] %v4371_v60  ;;  %v4013_v37 = vpop.permute.xlu1 %4012 }
 0x471   : > { %v4374_v2 = vsel %vm7546_vm11, %v4013_v37, %v4373_v62  ;;  %v4436_v62 = vld [vmem:[%s5482_s4 + $0xb8] sm:$0x2] }
 0x472   : > { %4375 = vst [vmem:[%s5482_s4 + $0x8e] sm:$0x2] %v4374_v2  ;;  %v4015_v5 = vpop.permute.xlu0 %4014 }
 0x473   : > { %v4377_v52 = vsel %vm7546_vm11, %v4015_v5, %v4376_v61  ;;  %v4439_v61 = vld [vmem:[%s5482_s4 + $0xba] sm:$0x2] }
 0x474   : > { %4378 = vst [vmem:[%s5482_s4 + $0x90] sm:$0x2] %v4377_v52  ;;  %v4017_v6 = vpop.permute.xlu1 %4016 }
 0x475   : > { %v4380_v20 = vsel %vm7546_vm11, %v4017_v6, %v4379_v40  ;;  %v4442_v40 = vld [vmem:[%s5482_s4 + $0xbc] sm:$0x2] }
 0x476   : > { %4381 = vst [vmem:[%s5482_s4 + $0x92] sm:$0x2] %v4380_v20  ;;  %v4019_v50 = vpop.permute.xlu0 %4018 }
 0x477   : > { %v4383_v29 = vsel %vm7546_vm11, %v4019_v50, %v4382_v23  ;;  %v4445_v23 = vld [vmem:[%s5482_s4 + $0xbe] sm:$0x2] }
 0x478   : > { %4384 = vst [vmem:[%s5482_s4 + $0x94] sm:$0x2] %v4383_v29  ;;  %v4021_v39 = vpop.permute.xlu1 %4020 }
 0x479   : > { %v4386_v12 = vsel %vm7546_vm11, %v4021_v39, %v4385_v33 }
 0x47a   : > { %4387 = vst [vmem:[%s5482_s4 + $0x96] sm:$0x2] %v4386_v12  ;;  %v4023_v56 = vpop.permute.xlu0 %4022 }
 0x47b   : > { %v4389_v13 = vsel %vm7546_vm11, %v4023_v56, %v4388_v9 }
 0x47c   : > { %4390 = vst [vmem:[%s5482_s4 + $0x98] sm:$0x2] %v4389_v13  ;;  %v4025_v30 = vpop.permute.xlu1 %4024 }
 0x47d   : > { %v4392_v58 = vsel %vm7546_vm11, %v4025_v30, %v4391_v25 }
 0x47e   : > { %4393 = vst [vmem:[%s5482_s4 + $0x9a] sm:$0x2] %v4392_v58  ;;  %v4027_v41 = vpop.permute.xlu0 %4026 }
 0x47f   : > { %v4395_v43 = vsel %vm7546_vm11, %v4027_v41, %v4394_v24 }
 0x480   : > { %4396 = vst [vmem:[%s5482_s4 + $0x9c] sm:$0x2] %v4395_v43  ;;  %v4029_v44 = vpop.permute.xlu1 %4028 }
 0x481   : > { %v4398_v35 = vsel %vm7546_vm11, %v4029_v44, %v4397_v36 }
 0x482   : > { %4399 = vst [vmem:[%s5482_s4 + $0x9e] sm:$0x2] %v4398_v35  ;;  %v4031_v49 = vpop.permute.xlu0 %4030 }
 0x483   : > { %v4401_v54 = vsel %vm7546_vm11, %v4031_v49, %v4400_v32 }
 0x484   : > { %4402 = vst [vmem:[%s5482_s4 + $0xa0] sm:$0x2] %v4401_v54  ;;  %v4033_v34 = vpop.permute.xlu1 %4032 }
 0x485   : > { %v4404_v10 = vsel %vm7546_vm11, %v4033_v34, %v4403_v59 }
 0x486   : > { %4405 = vst [vmem:[%s5482_s4 + $0xa2] sm:$0x2] %v4404_v10  ;;  %v4035_v48 = vpop.permute.xlu0 %4034 }
 0x487   : > { %v4407_v18 = vsel %vm7546_vm11, %v4035_v48, %v4406_v15 }
 0x488   : > { %4408 = vst [vmem:[%s5482_s4 + $0xa4] sm:$0x2] %v4407_v18  ;;  %v4037_v27 = vpop.permute.xlu1 %4036 }
 0x489   : > { %v4410_v4 = vsel %vm7546_vm11, %v4037_v27, %v4409_v26 }
 0x48a   : > { %4411 = vst [vmem:[%s5482_s4 + $0xa6] sm:$0x2] %v4410_v4  ;;  %v4039_v0 = vpop.permute.xlu0 %4038 }
 0x48b   : > { %v4413_v57 = vsel %vm7546_vm11, %v4039_v0, %v4412_v19 }
 0x48c   : > { %4414 = vst [vmem:[%s5482_s4 + $0xa8] sm:$0x2] %v4413_v57  ;;  %v4041_v38 = vpop.permute.xlu1 %4040 }
 0x48d   : > { %v4416_v46 = vsel %vm7546_vm11, %v4041_v38, %v4415_v11 }
 0x48e   : > { %4417 = vst [vmem:[%s5482_s4 + $0xaa] sm:$0x2] %v4416_v46  ;;  %v4043_v22 = vpop.permute.xlu0 %4042 }
 0x48f   : > { %v4419_v7 = vsel %vm7546_vm11, %v4043_v22, %v4418_v31 }
 0x490   : > { %4420 = vst [vmem:[%s5482_s4 + $0xac] sm:$0x2] %v4419_v7  ;;  %v4045_v28 = vpop.permute.xlu1 %4044 }
 0x491   : > { %v4422_v1 = vsel %vm7546_vm11, %v4045_v28, %v4421_v47 }
 0x492   : > { %4423 = vst [vmem:[%s5482_s4 + $0xae] sm:$0x2] %v4422_v1  ;;  %v4047_v53 = vpop.permute.xlu0 %4046 }
 0x493   : > { %v4425_v21 = vsel %vm7546_vm11, %v4047_v53, %v4424_v63 }
 0x494   : > { %4426 = vst [vmem:[%s5482_s4 + $0xb0] sm:$0x2] %v4425_v21  ;;  %v4049_v42 = vpop.permute.xlu1 %4048 }
 0x495   : > { %v4428_v14 = vsel %vm7546_vm11, %v4049_v42, %v4427_v55 }
 0x496   : > { %4429 = vst [vmem:[%s5482_s4 + $0xb2] sm:$0x2] %v4428_v14  ;;  %v4051_v3 = vpop.permute.xlu0 %4050 }
 0x497   : > { %v4431_v45 = vsel %vm7546_vm11, %v4051_v3, %v4430_v16 }
 0x498   : > { %4432 = vst [vmem:[%s5482_s4 + $0xb4] sm:$0x2] %v4431_v45  ;;  %v4053_v8 = vpop.permute.xlu1 %4052 }
 0x499   : > { %v4434_v60 = vsel %vm7546_vm11, %v4053_v8, %v4433_v17 }
 0x49a   : > { %4435 = vst [vmem:[%s5482_s4 + $0xb6] sm:$0x2] %v4434_v60  ;;  %v4055_v37 = vpop.permute.xlu0 %4054 }
 0x49b   : > { %v4437_v2 = vsel %vm7546_vm11, %v4055_v37, %v4436_v62 }
 0x49c   : > { %4438 = vst [vmem:[%s5482_s4 + $0xb8] sm:$0x2] %v4437_v2  ;;  %v4057_v5 = vpop.permute.xlu1 %4056 }
 0x49d   : > { %v4440_v52 = vsel %vm7546_vm11, %v4057_v5, %v4439_v61 }
 0x49e   : > { %4441 = vst [vmem:[%s5482_s4 + $0xba] sm:$0x2] %v4440_v52  ;;  %v4059_v6 = vpop.permute.xlu0 %4058 }
 0x49f   : > { %v4443_v20 = vsel %vm7546_vm11, %v4059_v6, %v4442_v40 }
 0x4a0   : > { %4444 = vst [vmem:[%s5482_s4 + $0xbc] sm:$0x2] %v4443_v20  ;;  %v4061_v50 = vpop.permute.xlu1 %4060 }
 0x4a1   : > { %v4446_v29 = vsel %vm7546_vm11, %v4061_v50, %v4445_v23 }
 0x4a2   : > { %4447 = vst [vmem:[%s5482_s4 + $0xbe] sm:$0x2] %v4446_v29 }
 0x4a3 PF: > { %s13_s14 = sadd.s32 1, %s4921_s14   ;;  %s8396_s12 = smov %s4917_s13 }
 0x4a4   : > { %p10_p5 = scmp.ge.s32.totalorder %s13_s14, 4   ;;  %s8397_s13 = smov %s8399_s15 }
 0x4a6   :  { %12 = sbr.rel (!%p10_p5) target bundleno = 2 (0x2), region = 65 }

</bundles_post_ra>
